<compile_context>
chip_gen: v7x
topology: tpu7x:2x2x1
jax: 0.10.0
libtpu: 0.0.40
codegen_flags: <defaults>
</compile_context>

<pallas_src>
import functools
import math

import jax
import jax.numpy as jnp
import numpy as np
from jax.experimental import pallas as pl
from jax.experimental.pallas import tpu as pltpu

OUT_PAD = 128  # lane-dense width of the final softmax output


# =============================================================================
# bf16-operand matmuls with f32 accumulation (MXU-native on v5e/v6e/v7x).
# =============================================================================

def _mm(a, b):
    return jnp.dot(a.astype(jnp.bfloat16), b.astype(jnp.bfloat16),
                   preferred_element_type=jnp.float32)


def _mm_nt(a, b):
    # a @ b.T, contracting the last dim of both (no materialized transpose).
    return jax.lax.dot_general(
        a.astype(jnp.bfloat16), b.astype(jnp.bfloat16),
        dimension_numbers=(((1,), (1,)), ((), ())),
        preferred_element_type=jnp.float32)


# =============================================================================
# Fused forward kernel: one grid-less pallas_call for the whole model.
# Parameters arrive as a handful of packed VMEM buffers; `layout` maps
# "module.param" -> (buffer_width, row_start, n_rows) for static slicing.
# =============================================================================

def _fused_forward_kernel(x_enc_ref, x_dec_ref, pe_enc_ref, pe_dec_ref, *rest,
                          widths, layout, num_heads, head_dim):
    param_refs, o_ref = rest[:-1], rest[-1]
    bufs = dict(zip(widths, param_refs))
    proj = num_heads * head_dim
    scale = 1.0 / math.sqrt(head_dim)
    head_slices = [(hh * head_dim, (hh + 1) * head_dim) for hh in range(num_heads)]

    def getp(name):
        width, start, nrows = layout[name]
        return bufs[width][start:start + nrows, :]        # static slice -> cheap

    def linear(x, name):
        return _mm(x, getp(name + ".w")) + getp(name + ".b")

    def layernorm(x, name):                               # f32 statistics
        g, b = getp(name + ".g"), getp(name + ".b")
        m = jnp.mean(x, axis=-1, keepdims=True)
        c = x - m
        v = jnp.mean(c * c, axis=-1, keepdims=True)
        return c * jax.lax.rsqrt(v + 1e-5) * g + b

    def mha(qx, kvx, name):
        wqkv, bqkv = getp(name + ".wqkv"), getp(name + ".bqkv")
        wo, bo = getp(name + ".wo"), getp(name + ".bo")
        # Fused projections: one [Sq,32]x[32,32] dot for Q and one
        # [Sk,32]x[32,64] dot for K|V -- full-width MXU pushes, no per-head
        # weight tensors, no broadcast over heads.
        q = _mm(qx, wqkv[:, :proj]) + bqkv[:, :proj]       # (Sq, proj)
        kv = _mm(kvx, wqkv[:, proj:]) + bqkv[:, proj:]     # (Sk, 2*proj)
        out = bo
        # TODO(synk): head-batch the scores/attn@V einsums (and flash-tile
        # them) at realistic sequence lengths; kept per-head 2-D here to
        # avoid 3-D reshape/transpose relayouts at these tiny shapes.
        for lo, hi in head_slices:
            qh, kh = q[:, lo:hi], kv[:, lo:hi]
            vh = kv[:, proj + lo:proj + hi]
            s = _mm_nt(qh, kh) * scale                     # (Sq, Sk), f32
            s = s - jnp.max(s, axis=-1, keepdims=True)
            e = jnp.exp(s)
            attn = e / jnp.sum(e, axis=-1, keepdims=True)  # exact division
            out = out + _mm(_mm(attn, vh), wo[lo:hi, :])
        return out

    def ffn(x, blk):
        hdn = jnp.maximum(linear(x, blk + ".ff1"), 0.0)
        return linear(hdn, blk + ".ff2")

    def enc_block(x, blk):
        x = layernorm(x + mha(x, x, blk + ".attn"), blk + ".ln1")
        return layernorm(x + ffn(x, blk), blk + ".ln2")

    def dec_block(x, enc, blk):
        x = layernorm(x + mha(x, x, blk + ".self_attn"), blk + ".ln1")
        x = layernorm(x + mha(x, enc, blk + ".cross_attn"), blk + ".ln2")
        return layernorm(x + ffn(x, blk), blk + ".ln3")

    # ---------------- encoder ----------------
    henc = linear(x_enc_ref[...], "channel_embedding") + pe_enc_ref[...]
    henc = enc_block(henc, "enc1")
    henc = enc_block(henc, "enc2")

    # ---------------- decoder ----------------
    d = linear(x_dec_ref[...], "pwm_embedding") + pe_dec_ref[...]
    d = dec_block(d, henc, "dec1")
    d = dec_block(d, henc, "dec2")

    # -------- head: final linear (padded to 128 lanes) + exact softmax -------
    # Padded weight cols are 0 and padded bias cols are -1e30, so the padded
    # logits contribute exp(...) == 0 and the first pwm_dim columns equal the
    # true softmax.  The (S_dec, 128) store is a full-lane unmasked vst.
    logits = linear(d, "final_linear")
    logits = logits - jnp.max(logits, axis=-1, keepdims=True)
    e = jnp.exp(logits)
    o_ref[...] = e / jnp.sum(e, axis=-1, keepdims=True)


def make_forward(widths, layout, *, num_heads, head_dim, pwm_dim, out_pad=OUT_PAD):
    kernel = functools.partial(_fused_forward_kernel, widths=tuple(widths),
                               layout=dict(layout), num_heads=num_heads,
                               head_dim=head_dim)

    @jax.jit
    def fwd(buffers, x_enc, x_dec, pe_enc, pe_dec):
        n_in = 4 + len(buffers)
        out = pl.pallas_call(
            kernel,
            out_shape=jax.ShapeDtypeStruct((x_dec.shape[0], out_pad), jnp.float32),
            in_specs=[pl.BlockSpec(memory_space=pltpu.MemorySpace.VMEM)] * n_in,
            out_specs=pl.BlockSpec(memory_space=pltpu.MemorySpace.VMEM),
        )(x_enc, x_dec, pe_enc, pe_dec, *buffers)
        return out[:, :pwm_dim]

    return fwd


# =============================================================================
# Parameter construction (PyTorch-convention) + one-time packing into a few
# contiguous, width-grouped VMEM buffers.
# =============================================================================

class _RowPacker:
    """Stacks 2-D params row-wise into one buffer per column width."""

    def __init__(self):
        self._chunks = {}   # width -> list of 2-D arrays (rows padded to 8)
        self._rows = {}     # width -> running (padded) row count
        self.layout = {}    # name -> (width, row_start, n_real_rows)

    def add(self, name, arr):
        arr = jnp.asarray(arr, jnp.float32)
        assert arr.ndim == 2
        r, c = int(arr.shape[0]), int(arr.shape[1])
        pad = (-r) % 8                       # keep every slice sublane-aligned
        if pad:
            arr = jnp.pad(arr, ((0, pad), (0, 0)))
        start = self._rows.get(c, 0)
        self._chunks.setdefault(c, []).append(arr)
        self._rows[c] = start + r + pad
        self.layout[name] = (c, start, r)

    def finalize(self):
        widths = tuple(sorted(self._chunks))
        buffers = tuple(jnp.concatenate(self._chunks[w], axis=0) for w in widths)
        return widths, buffers, self.layout


def pack_params(raw, *, pwm_dim, out_pad=OUT_PAD):
    """One-time conversion PyTorch (out,in) params -> packed kernel buffers."""
    pk = _RowPacker()

    def lin(name, p):
        pk.add(name + ".w", p["w"].T)                      # (in, out)
        pk.add(name + ".b", p["b"].reshape(1, -1))

    def ln(name, p):
        pk.add(name + ".g", p["g"].reshape(1, -1))
        pk.add(name + ".b", p["b"].reshape(1, -1))

    def attn(name, p):
        wqkv = jnp.concatenate([p["wq"].T, p["wk"].T, p["wv"].T], axis=1)   # (d, 3*proj)
        bqkv = jnp.concatenate([p["bq"], p["bk"], p["bv"]]).reshape(1, -1)  # (1, 3*proj)
        pk.add(name + ".wqkv", wqkv)
        pk.add(name + ".bqkv", bqkv)
        pk.add(name + ".wo", p["wo"].T)                    # (proj, d_model)
        pk.add(name + ".bo", p["bo"].reshape(1, -1))

    lin("channel_embedding", raw["channel_embedding"])
    lin("pwm_embedding", raw["pwm_embedding"])
    for blk in ("enc1", "enc2"):
        attn(blk + ".attn", raw[blk]["attn"])
        ln(blk + ".ln1", raw[blk]["ln1"])
        lin(blk + ".ff1", raw[blk]["ff1"])
        lin(blk + ".ff2", raw[blk]["ff2"])
        ln(blk + ".ln2", raw[blk]["ln2"])
    for blk in ("dec1", "dec2"):
        attn(blk + ".self_attn", raw[blk]["self_attn"])
        ln(blk + ".ln1", raw[blk]["ln1"])
        attn(blk + ".cross_attn", raw[blk]["cross_attn"])
        ln(blk + ".ln2", raw[blk]["ln2"])
        lin(blk + ".ff1", raw[blk]["ff1"])
        lin(blk + ".ff2", raw[blk]["ff2"])
        ln(blk + ".ln3", raw[blk]["ln3"])

    # Final linear, padded out to `out_pad` lanes: padded weight cols = 0,
    # padded bias cols = -1e30 so they vanish under the final softmax.
    wf = raw["final_linear"]["w"].T                        # (io_dim, pwm_dim)
    bf = raw["final_linear"]["b"].reshape(1, -1)           # (1, pwm_dim)
    io_dim = wf.shape[0]
    wf_p = jnp.zeros((io_dim, out_pad), jnp.float32).at[:, :pwm_dim].set(wf)
    bf_p = jnp.full((1, out_pad), -1e30, jnp.float32).at[:, :pwm_dim].set(bf)
    pk.add("final_linear.w", wf_p)
    pk.add("final_linear.b", bf_p)

    return pk.finalize()


def _linear_params(key, out_dim, in_dim, scale=0.05):
    kw, kb = jax.random.split(key)
    return {"w": jax.random.normal(kw, (out_dim, in_dim), jnp.float32) * scale,
            "b": jax.random.normal(kb, (out_dim,), jnp.float32) * scale}


def _attn_params(key, d_model, num_heads, head_dim, scale=0.05):
    keys = jax.random.split(key, 8)
    proj = num_heads * head_dim
    return {
        "wq": jax.random.normal(keys[0], (proj, d_model), jnp.float32) * scale,
        "bq": jax.random.normal(keys[1], (proj,), jnp.float32) * scale,
        "wk": jax.random.normal(keys[2], (proj, d_model), jnp.float32) * scale,
        "bk": jax.random.normal(keys[3], (proj,), jnp.float32) * scale,
        "wv": jax.random.normal(keys[4], (proj, d_model), jnp.float32) * scale,
        "bv": jax.random.normal(keys[5], (proj,), jnp.float32) * scale,
        "wo": jax.random.normal(keys[6], (d_model, proj), jnp.float32) * scale,
        "bo": jax.random.normal(keys[7], (d_model,), jnp.float32) * scale,
    }


def _ln_params(d_model):
    return {"g": jnp.ones((d_model,), jnp.float32),
            "b": jnp.zeros((d_model,), jnp.float32)}


def _encoder_block_params(key, d_model, num_heads, head_dim, ff_dim):
    k = jax.random.split(key, 3)
    return {"attn": _attn_params(k[0], d_model, num_heads, head_dim),
            "ln1": _ln_params(d_model),
            "ff1": _linear_params(k[1], ff_dim, d_model),
            "ff2": _linear_params(k[2], d_model, ff_dim),
            "ln2": _ln_params(d_model)}


def _decoder_block_params(key, d_model, num_heads, head_dim, ff_dim):
    k = jax.random.split(key, 4)
    return {"self_attn": _attn_params(k[0], d_model, num_heads, head_dim),
            "ln1": _ln_params(d_model),
            "cross_attn": _attn_params(k[1], d_model, num_heads, head_dim),
            "ln2": _ln_params(d_model),
            "ff1": _linear_params(k[2], ff_dim, d_model),
            "ff2": _linear_params(k[3], d_model, ff_dim),
            "ln3": _ln_params(d_model)}


def init_params(key, io_dim, head_dim, num_heads, ff_dim, n_in_ch, pwm_dim):
    keys = jax.random.split(key, 7)
    return {
        "channel_embedding": _linear_params(keys[0], io_dim, n_in_ch),
        "enc1": _encoder_block_params(keys[1], io_dim, num_heads, head_dim, ff_dim),
        "enc2": _encoder_block_params(keys[2], io_dim, num_heads, head_dim, ff_dim),
        "pwm_embedding": _linear_params(keys[3], io_dim, pwm_dim),
        "dec1": _decoder_block_params(keys[4], io_dim, num_heads, head_dim, ff_dim),
        "dec2": _decoder_block_params(keys[5], io_dim, num_heads, head_dim, ff_dim),
        "final_linear": _linear_params(keys[6], pwm_dim, io_dim),
    }


def positional_encoding(seq_len, d_model):
    pos = np.arange(seq_len)[:, None].astype(np.float32)
    i = np.arange(d_model)[None, :].astype(np.float32)
    angle = pos / np.power(10000.0, (2.0 * np.floor(i / 2.0)) / d_model)
    pe = np.where((np.arange(d_model) % 2) == 0, np.sin(angle), np.cos(angle))
    return jnp.asarray(pe, jnp.float32)


# =============================================================================
# Pure-JAX reference (RAW PyTorch-convention params) — checks both the kernel
# math and the parameter packing.
# =============================================================================

def _ref_linear(x, p):
    return x @ p["w"].T + p["b"]


def _ref_ln(x, p):
    m = jnp.mean(x, axis=-1, keepdims=True)
    v = jnp.mean((x - m) ** 2, axis=-1, keepdims=True)
    return (x - m) * jax.lax.rsqrt(v + 1e-5) * p["g"] + p["b"]


def _ref_mha(qx, kvx, p, num_heads, head_dim):
    q = qx @ p["wq"].T + p["bq"]
    k = kvx @ p["wk"].T + p["bk"]
    v = kvx @ p["wv"].T + p["bv"]
    sq, sk = q.shape[0], k.shape[0]
    q = q.reshape(sq, num_heads, head_dim).transpose(1, 0, 2)
    k = k.reshape(sk, num_heads, head_dim).transpose(1, 0, 2)
    v = v.reshape(sk, num_heads, head_dim).transpose(1, 0, 2)
    s = jnp.einsum("hqd,hkd->hqk", q, k) / math.sqrt(head_dim)
    p_attn = jax.nn.softmax(s, axis=-1)
    o = jnp.einsum("hqk,hkd->hqd", p_attn, v).transpose(1, 0, 2).reshape(sq, -1)
    return o @ p["wo"].T + p["bo"]


def _ref_enc_block(x, p, nh, hd):
    x = _ref_ln(x + _ref_mha(x, x, p["attn"], nh, hd), p["ln1"])
    f = _ref_linear(jnp.maximum(_ref_linear(x, p["ff1"]), 0.0), p["ff2"])
    return _ref_ln(x + f, p["ln2"])


def _ref_dec_block(x, enc, p, nh, hd):
    x = _ref_ln(x + _ref_mha(x, x, p["self_attn"], nh, hd), p["ln1"])
    x = _ref_ln(x + _ref_mha(x, enc, p["cross_attn"], nh, hd), p["ln2"])
    f = _ref_linear(jnp.maximum(_ref_linear(x, p["ff1"]), 0.0), p["ff2"])
    return _ref_ln(x + f, p["ln3"])


def ref_forward(params, x_enc, x_dec, *, num_heads, head_dim, io_dim):
    h = _ref_linear(x_enc, params["channel_embedding"]) + positional_encoding(x_enc.shape[0], io_dim)
    h = _ref_enc_block(h, params["enc1"], num_heads, head_dim)
    h = _ref_enc_block(h, params["enc2"], num_heads, head_dim)
    d = _ref_linear(x_dec, params["pwm_embedding"]) + positional_encoding(x_dec.shape[0], io_dim)
    d = _ref_dec_block(d, h, params["dec1"], num_heads, head_dim)
    d = _ref_dec_block(d, h, params["dec2"], num_heads, head_dim)
    logits = _ref_linear(d, params["final_linear"])
    return jax.nn.softmax(logits, axis=-1)


# =============================================================================

if __name__ == "__main__":
    # Small configuration consistent with the module's constructor.
    io_dim = 32            # input_output_dim
    head_dim = 8
    num_heads = 4
    ff_internal_dim = 64
    n_input_channel = 20   # "Assuming that N_channel = 20"
    pwm_dim = 4
    S_enc = 16             # N_res for the encoder input
    S_dec = 8              # PWM length for the decoder input
    # dropout_frac is irrelevant at inference (identity); omitted.

    key = jax.random.PRNGKey(0)
    k_par, k_enc, k_dec = jax.random.split(key, 3)
    raw_params = init_params(k_par, io_dim, head_dim, num_heads,
                             ff_internal_dim, n_input_channel, pwm_dim)
    widths, buffers, layout = pack_params(raw_params, pwm_dim=pwm_dim)

    x_enc = jax.random.normal(k_enc, (S_enc, n_input_channel), jnp.float32)
    x_dec = jax.random.normal(k_dec, (S_dec, pwm_dim), jnp.float32)

    # Positional encodings: built once, passed as constants.
    pe_enc = positional_encoding(S_enc, io_dim)
    pe_dec = positional_encoding(S_dec, io_dim)

    fwd = make_forward(widths, layout, num_heads=num_heads, head_dim=head_dim,
                       pwm_dim=pwm_dim)
    out = jax.block_until_ready(fwd(buffers, x_enc, x_dec, pe_enc, pe_dec))

    ref = jax.block_until_ready(
        ref_forward(raw_params, x_enc, x_dec,
                    num_heads=num_heads, head_dim=head_dim, io_dim=io_dim))

    assert out.shape == (S_dec, pwm_dim)
    # Tolerance accounts for bf16 matmul operands (f32 accumulation, f32
    # LayerNorm / softmax keep the error bounded).
    np.testing.assert_allclose(np.asarray(out), np.asarray(ref),
                               rtol=5e-2, atol=2e-2)
    # Rows of the final softmax must sum to 1 (exact division, padded logits
    # contribute exactly zero).
    np.testing.assert_allclose(np.asarray(out).sum(-1), np.ones(S_dec),
                               rtol=1e-4, atol=1e-4)

    print("KERNEL_OK")
</pallas_src>

<mosaic_0001>
module attributes {stable_mosaic.version = 11 : i64} {
  func.func @_fused_forward_kernel(%arg0: memref<16x20xf32, #tpu.memory_space<vmem>>, %arg1: memref<8x4xf32, #tpu.memory_space<vmem>>, %arg2: memref<16x32xf32, #tpu.memory_space<vmem>>, %arg3: memref<8x32xf32, #tpu.memory_space<vmem>>, %arg4: memref<736x32xf32, #tpu.memory_space<vmem>>, %arg5: memref<160x64xf32, #tpu.memory_space<vmem>>, %arg6: memref<240x96xf32, #tpu.memory_space<vmem>>, %arg7: memref<40x128xf32, #tpu.memory_space<vmem>>, %arg8: memref<8x128xf32, #tpu.memory_space<vmem>>) attributes {dimension_semantics = [], scalar_prefetch = 0 : i64, scratch_operands = 0 : i64, tpu.core_type = #tpu.core_type<tc>} {
    %c0 = arith.constant 0 : index
    %c0_0 = arith.constant 0 : index
    %0 = vector.load %arg0[%c0, %c0_0] : memref<16x20xf32, #tpu.memory_space<vmem>>, vector<16x20xf32>
    %c0_1 = arith.constant 0 : index
    %c0_2 = arith.constant 0 : index
    %1 = vector.load %arg4[%c0_1, %c0_2] : memref<736x32xf32, #tpu.memory_space<vmem>>, vector<20x32xf32>
    %2 = arith.truncf %0 : vector<16x20xf32> to vector<16x20xbf16>
    %3 = arith.truncf %1 : vector<20x32xf32> to vector<20x32xbf16>
    %cst = arith.constant dense<0.000000e+00> : vector<16x32xf32>
    %4 = tpu.matmul %2, %3, %cst {dimension_numbers = #tpu.dot_dimension_numbers<[1], [0], [0], [1], [0, 0, 1, 1], [], []>} : vector<16x20xbf16>, vector<20x32xbf16>, vector<16x32xf32> -> vector<16x32xf32>
    %c24 = arith.constant 24 : index
    %c0_3 = arith.constant 0 : index
    %5 = vector.load %arg4[%c24, %c0_3] : memref<736x32xf32, #tpu.memory_space<vmem>>, vector<1x32xf32>
    %6 = vector.broadcast %5 : vector<1x32xf32> to vector<16x32xf32>
    %7 = arith.addf %4, %6 : vector<16x32xf32>
    %c0_4 = arith.constant 0 : index
    %c0_5 = arith.constant 0 : index
    %8 = vector.load %arg2[%c0_4, %c0_5] : memref<16x32xf32, #tpu.memory_space<vmem>>, vector<16x32xf32>
    %9 = arith.addf %7, %8 : vector<16x32xf32>
    %c0_6 = arith.constant 0 : index
    %c0_7 = arith.constant 0 : index
    %10 = vector.load %arg6[%c0_6, %c0_7] : memref<240x96xf32, #tpu.memory_space<vmem>>, vector<32x96xf32>
    %c32 = arith.constant 32 : index
    %c0_8 = arith.constant 0 : index
    %11 = vector.load %arg6[%c32, %c0_8] : memref<240x96xf32, #tpu.memory_space<vmem>>, vector<1x96xf32>
    %c48 = arith.constant 48 : index
    %c0_9 = arith.constant 0 : index
    %12 = vector.load %arg4[%c48, %c0_9] : memref<736x32xf32, #tpu.memory_space<vmem>>, vector<32x32xf32>
    %c80 = arith.constant 80 : index
    %c0_10 = arith.constant 0 : index
    %13 = vector.load %arg4[%c80, %c0_10] : memref<736x32xf32, #tpu.memory_space<vmem>>, vector<1x32xf32>
    %14 = vector.extract_strided_slice %10 {offsets = [0, 0], sizes = [32, 32], strides = [1, 1]} : vector<32x96xf32> to vector<32x32xf32>
    %15 = arith.truncf %9 : vector<16x32xf32> to vector<16x32xbf16>
    %16 = arith.truncf %14 : vector<32x32xf32> to vector<32x32xbf16>
    %cst_11 = arith.constant dense<0.000000e+00> : vector<16x32xf32>
    %17 = tpu.matmul %15, %16, %cst_11 {dimension_numbers = #tpu.dot_dimension_numbers<[1], [0], [0], [1], [0, 0, 1, 1], [], []>} : vector<16x32xbf16>, vector<32x32xbf16>, vector<16x32xf32> -> vector<16x32xf32>
    %18 = vector.extract_strided_slice %11 {offsets = [0, 0], sizes = [1, 32], strides = [1, 1]} : vector<1x96xf32> to vector<1x32xf32>
    %19 = vector.broadcast %18 : vector<1x32xf32> to vector<16x32xf32>
    %20 = arith.addf %17, %19 : vector<16x32xf32>
    %21 = vector.extract_strided_slice %10 {offsets = [0, 32], sizes = [32, 64], strides = [1, 1]} : vector<32x96xf32> to vector<32x64xf32>
    %22 = arith.truncf %9 : vector<16x32xf32> to vector<16x32xbf16>
    %23 = arith.truncf %21 : vector<32x64xf32> to vector<32x64xbf16>
    %cst_12 = arith.constant dense<0.000000e+00> : vector<16x64xf32>
    %24 = tpu.matmul %22, %23, %cst_12 {dimension_numbers = #tpu.dot_dimension_numbers<[1], [0], [0], [1], [0, 0, 1, 1], [], []>} : vector<16x32xbf16>, vector<32x64xbf16>, vector<16x64xf32> -> vector<16x64xf32>
    %25 = vector.extract_strided_slice %11 {offsets = [0, 32], sizes = [1, 64], strides = [1, 1]} : vector<1x96xf32> to vector<1x64xf32>
    %26 = vector.broadcast %25 : vector<1x64xf32> to vector<16x64xf32>
    %27 = arith.addf %24, %26 : vector<16x64xf32>
    %28 = vector.extract_strided_slice %20 {offsets = [0, 0], sizes = [16, 8], strides = [1, 1]} : vector<16x32xf32> to vector<16x8xf32>
    %29 = vector.extract_strided_slice %27 {offsets = [0, 0], sizes = [16, 8], strides = [1, 1]} : vector<16x64xf32> to vector<16x8xf32>
    %30 = vector.extract_strided_slice %27 {offsets = [0, 32], sizes = [16, 8], strides = [1, 1]} : vector<16x64xf32> to vector<16x8xf32>
    %31 = arith.truncf %28 : vector<16x8xf32> to vector<16x8xbf16>
    %32 = arith.truncf %29 : vector<16x8xf32> to vector<16x8xbf16>
    %cst_13 = arith.constant dense<0.000000e+00> : vector<16x16xf32>
    %33 = tpu.matmul %31, %32, %cst_13 {dimension_numbers = #tpu.dot_dimension_numbers<[1], [1], [0], [0], [0, 0, 1, 0], [], []>} : vector<16x8xbf16>, vector<16x8xbf16>, vector<16x16xf32> -> vector<16x16xf32>
    %cst_14 = arith.constant 0.353553385 : f32
    %34 = vector.broadcast %cst_14 : f32 to vector<16x16xf32>
    %35 = arith.mulf %33, %34 : vector<16x16xf32>
    %cst_15 = arith.constant dense<0xFF800000> : vector<16xf32>
    %36 = vector.multi_reduction <maximumf>, %35, %cst_15 [1] : vector<16x16xf32> to vector<16xf32>
    %37 = vector.shape_cast %36 : vector<16xf32> to vector<16x1xf32>
    %38 = vector.broadcast %37 : vector<16x1xf32> to vector<16x16xf32>
    %39 = arith.subf %35, %38 : vector<16x16xf32>
    %40 = math.exp %39 : vector<16x16xf32>
    %cst_16 = arith.constant dense<0.000000e+00> : vector<16xf32>
    %41 = vector.multi_reduction <add>, %40, %cst_16 [1] : vector<16x16xf32> to vector<16xf32>
    %42 = vector.shape_cast %41 : vector<16xf32> to vector<16x1xf32>
    %43 = vector.broadcast %42 : vector<16x1xf32> to vector<16x16xf32>
    %44 = arith.divf %40, %43 : vector<16x16xf32>
    %45 = arith.truncf %44 : vector<16x16xf32> to vector<16x16xbf16>
    %46 = arith.truncf %30 : vector<16x8xf32> to vector<16x8xbf16>
    %cst_17 = arith.constant dense<0.000000e+00> : vector<16x8xf32>
    %47 = tpu.matmul %45, %46, %cst_17 {dimension_numbers = #tpu.dot_dimension_numbers<[1], [0], [0], [1], [0, 0, 1, 1], [], []>} : vector<16x16xbf16>, vector<16x8xbf16>, vector<16x8xf32> -> vector<16x8xf32>
    %48 = vector.extract_strided_slice %12 {offsets = [0, 0], sizes = [8, 32], strides = [1, 1]} : vector<32x32xf32> to vector<8x32xf32>
    %49 = arith.truncf %47 : vector<16x8xf32> to vector<16x8xbf16>
    %50 = arith.truncf %48 : vector<8x32xf32> to vector<8x32xbf16>
    %cst_18 = arith.constant dense<0.000000e+00> : vector<16x32xf32>
    %51 = tpu.matmul %49, %50, %cst_18 {dimension_numbers = #tpu.dot_dimension_numbers<[1], [0], [0], [1], [0, 0, 1, 1], [], []>} : vector<16x8xbf16>, vector<8x32xbf16>, vector<16x32xf32> -> vector<16x32xf32>
    %52 = vector.broadcast %13 : vector<1x32xf32> to vector<16x32xf32>
    %53 = arith.addf %52, %51 : vector<16x32xf32>
    %54 = vector.extract_strided_slice %20 {offsets = [0, 8], sizes = [16, 8], strides = [1, 1]} : vector<16x32xf32> to vector<16x8xf32>
    %55 = vector.extract_strided_slice %27 {offsets = [0, 8], sizes = [16, 8], strides = [1, 1]} : vector<16x64xf32> to vector<16x8xf32>
    %56 = vector.extract_strided_slice %27 {offsets = [0, 40], sizes = [16, 8], strides = [1, 1]} : vector<16x64xf32> to vector<16x8xf32>
    %57 = arith.truncf %54 : vector<16x8xf32> to vector<16x8xbf16>
    %58 = arith.truncf %55 : vector<16x8xf32> to vector<16x8xbf16>
    %cst_19 = arith.constant dense<0.000000e+00> : vector<16x16xf32>
    %59 = tpu.matmul %57, %58, %cst_19 {dimension_numbers = #tpu.dot_dimension_numbers<[1], [1], [0], [0], [0, 0, 1, 0], [], []>} : vector<16x8xbf16>, vector<16x8xbf16>, vector<16x16xf32> -> vector<16x16xf32>
    %cst_20 = arith.constant 0.353553385 : f32
    %60 = vector.broadcast %cst_20 : f32 to vector<16x16xf32>
    %61 = arith.mulf %59, %60 : vector<16x16xf32>
    %cst_21 = arith.constant dense<0xFF800000> : vector<16xf32>
    %62 = vector.multi_reduction <maximumf>, %61, %cst_21 [1] : vector<16x16xf32> to vector<16xf32>
    %63 = vector.shape_cast %62 : vector<16xf32> to vector<16x1xf32>
    %64 = vector.broadcast %63 : vector<16x1xf32> to vector<16x16xf32>
    %65 = arith.subf %61, %64 : vector<16x16xf32>
    %66 = math.exp %65 : vector<16x16xf32>
    %cst_22 = arith.constant dense<0.000000e+00> : vector<16xf32>
    %67 = vector.multi_reduction <add>, %66, %cst_22 [1] : vector<16x16xf32> to vector<16xf32>
    %68 = vector.shape_cast %67 : vector<16xf32> to vector<16x1xf32>
    %69 = vector.broadcast %68 : vector<16x1xf32> to vector<16x16xf32>
    %70 = arith.divf %66, %69 : vector<16x16xf32>
    %71 = arith.truncf %70 : vector<16x16xf32> to vector<16x16xbf16>
    %72 = arith.truncf %56 : vector<16x8xf32> to vector<16x8xbf16>
    %cst_23 = arith.constant dense<0.000000e+00> : vector<16x8xf32>
    %73 = tpu.matmul %71, %72, %cst_23 {dimension_numbers = #tpu.dot_dimension_numbers<[1], [0], [0], [1], [0, 0, 1, 1], [], []>} : vector<16x16xbf16>, vector<16x8xbf16>, vector<16x8xf32> -> vector<16x8xf32>
    %74 = vector.extract_strided_slice %12 {offsets = [8, 0], sizes = [8, 32], strides = [1, 1]} : vector<32x32xf32> to vector<8x32xf32>
    %75 = arith.truncf %73 : vector<16x8xf32> to vector<16x8xbf16>
    %76 = arith.truncf %74 : vector<8x32xf32> to vector<8x32xbf16>
    %cst_24 = arith.constant dense<0.000000e+00> : vector<16x32xf32>
    %77 = tpu.matmul %75, %76, %cst_24 {dimension_numbers = #tpu.dot_dimension_numbers<[1], [0], [0], [1], [0, 0, 1, 1], [], []>} : vector<16x8xbf16>, vector<8x32xbf16>, vector<16x32xf32> -> vector<16x32xf32>
    %78 = arith.addf %53, %77 : vector<16x32xf32>
    %79 = vector.extract_strided_slice %20 {offsets = [0, 16], sizes = [16, 8], strides = [1, 1]} : vector<16x32xf32> to vector<16x8xf32>
    %80 = vector.extract_strided_slice %27 {offsets = [0, 16], sizes = [16, 8], strides = [1, 1]} : vector<16x64xf32> to vector<16x8xf32>
    %81 = vector.extract_strided_slice %27 {offsets = [0, 48], sizes = [16, 8], strides = [1, 1]} : vector<16x64xf32> to vector<16x8xf32>
    %82 = arith.truncf %79 : vector<16x8xf32> to vector<16x8xbf16>
    %83 = arith.truncf %80 : vector<16x8xf32> to vector<16x8xbf16>
    %cst_25 = arith.constant dense<0.000000e+00> : vector<16x16xf32>
    %84 = tpu.matmul %82, %83, %cst_25 {dimension_numbers = #tpu.dot_dimension_numbers<[1], [1], [0], [0], [0, 0, 1, 0], [], []>} : vector<16x8xbf16>, vector<16x8xbf16>, vector<16x16xf32> -> vector<16x16xf32>
    %cst_26 = arith.constant 0.353553385 : f32
    %85 = vector.broadcast %cst_26 : f32 to vector<16x16xf32>
    %86 = arith.mulf %84, %85 : vector<16x16xf32>
    %cst_27 = arith.constant dense<0xFF800000> : vector<16xf32>
    %87 = vector.multi_reduction <maximumf>, %86, %cst_27 [1] : vector<16x16xf32> to vector<16xf32>
    %88 = vector.shape_cast %87 : vector<16xf32> to vector<16x1xf32>
    %89 = vector.broadcast %88 : vector<16x1xf32> to vector<16x16xf32>
    %90 = arith.subf %86, %89 : vector<16x16xf32>
    %91 = math.exp %90 : vector<16x16xf32>
    %cst_28 = arith.constant dense<0.000000e+00> : vector<16xf32>
    %92 = vector.multi_reduction <add>, %91, %cst_28 [1] : vector<16x16xf32> to vector<16xf32>
    %93 = vector.shape_cast %92 : vector<16xf32> to vector<16x1xf32>
    %94 = vector.broadcast %93 : vector<16x1xf32> to vector<16x16xf32>
    %95 = arith.divf %91, %94 : vector<16x16xf32>
    %96 = arith.truncf %95 : vector<16x16xf32> to vector<16x16xbf16>
    %97 = arith.truncf %81 : vector<16x8xf32> to vector<16x8xbf16>
    %cst_29 = arith.constant dense<0.000000e+00> : vector<16x8xf32>
    %98 = tpu.matmul %96, %97, %cst_29 {dimension_numbers = #tpu.dot_dimension_numbers<[1], [0], [0], [1], [0, 0, 1, 1], [], []>} : vector<16x16xbf16>, vector<16x8xbf16>, vector<16x8xf32> -> vector<16x8xf32>
    %99 = vector.extract_strided_slice %12 {offsets = [16, 0], sizes = [8, 32], strides = [1, 1]} : vector<32x32xf32> to vector<8x32xf32>
    %100 = arith.truncf %98 : vector<16x8xf32> to vector<16x8xbf16>
    %101 = arith.truncf %99 : vector<8x32xf32> to vector<8x32xbf16>
    %cst_30 = arith.constant dense<0.000000e+00> : vector<16x32xf32>
    %102 = tpu.matmul %100, %101, %cst_30 {dimension_numbers = #tpu.dot_dimension_numbers<[1], [0], [0], [1], [0, 0, 1, 1], [], []>} : vector<16x8xbf16>, vector<8x32xbf16>, vector<16x32xf32> -> vector<16x32xf32>
    %103 = arith.addf %78, %102 : vector<16x32xf32>
    %104 = vector.extract_strided_slice %20 {offsets = [0, 24], sizes = [16, 8], strides = [1, 1]} : vector<16x32xf32> to vector<16x8xf32>
    %105 = vector.extract_strided_slice %27 {offsets = [0, 24], sizes = [16, 8], strides = [1, 1]} : vector<16x64xf32> to vector<16x8xf32>
    %106 = vector.extract_strided_slice %27 {offsets = [0, 56], sizes = [16, 8], strides = [1, 1]} : vector<16x64xf32> to vector<16x8xf32>
    %107 = arith.truncf %104 : vector<16x8xf32> to vector<16x8xbf16>
    %108 = arith.truncf %105 : vector<16x8xf32> to vector<16x8xbf16>
    %cst_31 = arith.constant dense<0.000000e+00> : vector<16x16xf32>
    %109 = tpu.matmul %107, %108, %cst_31 {dimension_numbers = #tpu.dot_dimension_numbers<[1], [1], [0], [0], [0, 0, 1, 0], [], []>} : vector<16x8xbf16>, vector<16x8xbf16>, vector<16x16xf32> -> vector<16x16xf32>
    %cst_32 = arith.constant 0.353553385 : f32
    %110 = vector.broadcast %cst_32 : f32 to vector<16x16xf32>
    %111 = arith.mulf %109, %110 : vector<16x16xf32>
    %cst_33 = arith.constant dense<0xFF800000> : vector<16xf32>
    %112 = vector.multi_reduction <maximumf>, %111, %cst_33 [1] : vector<16x16xf32> to vector<16xf32>
    %113 = vector.shape_cast %112 : vector<16xf32> to vector<16x1xf32>
    %114 = vector.broadcast %113 : vector<16x1xf32> to vector<16x16xf32>
    %115 = arith.subf %111, %114 : vector<16x16xf32>
    %116 = math.exp %115 : vector<16x16xf32>
    %cst_34 = arith.constant dense<0.000000e+00> : vector<16xf32>
    %117 = vector.multi_reduction <add>, %116, %cst_34 [1] : vector<16x16xf32> to vector<16xf32>
    %118 = vector.shape_cast %117 : vector<16xf32> to vector<16x1xf32>
    %119 = vector.broadcast %118 : vector<16x1xf32> to vector<16x16xf32>
    %120 = arith.divf %116, %119 : vector<16x16xf32>
    %121 = arith.truncf %120 : vector<16x16xf32> to vector<16x16xbf16>
    %122 = arith.truncf %106 : vector<16x8xf32> to vector<16x8xbf16>
    %cst_35 = arith.constant dense<0.000000e+00> : vector<16x8xf32>
    %123 = tpu.matmul %121, %122, %cst_35 {dimension_numbers = #tpu.dot_dimension_numbers<[1], [0], [0], [1], [0, 0, 1, 1], [], []>} : vector<16x16xbf16>, vector<16x8xbf16>, vector<16x8xf32> -> vector<16x8xf32>
    %124 = vector.extract_strided_slice %12 {offsets = [24, 0], sizes = [8, 32], strides = [1, 1]} : vector<32x32xf32> to vector<8x32xf32>
    %125 = arith.truncf %123 : vector<16x8xf32> to vector<16x8xbf16>
    %126 = arith.truncf %124 : vector<8x32xf32> to vector<8x32xbf16>
    %cst_36 = arith.constant dense<0.000000e+00> : vector<16x32xf32>
    %127 = tpu.matmul %125, %126, %cst_36 {dimension_numbers = #tpu.dot_dimension_numbers<[1], [0], [0], [1], [0, 0, 1, 1], [], []>} : vector<16x8xbf16>, vector<8x32xbf16>, vector<16x32xf32> -> vector<16x32xf32>
    %128 = arith.addf %103, %127 : vector<16x32xf32>
    %129 = arith.addf %9, %128 : vector<16x32xf32>
    %c88 = arith.constant 88 : index
    %c0_37 = arith.constant 0 : index
    %130 = vector.load %arg4[%c88, %c0_37] : memref<736x32xf32, #tpu.memory_space<vmem>>, vector<1x32xf32>
    %c96 = arith.constant 96 : index
    %c0_38 = arith.constant 0 : index
    %131 = vector.load %arg4[%c96, %c0_38] : memref<736x32xf32, #tpu.memory_space<vmem>>, vector<1x32xf32>
    %cst_39 = arith.constant dense<0.000000e+00> : vector<16xf32>
    %132 = vector.multi_reduction <add>, %129, %cst_39 [1] : vector<16x32xf32> to vector<16xf32>
    %133 = vector.shape_cast %132 : vector<16xf32> to vector<16x1xf32>
    %cst_40 = arith.constant 3.200000e+01 : f32
    %134 = vector.broadcast %cst_40 : f32 to vector<16x1xf32>
    %135 = arith.divf %133, %134 : vector<16x1xf32>
    %136 = vector.broadcast %135 : vector<16x1xf32> to vector<16x32xf32>
    %137 = arith.subf %129, %136 : vector<16x32xf32>
    %138 = arith.mulf %137, %137 : vector<16x32xf32>
    %cst_41 = arith.constant dense<0.000000e+00> : vector<16xf32>
    %139 = vector.multi_reduction <add>, %138, %cst_41 [1] : vector<16x32xf32> to vector<16xf32>
    %140 = vector.shape_cast %139 : vector<16xf32> to vector<16x1xf32>
    %cst_42 = arith.constant 3.200000e+01 : f32
    %141 = vector.broadcast %cst_42 : f32 to vector<16x1xf32>
    %142 = arith.divf %140, %141 : vector<16x1xf32>
    %cst_43 = arith.constant 9.99999974E-6 : f32
    %143 = vector.broadcast %cst_43 : f32 to vector<16x1xf32>
    %144 = arith.addf %142, %143 : vector<16x1xf32>
    %145 = math.rsqrt %144 : vector<16x1xf32>
    %146 = vector.broadcast %145 : vector<16x1xf32> to vector<16x32xf32>
    %147 = arith.mulf %137, %146 : vector<16x32xf32>
    %148 = vector.broadcast %130 : vector<1x32xf32> to vector<16x32xf32>
    %149 = arith.mulf %147, %148 : vector<16x32xf32>
    %150 = vector.broadcast %131 : vector<1x32xf32> to vector<16x32xf32>
    %151 = arith.addf %149, %150 : vector<16x32xf32>
    %c0_44 = arith.constant 0 : index
    %c0_45 = arith.constant 0 : index
    %152 = vector.load %arg5[%c0_44, %c0_45] : memref<160x64xf32, #tpu.memory_space<vmem>>, vector<32x64xf32>
    %153 = arith.truncf %151 : vector<16x32xf32> to vector<16x32xbf16>
    %154 = arith.truncf %152 : vector<32x64xf32> to vector<32x64xbf16>
    %cst_46 = arith.constant dense<0.000000e+00> : vector<16x64xf32>
    %155 = tpu.matmul %153, %154, %cst_46 {dimension_numbers = #tpu.dot_dimension_numbers<[1], [0], [0], [1], [0, 0, 1, 1], [], []>} : vector<16x32xbf16>, vector<32x64xbf16>, vector<16x64xf32> -> vector<16x64xf32>
    %c32_47 = arith.constant 32 : index
    %c0_48 = arith.constant 0 : index
    %156 = vector.load %arg5[%c32_47, %c0_48] : memref<160x64xf32, #tpu.memory_space<vmem>>, vector<1x64xf32>
    %157 = vector.broadcast %156 : vector<1x64xf32> to vector<16x64xf32>
    %158 = arith.addf %155, %157 : vector<16x64xf32>
    %cst_49 = arith.constant 0.000000e+00 : f32
    %159 = vector.broadcast %cst_49 : f32 to vector<16x64xf32>
    %160 = arith.maximumf %158, %159 : vector<16x64xf32>
    %c104 = arith.constant 104 : index
    %c0_50 = arith.constant 0 : index
    %161 = vector.load %arg4[%c104, %c0_50] : memref<736x32xf32, #tpu.memory_space<vmem>>, vector<64x32xf32>
    %162 = arith.truncf %160 : vector<16x64xf32> to vector<16x64xbf16>
    %163 = arith.truncf %161 : vector<64x32xf32> to vector<64x32xbf16>
    %cst_51 = arith.constant dense<0.000000e+00> : vector<16x32xf32>
    %164 = tpu.matmul %162, %163, %cst_51 {dimension_numbers = #tpu.dot_dimension_numbers<[1], [0], [0], [1], [0, 0, 1, 1], [], []>} : vector<16x64xbf16>, vector<64x32xbf16>, vector<16x32xf32> -> vector<16x32xf32>
    %c168 = arith.constant 168 : index
    %c0_52 = arith.constant 0 : index
    %165 = vector.load %arg4[%c168, %c0_52] : memref<736x32xf32, #tpu.memory_space<vmem>>, vector<1x32xf32>
    %166 = vector.broadcast %165 : vector<1x32xf32> to vector<16x32xf32>
    %167 = arith.addf %164, %166 : vector<16x32xf32>
    %168 = arith.addf %151, %167 : vector<16x32xf32>
    %c176 = arith.constant 176 : index
    %c0_53 = arith.constant 0 : index
    %169 = vector.load %arg4[%c176, %c0_53] : memref<736x32xf32, #tpu.memory_space<vmem>>, vector<1x32xf32>
    %c184 = arith.constant 184 : index
    %c0_54 = arith.constant 0 : index
    %170 = vector.load %arg4[%c184, %c0_54] : memref<736x32xf32, #tpu.memory_space<vmem>>, vector<1x32xf32>
    %cst_55 = arith.constant dense<0.000000e+00> : vector<16xf32>
    %171 = vector.multi_reduction <add>, %168, %cst_55 [1] : vector<16x32xf32> to vector<16xf32>
    %172 = vector.shape_cast %171 : vector<16xf32> to vector<16x1xf32>
    %cst_56 = arith.constant 3.200000e+01 : f32
    %173 = vector.broadcast %cst_56 : f32 to vector<16x1xf32>
    %174 = arith.divf %172, %173 : vector<16x1xf32>
    %175 = vector.broadcast %174 : vector<16x1xf32> to vector<16x32xf32>
    %176 = arith.subf %168, %175 : vector<16x32xf32>
    %177 = arith.mulf %176, %176 : vector<16x32xf32>
    %cst_57 = arith.constant dense<0.000000e+00> : vector<16xf32>
    %178 = vector.multi_reduction <add>, %177, %cst_57 [1] : vector<16x32xf32> to vector<16xf32>
    %179 = vector.shape_cast %178 : vector<16xf32> to vector<16x1xf32>
    %cst_58 = arith.constant 3.200000e+01 : f32
    %180 = vector.broadcast %cst_58 : f32 to vector<16x1xf32>
    %181 = arith.divf %179, %180 : vector<16x1xf32>
    %cst_59 = arith.constant 9.99999974E-6 : f32
    %182 = vector.broadcast %cst_59 : f32 to vector<16x1xf32>
    %183 = arith.addf %181, %182 : vector<16x1xf32>
    %184 = math.rsqrt %183 : vector<16x1xf32>
    %185 = vector.broadcast %184 : vector<16x1xf32> to vector<16x32xf32>
    %186 = arith.mulf %176, %185 : vector<16x32xf32>
    %187 = vector.broadcast %169 : vector<1x32xf32> to vector<16x32xf32>
    %188 = arith.mulf %186, %187 : vector<16x32xf32>
    %189 = vector.broadcast %170 : vector<1x32xf32> to vector<16x32xf32>
    %190 = arith.addf %188, %189 : vector<16x32xf32>
    %c40 = arith.constant 40 : index
    %c0_60 = arith.constant 0 : index
    %191 = vector.load %arg6[%c40, %c0_60] : memref<240x96xf32, #tpu.memory_space<vmem>>, vector<32x96xf32>
    %c72 = arith.constant 72 : index
    %c0_61 = arith.constant 0 : index
    %192 = vector.load %arg6[%c72, %c0_61] : memref<240x96xf32, #tpu.memory_space<vmem>>, vector<1x96xf32>
    %c192 = arith.constant 192 : index
    %c0_62 = arith.constant 0 : index
    %193 = vector.load %arg4[%c192, %c0_62] : memref<736x32xf32, #tpu.memory_space<vmem>>, vector<32x32xf32>
    %c224 = arith.constant 224 : index
    %c0_63 = arith.constant 0 : index
    %194 = vector.load %arg4[%c224, %c0_63] : memref<736x32xf32, #tpu.memory_space<vmem>>, vector<1x32xf32>
    %195 = vector.extract_strided_slice %191 {offsets = [0, 0], sizes = [32, 32], strides = [1, 1]} : vector<32x96xf32> to vector<32x32xf32>
    %196 = arith.truncf %190 : vector<16x32xf32> to vector<16x32xbf16>
    %197 = arith.truncf %195 : vector<32x32xf32> to vector<32x32xbf16>
    %cst_64 = arith.constant dense<0.000000e+00> : vector<16x32xf32>
    %198 = tpu.matmul %196, %197, %cst_64 {dimension_numbers = #tpu.dot_dimension_numbers<[1], [0], [0], [1], [0, 0, 1, 1], [], []>} : vector<16x32xbf16>, vector<32x32xbf16>, vector<16x32xf32> -> vector<16x32xf32>
    %199 = vector.extract_strided_slice %192 {offsets = [0, 0], sizes = [1, 32], strides = [1, 1]} : vector<1x96xf32> to vector<1x32xf32>
    %200 = vector.broadcast %199 : vector<1x32xf32> to vector<16x32xf32>
    %201 = arith.addf %198, %200 : vector<16x32xf32>
    %202 = vector.extract_strided_slice %191 {offsets = [0, 32], sizes = [32, 64], strides = [1, 1]} : vector<32x96xf32> to vector<32x64xf32>
    %203 = arith.truncf %190 : vector<16x32xf32> to vector<16x32xbf16>
    %204 = arith.truncf %202 : vector<32x64xf32> to vector<32x64xbf16>
    %cst_65 = arith.constant dense<0.000000e+00> : vector<16x64xf32>
    %205 = tpu.matmul %203, %204, %cst_65 {dimension_numbers = #tpu.dot_dimension_numbers<[1], [0], [0], [1], [0, 0, 1, 1], [], []>} : vector<16x32xbf16>, vector<32x64xbf16>, vector<16x64xf32> -> vector<16x64xf32>
    %206 = vector.extract_strided_slice %192 {offsets = [0, 32], sizes = [1, 64], strides = [1, 1]} : vector<1x96xf32> to vector<1x64xf32>
    %207 = vector.broadcast %206 : vector<1x64xf32> to vector<16x64xf32>
    %208 = arith.addf %205, %207 : vector<16x64xf32>
    %209 = vector.extract_strided_slice %201 {offsets = [0, 0], sizes = [16, 8], strides = [1, 1]} : vector<16x32xf32> to vector<16x8xf32>
    %210 = vector.extract_strided_slice %208 {offsets = [0, 0], sizes = [16, 8], strides = [1, 1]} : vector<16x64xf32> to vector<16x8xf32>
    %211 = vector.extract_strided_slice %208 {offsets = [0, 32], sizes = [16, 8], strides = [1, 1]} : vector<16x64xf32> to vector<16x8xf32>
    %212 = arith.truncf %209 : vector<16x8xf32> to vector<16x8xbf16>
    %213 = arith.truncf %210 : vector<16x8xf32> to vector<16x8xbf16>
    %cst_66 = arith.constant dense<0.000000e+00> : vector<16x16xf32>
    %214 = tpu.matmul %212, %213, %cst_66 {dimension_numbers = #tpu.dot_dimension_numbers<[1], [1], [0], [0], [0, 0, 1, 0], [], []>} : vector<16x8xbf16>, vector<16x8xbf16>, vector<16x16xf32> -> vector<16x16xf32>
    %cst_67 = arith.constant 0.353553385 : f32
    %215 = vector.broadcast %cst_67 : f32 to vector<16x16xf32>
    %216 = arith.mulf %214, %215 : vector<16x16xf32>
    %cst_68 = arith.constant dense<0xFF800000> : vector<16xf32>
    %217 = vector.multi_reduction <maximumf>, %216, %cst_68 [1] : vector<16x16xf32> to vector<16xf32>
    %218 = vector.shape_cast %217 : vector<16xf32> to vector<16x1xf32>
    %219 = vector.broadcast %218 : vector<16x1xf32> to vector<16x16xf32>
    %220 = arith.subf %216, %219 : vector<16x16xf32>
    %221 = math.exp %220 : vector<16x16xf32>
    %cst_69 = arith.constant dense<0.000000e+00> : vector<16xf32>
    %222 = vector.multi_reduction <add>, %221, %cst_69 [1] : vector<16x16xf32> to vector<16xf32>
    %223 = vector.shape_cast %222 : vector<16xf32> to vector<16x1xf32>
    %224 = vector.broadcast %223 : vector<16x1xf32> to vector<16x16xf32>
    %225 = arith.divf %221, %224 : vector<16x16xf32>
    %226 = arith.truncf %225 : vector<16x16xf32> to vector<16x16xbf16>
    %227 = arith.truncf %211 : vector<16x8xf32> to vector<16x8xbf16>
    %cst_70 = arith.constant dense<0.000000e+00> : vector<16x8xf32>
    %228 = tpu.matmul %226, %227, %cst_70 {dimension_numbers = #tpu.dot_dimension_numbers<[1], [0], [0], [1], [0, 0, 1, 1], [], []>} : vector<16x16xbf16>, vector<16x8xbf16>, vector<16x8xf32> -> vector<16x8xf32>
    %229 = vector.extract_strided_slice %193 {offsets = [0, 0], sizes = [8, 32], strides = [1, 1]} : vector<32x32xf32> to vector<8x32xf32>
    %230 = arith.truncf %228 : vector<16x8xf32> to vector<16x8xbf16>
    %231 = arith.truncf %229 : vector<8x32xf32> to vector<8x32xbf16>
    %cst_71 = arith.constant dense<0.000000e+00> : vector<16x32xf32>
    %232 = tpu.matmul %230, %231, %cst_71 {dimension_numbers = #tpu.dot_dimension_numbers<[1], [0], [0], [1], [0, 0, 1, 1], [], []>} : vector<16x8xbf16>, vector<8x32xbf16>, vector<16x32xf32> -> vector<16x32xf32>
    %233 = vector.broadcast %194 : vector<1x32xf32> to vector<16x32xf32>
    %234 = arith.addf %233, %232 : vector<16x32xf32>
    %235 = vector.extract_strided_slice %201 {offsets = [0, 8], sizes = [16, 8], strides = [1, 1]} : vector<16x32xf32> to vector<16x8xf32>
    %236 = vector.extract_strided_slice %208 {offsets = [0, 8], sizes = [16, 8], strides = [1, 1]} : vector<16x64xf32> to vector<16x8xf32>
    %237 = vector.extract_strided_slice %208 {offsets = [0, 40], sizes = [16, 8], strides = [1, 1]} : vector<16x64xf32> to vector<16x8xf32>
    %238 = arith.truncf %235 : vector<16x8xf32> to vector<16x8xbf16>
    %239 = arith.truncf %236 : vector<16x8xf32> to vector<16x8xbf16>
    %cst_72 = arith.constant dense<0.000000e+00> : vector<16x16xf32>
    %240 = tpu.matmul %238, %239, %cst_72 {dimension_numbers = #tpu.dot_dimension_numbers<[1], [1], [0], [0], [0, 0, 1, 0], [], []>} : vector<16x8xbf16>, vector<16x8xbf16>, vector<16x16xf32> -> vector<16x16xf32>
    %cst_73 = arith.constant 0.353553385 : f32
    %241 = vector.broadcast %cst_73 : f32 to vector<16x16xf32>
    %242 = arith.mulf %240, %241 : vector<16x16xf32>
    %cst_74 = arith.constant dense<0xFF800000> : vector<16xf32>
    %243 = vector.multi_reduction <maximumf>, %242, %cst_74 [1] : vector<16x16xf32> to vector<16xf32>
    %244 = vector.shape_cast %243 : vector<16xf32> to vector<16x1xf32>
    %245 = vector.broadcast %244 : vector<16x1xf32> to vector<16x16xf32>
    %246 = arith.subf %242, %245 : vector<16x16xf32>
    %247 = math.exp %246 : vector<16x16xf32>
    %cst_75 = arith.constant dense<0.000000e+00> : vector<16xf32>
    %248 = vector.multi_reduction <add>, %247, %cst_75 [1] : vector<16x16xf32> to vector<16xf32>
    %249 = vector.shape_cast %248 : vector<16xf32> to vector<16x1xf32>
    %250 = vector.broadcast %249 : vector<16x1xf32> to vector<16x16xf32>
    %251 = arith.divf %247, %250 : vector<16x16xf32>
    %252 = arith.truncf %251 : vector<16x16xf32> to vector<16x16xbf16>
    %253 = arith.truncf %237 : vector<16x8xf32> to vector<16x8xbf16>
    %cst_76 = arith.constant dense<0.000000e+00> : vector<16x8xf32>
    %254 = tpu.matmul %252, %253, %cst_76 {dimension_numbers = #tpu.dot_dimension_numbers<[1], [0], [0], [1], [0, 0, 1, 1], [], []>} : vector<16x16xbf16>, vector<16x8xbf16>, vector<16x8xf32> -> vector<16x8xf32>
    %255 = vector.extract_strided_slice %193 {offsets = [8, 0], sizes = [8, 32], strides = [1, 1]} : vector<32x32xf32> to vector<8x32xf32>
    %256 = arith.truncf %254 : vector<16x8xf32> to vector<16x8xbf16>
    %257 = arith.truncf %255 : vector<8x32xf32> to vector<8x32xbf16>
    %cst_77 = arith.constant dense<0.000000e+00> : vector<16x32xf32>
    %258 = tpu.matmul %256, %257, %cst_77 {dimension_numbers = #tpu.dot_dimension_numbers<[1], [0], [0], [1], [0, 0, 1, 1], [], []>} : vector<16x8xbf16>, vector<8x32xbf16>, vector<16x32xf32> -> vector<16x32xf32>
    %259 = arith.addf %234, %258 : vector<16x32xf32>
    %260 = vector.extract_strided_slice %201 {offsets = [0, 16], sizes = [16, 8], strides = [1, 1]} : vector<16x32xf32> to vector<16x8xf32>
    %261 = vector.extract_strided_slice %208 {offsets = [0, 16], sizes = [16, 8], strides = [1, 1]} : vector<16x64xf32> to vector<16x8xf32>
    %262 = vector.extract_strided_slice %208 {offsets = [0, 48], sizes = [16, 8], strides = [1, 1]} : vector<16x64xf32> to vector<16x8xf32>
    %263 = arith.truncf %260 : vector<16x8xf32> to vector<16x8xbf16>
    %264 = arith.truncf %261 : vector<16x8xf32> to vector<16x8xbf16>
    %cst_78 = arith.constant dense<0.000000e+00> : vector<16x16xf32>
    %265 = tpu.matmul %263, %264, %cst_78 {dimension_numbers = #tpu.dot_dimension_numbers<[1], [1], [0], [0], [0, 0, 1, 0], [], []>} : vector<16x8xbf16>, vector<16x8xbf16>, vector<16x16xf32> -> vector<16x16xf32>
    %cst_79 = arith.constant 0.353553385 : f32
    %266 = vector.broadcast %cst_79 : f32 to vector<16x16xf32>
    %267 = arith.mulf %265, %266 : vector<16x16xf32>
    %cst_80 = arith.constant dense<0xFF800000> : vector<16xf32>
    %268 = vector.multi_reduction <maximumf>, %267, %cst_80 [1] : vector<16x16xf32> to vector<16xf32>
    %269 = vector.shape_cast %268 : vector<16xf32> to vector<16x1xf32>
    %270 = vector.broadcast %269 : vector<16x1xf32> to vector<16x16xf32>
    %271 = arith.subf %267, %270 : vector<16x16xf32>
    %272 = math.exp %271 : vector<16x16xf32>
    %cst_81 = arith.constant dense<0.000000e+00> : vector<16xf32>
    %273 = vector.multi_reduction <add>, %272, %cst_81 [1] : vector<16x16xf32> to vector<16xf32>
    %274 = vector.shape_cast %273 : vector<16xf32> to vector<16x1xf32>
    %275 = vector.broadcast %274 : vector<16x1xf32> to vector<16x16xf32>
    %276 = arith.divf %272, %275 : vector<16x16xf32>
    %277 = arith.truncf %276 : vector<16x16xf32> to vector<16x16xbf16>
    %278 = arith.truncf %262 : vector<16x8xf32> to vector<16x8xbf16>
    %cst_82 = arith.constant dense<0.000000e+00> : vector<16x8xf32>
    %279 = tpu.matmul %277, %278, %cst_82 {dimension_numbers = #tpu.dot_dimension_numbers<[1], [0], [0], [1], [0, 0, 1, 1], [], []>} : vector<16x16xbf16>, vector<16x8xbf16>, vector<16x8xf32> -> vector<16x8xf32>
    %280 = vector.extract_strided_slice %193 {offsets = [16, 0], sizes = [8, 32], strides = [1, 1]} : vector<32x32xf32> to vector<8x32xf32>
    %281 = arith.truncf %279 : vector<16x8xf32> to vector<16x8xbf16>
    %282 = arith.truncf %280 : vector<8x32xf32> to vector<8x32xbf16>
    %cst_83 = arith.constant dense<0.000000e+00> : vector<16x32xf32>
    %283 = tpu.matmul %281, %282, %cst_83 {dimension_numbers = #tpu.dot_dimension_numbers<[1], [0], [0], [1], [0, 0, 1, 1], [], []>} : vector<16x8xbf16>, vector<8x32xbf16>, vector<16x32xf32> -> vector<16x32xf32>
    %284 = arith.addf %259, %283 : vector<16x32xf32>
    %285 = vector.extract_strided_slice %201 {offsets = [0, 24], sizes = [16, 8], strides = [1, 1]} : vector<16x32xf32> to vector<16x8xf32>
    %286 = vector.extract_strided_slice %208 {offsets = [0, 24], sizes = [16, 8], strides = [1, 1]} : vector<16x64xf32> to vector<16x8xf32>
    %287 = vector.extract_strided_slice %208 {offsets = [0, 56], sizes = [16, 8], strides = [1, 1]} : vector<16x64xf32> to vector<16x8xf32>
    %288 = arith.truncf %285 : vector<16x8xf32> to vector<16x8xbf16>
    %289 = arith.truncf %286 : vector<16x8xf32> to vector<16x8xbf16>
    %cst_84 = arith.constant dense<0.000000e+00> : vector<16x16xf32>
    %290 = tpu.matmul %288, %289, %cst_84 {dimension_numbers = #tpu.dot_dimension_numbers<[1], [1], [0], [0], [0, 0, 1, 0], [], []>} : vector<16x8xbf16>, vector<16x8xbf16>, vector<16x16xf32> -> vector<16x16xf32>
    %cst_85 = arith.constant 0.353553385 : f32
    %291 = vector.broadcast %cst_85 : f32 to vector<16x16xf32>
    %292 = arith.mulf %290, %291 : vector<16x16xf32>
    %cst_86 = arith.constant dense<0xFF800000> : vector<16xf32>
    %293 = vector.multi_reduction <maximumf>, %292, %cst_86 [1] : vector<16x16xf32> to vector<16xf32>
    %294 = vector.shape_cast %293 : vector<16xf32> to vector<16x1xf32>
    %295 = vector.broadcast %294 : vector<16x1xf32> to vector<16x16xf32>
    %296 = arith.subf %292, %295 : vector<16x16xf32>
    %297 = math.exp %296 : vector<16x16xf32>
    %cst_87 = arith.constant dense<0.000000e+00> : vector<16xf32>
    %298 = vector.multi_reduction <add>, %297, %cst_87 [1] : vector<16x16xf32> to vector<16xf32>
    %299 = vector.shape_cast %298 : vector<16xf32> to vector<16x1xf32>
    %300 = vector.broadcast %299 : vector<16x1xf32> to vector<16x16xf32>
    %301 = arith.divf %297, %300 : vector<16x16xf32>
    %302 = arith.truncf %301 : vector<16x16xf32> to vector<16x16xbf16>
    %303 = arith.truncf %287 : vector<16x8xf32> to vector<16x8xbf16>
    %cst_88 = arith.constant dense<0.000000e+00> : vector<16x8xf32>
    %304 = tpu.matmul %302, %303, %cst_88 {dimension_numbers = #tpu.dot_dimension_numbers<[1], [0], [0], [1], [0, 0, 1, 1], [], []>} : vector<16x16xbf16>, vector<16x8xbf16>, vector<16x8xf32> -> vector<16x8xf32>
    %305 = vector.extract_strided_slice %193 {offsets = [24, 0], sizes = [8, 32], strides = [1, 1]} : vector<32x32xf32> to vector<8x32xf32>
    %306 = arith.truncf %304 : vector<16x8xf32> to vector<16x8xbf16>
    %307 = arith.truncf %305 : vector<8x32xf32> to vector<8x32xbf16>
    %cst_89 = arith.constant dense<0.000000e+00> : vector<16x32xf32>
    %308 = tpu.matmul %306, %307, %cst_89 {dimension_numbers = #tpu.dot_dimension_numbers<[1], [0], [0], [1], [0, 0, 1, 1], [], []>} : vector<16x8xbf16>, vector<8x32xbf16>, vector<16x32xf32> -> vector<16x32xf32>
    %309 = arith.addf %284, %308 : vector<16x32xf32>
    %310 = arith.addf %190, %309 : vector<16x32xf32>
    %c232 = arith.constant 232 : index
    %c0_90 = arith.constant 0 : index
    %311 = vector.load %arg4[%c232, %c0_90] : memref<736x32xf32, #tpu.memory_space<vmem>>, vector<1x32xf32>
    %c240 = arith.constant 240 : index
    %c0_91 = arith.constant 0 : index
    %312 = vector.load %arg4[%c240, %c0_91] : memref<736x32xf32, #tpu.memory_space<vmem>>, vector<1x32xf32>
    %cst_92 = arith.constant dense<0.000000e+00> : vector<16xf32>
    %313 = vector.multi_reduction <add>, %310, %cst_92 [1] : vector<16x32xf32> to vector<16xf32>
    %314 = vector.shape_cast %313 : vector<16xf32> to vector<16x1xf32>
    %cst_93 = arith.constant 3.200000e+01 : f32
    %315 = vector.broadcast %cst_93 : f32 to vector<16x1xf32>
    %316 = arith.divf %314, %315 : vector<16x1xf32>
    %317 = vector.broadcast %316 : vector<16x1xf32> to vector<16x32xf32>
    %318 = arith.subf %310, %317 : vector<16x32xf32>
    %319 = arith.mulf %318, %318 : vector<16x32xf32>
    %cst_94 = arith.constant dense<0.000000e+00> : vector<16xf32>
    %320 = vector.multi_reduction <add>, %319, %cst_94 [1] : vector<16x32xf32> to vector<16xf32>
    %321 = vector.shape_cast %320 : vector<16xf32> to vector<16x1xf32>
    %cst_95 = arith.constant 3.200000e+01 : f32
    %322 = vector.broadcast %cst_95 : f32 to vector<16x1xf32>
    %323 = arith.divf %321, %322 : vector<16x1xf32>
    %cst_96 = arith.constant 9.99999974E-6 : f32
    %324 = vector.broadcast %cst_96 : f32 to vector<16x1xf32>
    %325 = arith.addf %323, %324 : vector<16x1xf32>
    %326 = math.rsqrt %325 : vector<16x1xf32>
    %327 = vector.broadcast %326 : vector<16x1xf32> to vector<16x32xf32>
    %328 = arith.mulf %318, %327 : vector<16x32xf32>
    %329 = vector.broadcast %311 : vector<1x32xf32> to vector<16x32xf32>
    %330 = arith.mulf %328, %329 : vector<16x32xf32>
    %331 = vector.broadcast %312 : vector<1x32xf32> to vector<16x32xf32>
    %332 = arith.addf %330, %331 : vector<16x32xf32>
    %c40_97 = arith.constant 40 : index
    %c0_98 = arith.constant 0 : index
    %333 = vector.load %arg5[%c40_97, %c0_98] : memref<160x64xf32, #tpu.memory_space<vmem>>, vector<32x64xf32>
    %334 = arith.truncf %332 : vector<16x32xf32> to vector<16x32xbf16>
    %335 = arith.truncf %333 : vector<32x64xf32> to vector<32x64xbf16>
    %cst_99 = arith.constant dense<0.000000e+00> : vector<16x64xf32>
    %336 = tpu.matmul %334, %335, %cst_99 {dimension_numbers = #tpu.dot_dimension_numbers<[1], [0], [0], [1], [0, 0, 1, 1], [], []>} : vector<16x32xbf16>, vector<32x64xbf16>, vector<16x64xf32> -> vector<16x64xf32>
    %c72_100 = arith.constant 72 : index
    %c0_101 = arith.constant 0 : index
    %337 = vector.load %arg5[%c72_100, %c0_101] : memref<160x64xf32, #tpu.memory_space<vmem>>, vector<1x64xf32>
    %338 = vector.broadcast %337 : vector<1x64xf32> to vector<16x64xf32>
    %339 = arith.addf %336, %338 : vector<16x64xf32>
    %cst_102 = arith.constant 0.000000e+00 : f32
    %340 = vector.broadcast %cst_102 : f32 to vector<16x64xf32>
    %341 = arith.maximumf %339, %340 : vector<16x64xf32>
    %c248 = arith.constant 248 : index
    %c0_103 = arith.constant 0 : index
    %342 = vector.load %arg4[%c248, %c0_103] : memref<736x32xf32, #tpu.memory_space<vmem>>, vector<64x32xf32>
    %343 = arith.truncf %341 : vector<16x64xf32> to vector<16x64xbf16>
    %344 = arith.truncf %342 : vector<64x32xf32> to vector<64x32xbf16>
    %cst_104 = arith.constant dense<0.000000e+00> : vector<16x32xf32>
    %345 = tpu.matmul %343, %344, %cst_104 {dimension_numbers = #tpu.dot_dimension_numbers<[1], [0], [0], [1], [0, 0, 1, 1], [], []>} : vector<16x64xbf16>, vector<64x32xbf16>, vector<16x32xf32> -> vector<16x32xf32>
    %c312 = arith.constant 312 : index
    %c0_105 = arith.constant 0 : index
    %346 = vector.load %arg4[%c312, %c0_105] : memref<736x32xf32, #tpu.memory_space<vmem>>, vector<1x32xf32>
    %347 = vector.broadcast %346 : vector<1x32xf32> to vector<16x32xf32>
    %348 = arith.addf %345, %347 : vector<16x32xf32>
    %349 = arith.addf %332, %348 : vector<16x32xf32>
    %c320 = arith.constant 320 : index
    %c0_106 = arith.constant 0 : index
    %350 = vector.load %arg4[%c320, %c0_106] : memref<736x32xf32, #tpu.memory_space<vmem>>, vector<1x32xf32>
    %c328 = arith.constant 328 : index
    %c0_107 = arith.constant 0 : index
    %351 = vector.load %arg4[%c328, %c0_107] : memref<736x32xf32, #tpu.memory_space<vmem>>, vector<1x32xf32>
    %cst_108 = arith.constant dense<0.000000e+00> : vector<16xf32>
    %352 = vector.multi_reduction <add>, %349, %cst_108 [1] : vector<16x32xf32> to vector<16xf32>
    %353 = vector.shape_cast %352 : vector<16xf32> to vector<16x1xf32>
    %cst_109 = arith.constant 3.200000e+01 : f32
    %354 = vector.broadcast %cst_109 : f32 to vector<16x1xf32>
    %355 = arith.divf %353, %354 : vector<16x1xf32>
    %356 = vector.broadcast %355 : vector<16x1xf32> to vector<16x32xf32>
    %357 = arith.subf %349, %356 : vector<16x32xf32>
    %358 = arith.mulf %357, %357 : vector<16x32xf32>
    %cst_110 = arith.constant dense<0.000000e+00> : vector<16xf32>
    %359 = vector.multi_reduction <add>, %358, %cst_110 [1] : vector<16x32xf32> to vector<16xf32>
    %360 = vector.shape_cast %359 : vector<16xf32> to vector<16x1xf32>
    %cst_111 = arith.constant 3.200000e+01 : f32
    %361 = vector.broadcast %cst_111 : f32 to vector<16x1xf32>
    %362 = arith.divf %360, %361 : vector<16x1xf32>
    %cst_112 = arith.constant 9.99999974E-6 : f32
    %363 = vector.broadcast %cst_112 : f32 to vector<16x1xf32>
    %364 = arith.addf %362, %363 : vector<16x1xf32>
    %365 = math.rsqrt %364 : vector<16x1xf32>
    %366 = vector.broadcast %365 : vector<16x1xf32> to vector<16x32xf32>
    %367 = arith.mulf %357, %366 : vector<16x32xf32>
    %368 = vector.broadcast %350 : vector<1x32xf32> to vector<16x32xf32>
    %369 = arith.mulf %367, %368 : vector<16x32xf32>
    %370 = vector.broadcast %351 : vector<1x32xf32> to vector<16x32xf32>
    %371 = arith.addf %369, %370 : vector<16x32xf32>
    %c0_113 = arith.constant 0 : index
    %c0_114 = arith.constant 0 : index
    %372 = vector.load %arg1[%c0_113, %c0_114] : memref<8x4xf32, #tpu.memory_space<vmem>>, vector<8x4xf32>
    %c32_115 = arith.constant 32 : index
    %c0_116 = arith.constant 0 : index
    %373 = vector.load %arg4[%c32_115, %c0_116] : memref<736x32xf32, #tpu.memory_space<vmem>>, vector<4x32xf32>
    %374 = arith.truncf %372 : vector<8x4xf32> to vector<8x4xbf16>
    %375 = arith.truncf %373 : vector<4x32xf32> to vector<4x32xbf16>
    %cst_117 = arith.constant dense<0.000000e+00> : vector<8x32xf32>
    %376 = tpu.matmul %374, %375, %cst_117 {dimension_numbers = #tpu.dot_dimension_numbers<[1], [0], [0], [1], [0, 0, 1, 1], [], []>} : vector<8x4xbf16>, vector<4x32xbf16>, vector<8x32xf32> -> vector<8x32xf32>
    %c40_118 = arith.constant 40 : index
    %c0_119 = arith.constant 0 : index
    %377 = vector.load %arg4[%c40_118, %c0_119] : memref<736x32xf32, #tpu.memory_space<vmem>>, vector<1x32xf32>
    %378 = vector.broadcast %377 : vector<1x32xf32> to vector<8x32xf32>
    %379 = arith.addf %376, %378 : vector<8x32xf32>
    %c0_120 = arith.constant 0 : index
    %c0_121 = arith.constant 0 : index
    %380 = vector.load %arg3[%c0_120, %c0_121] : memref<8x32xf32, #tpu.memory_space<vmem>>, vector<8x32xf32>
    %381 = arith.addf %379, %380 : vector<8x32xf32>
    %c80_122 = arith.constant 80 : index
    %c0_123 = arith.constant 0 : index
    %382 = vector.load %arg6[%c80_122, %c0_123] : memref<240x96xf32, #tpu.memory_space<vmem>>, vector<32x96xf32>
    %c112 = arith.constant 112 : index
    %c0_124 = arith.constant 0 : index
    %383 = vector.load %arg6[%c112, %c0_124] : memref<240x96xf32, #tpu.memory_space<vmem>>, vector<1x96xf32>
    %c336 = arith.constant 336 : index
    %c0_125 = arith.constant 0 : index
    %384 = vector.load %arg4[%c336, %c0_125] : memref<736x32xf32, #tpu.memory_space<vmem>>, vector<32x32xf32>
    %c368 = arith.constant 368 : index
    %c0_126 = arith.constant 0 : index
    %385 = vector.load %arg4[%c368, %c0_126] : memref<736x32xf32, #tpu.memory_space<vmem>>, vector<1x32xf32>
    %386 = vector.extract_strided_slice %382 {offsets = [0, 0], sizes = [32, 32], strides = [1, 1]} : vector<32x96xf32> to vector<32x32xf32>
    %387 = arith.truncf %381 : vector<8x32xf32> to vector<8x32xbf16>
    %388 = arith.truncf %386 : vector<32x32xf32> to vector<32x32xbf16>
    %cst_127 = arith.constant dense<0.000000e+00> : vector<8x32xf32>
    %389 = tpu.matmul %387, %388, %cst_127 {dimension_numbers = #tpu.dot_dimension_numbers<[1], [0], [0], [1], [0, 0, 1, 1], [], []>} : vector<8x32xbf16>, vector<32x32xbf16>, vector<8x32xf32> -> vector<8x32xf32>
    %390 = vector.extract_strided_slice %383 {offsets = [0, 0], sizes = [1, 32], strides = [1, 1]} : vector<1x96xf32> to vector<1x32xf32>
    %391 = vector.broadcast %390 : vector<1x32xf32> to vector<8x32xf32>
    %392 = arith.addf %389, %391 : vector<8x32xf32>
    %393 = vector.extract_strided_slice %382 {offsets = [0, 32], sizes = [32, 64], strides = [1, 1]} : vector<32x96xf32> to vector<32x64xf32>
    %394 = arith.truncf %381 : vector<8x32xf32> to vector<8x32xbf16>
    %395 = arith.truncf %393 : vector<32x64xf32> to vector<32x64xbf16>
    %cst_128 = arith.constant dense<0.000000e+00> : vector<8x64xf32>
    %396 = tpu.matmul %394, %395, %cst_128 {dimension_numbers = #tpu.dot_dimension_numbers<[1], [0], [0], [1], [0, 0, 1, 1], [], []>} : vector<8x32xbf16>, vector<32x64xbf16>, vector<8x64xf32> -> vector<8x64xf32>
    %397 = vector.extract_strided_slice %383 {offsets = [0, 32], sizes = [1, 64], strides = [1, 1]} : vector<1x96xf32> to vector<1x64xf32>
    %398 = vector.broadcast %397 : vector<1x64xf32> to vector<8x64xf32>
    %399 = arith.addf %396, %398 : vector<8x64xf32>
    %400 = vector.extract_strided_slice %392 {offsets = [0, 0], sizes = [8, 8], strides = [1, 1]} : vector<8x32xf32> to vector<8x8xf32>
    %401 = vector.extract_strided_slice %399 {offsets = [0, 0], sizes = [8, 8], strides = [1, 1]} : vector<8x64xf32> to vector<8x8xf32>
    %402 = vector.extract_strided_slice %399 {offsets = [0, 32], sizes = [8, 8], strides = [1, 1]} : vector<8x64xf32> to vector<8x8xf32>
    %403 = arith.truncf %400 : vector<8x8xf32> to vector<8x8xbf16>
    %404 = arith.truncf %401 : vector<8x8xf32> to vector<8x8xbf16>
    %cst_129 = arith.constant dense<0.000000e+00> : vector<8x8xf32>
    %405 = tpu.matmul %403, %404, %cst_129 {dimension_numbers = #tpu.dot_dimension_numbers<[1], [1], [0], [0], [0, 0, 1, 0], [], []>} : vector<8x8xbf16>, vector<8x8xbf16>, vector<8x8xf32> -> vector<8x8xf32>
    %cst_130 = arith.constant 0.353553385 : f32
    %406 = vector.broadcast %cst_130 : f32 to vector<8x8xf32>
    %407 = arith.mulf %405, %406 : vector<8x8xf32>
    %cst_131 = arith.constant dense<0xFF800000> : vector<8xf32>
    %408 = vector.multi_reduction <maximumf>, %407, %cst_131 [1] : vector<8x8xf32> to vector<8xf32>
    %409 = vector.shape_cast %408 : vector<8xf32> to vector<8x1xf32>
    %410 = vector.broadcast %409 : vector<8x1xf32> to vector<8x8xf32>
    %411 = arith.subf %407, %410 : vector<8x8xf32>
    %412 = math.exp %411 : vector<8x8xf32>
    %cst_132 = arith.constant dense<0.000000e+00> : vector<8xf32>
    %413 = vector.multi_reduction <add>, %412, %cst_132 [1] : vector<8x8xf32> to vector<8xf32>
    %414 = vector.shape_cast %413 : vector<8xf32> to vector<8x1xf32>
    %415 = vector.broadcast %414 : vector<8x1xf32> to vector<8x8xf32>
    %416 = arith.divf %412, %415 : vector<8x8xf32>
    %417 = arith.truncf %416 : vector<8x8xf32> to vector<8x8xbf16>
    %418 = arith.truncf %402 : vector<8x8xf32> to vector<8x8xbf16>
    %cst_133 = arith.constant dense<0.000000e+00> : vector<8x8xf32>
    %419 = tpu.matmul %417, %418, %cst_133 {dimension_numbers = #tpu.dot_dimension_numbers<[1], [0], [0], [1], [0, 0, 1, 1], [], []>} : vector<8x8xbf16>, vector<8x8xbf16>, vector<8x8xf32> -> vector<8x8xf32>
    %420 = vector.extract_strided_slice %384 {offsets = [0, 0], sizes = [8, 32], strides = [1, 1]} : vector<32x32xf32> to vector<8x32xf32>
    %421 = arith.truncf %419 : vector<8x8xf32> to vector<8x8xbf16>
    %422 = arith.truncf %420 : vector<8x32xf32> to vector<8x32xbf16>
    %cst_134 = arith.constant dense<0.000000e+00> : vector<8x32xf32>
    %423 = tpu.matmul %421, %422, %cst_134 {dimension_numbers = #tpu.dot_dimension_numbers<[1], [0], [0], [1], [0, 0, 1, 1], [], []>} : vector<8x8xbf16>, vector<8x32xbf16>, vector<8x32xf32> -> vector<8x32xf32>
    %424 = vector.broadcast %385 : vector<1x32xf32> to vector<8x32xf32>
    %425 = arith.addf %424, %423 : vector<8x32xf32>
    %426 = vector.extract_strided_slice %392 {offsets = [0, 8], sizes = [8, 8], strides = [1, 1]} : vector<8x32xf32> to vector<8x8xf32>
    %427 = vector.extract_strided_slice %399 {offsets = [0, 8], sizes = [8, 8], strides = [1, 1]} : vector<8x64xf32> to vector<8x8xf32>
    %428 = vector.extract_strided_slice %399 {offsets = [0, 40], sizes = [8, 8], strides = [1, 1]} : vector<8x64xf32> to vector<8x8xf32>
    %429 = arith.truncf %426 : vector<8x8xf32> to vector<8x8xbf16>
    %430 = arith.truncf %427 : vector<8x8xf32> to vector<8x8xbf16>
    %cst_135 = arith.constant dense<0.000000e+00> : vector<8x8xf32>
    %431 = tpu.matmul %429, %430, %cst_135 {dimension_numbers = #tpu.dot_dimension_numbers<[1], [1], [0], [0], [0, 0, 1, 0], [], []>} : vector<8x8xbf16>, vector<8x8xbf16>, vector<8x8xf32> -> vector<8x8xf32>
    %cst_136 = arith.constant 0.353553385 : f32
    %432 = vector.broadcast %cst_136 : f32 to vector<8x8xf32>
    %433 = arith.mulf %431, %432 : vector<8x8xf32>
    %cst_137 = arith.constant dense<0xFF800000> : vector<8xf32>
    %434 = vector.multi_reduction <maximumf>, %433, %cst_137 [1] : vector<8x8xf32> to vector<8xf32>
    %435 = vector.shape_cast %434 : vector<8xf32> to vector<8x1xf32>
    %436 = vector.broadcast %435 : vector<8x1xf32> to vector<8x8xf32>
    %437 = arith.subf %433, %436 : vector<8x8xf32>
    %438 = math.exp %437 : vector<8x8xf32>
    %cst_138 = arith.constant dense<0.000000e+00> : vector<8xf32>
    %439 = vector.multi_reduction <add>, %438, %cst_138 [1] : vector<8x8xf32> to vector<8xf32>
    %440 = vector.shape_cast %439 : vector<8xf32> to vector<8x1xf32>
    %441 = vector.broadcast %440 : vector<8x1xf32> to vector<8x8xf32>
    %442 = arith.divf %438, %441 : vector<8x8xf32>
    %443 = arith.truncf %442 : vector<8x8xf32> to vector<8x8xbf16>
    %444 = arith.truncf %428 : vector<8x8xf32> to vector<8x8xbf16>
    %cst_139 = arith.constant dense<0.000000e+00> : vector<8x8xf32>
    %445 = tpu.matmul %443, %444, %cst_139 {dimension_numbers = #tpu.dot_dimension_numbers<[1], [0], [0], [1], [0, 0, 1, 1], [], []>} : vector<8x8xbf16>, vector<8x8xbf16>, vector<8x8xf32> -> vector<8x8xf32>
    %446 = vector.extract_strided_slice %384 {offsets = [8, 0], sizes = [8, 32], strides = [1, 1]} : vector<32x32xf32> to vector<8x32xf32>
    %447 = arith.truncf %445 : vector<8x8xf32> to vector<8x8xbf16>
    %448 = arith.truncf %446 : vector<8x32xf32> to vector<8x32xbf16>
    %cst_140 = arith.constant dense<0.000000e+00> : vector<8x32xf32>
    %449 = tpu.matmul %447, %448, %cst_140 {dimension_numbers = #tpu.dot_dimension_numbers<[1], [0], [0], [1], [0, 0, 1, 1], [], []>} : vector<8x8xbf16>, vector<8x32xbf16>, vector<8x32xf32> -> vector<8x32xf32>
    %450 = arith.addf %425, %449 : vector<8x32xf32>
    %451 = vector.extract_strided_slice %392 {offsets = [0, 16], sizes = [8, 8], strides = [1, 1]} : vector<8x32xf32> to vector<8x8xf32>
    %452 = vector.extract_strided_slice %399 {offsets = [0, 16], sizes = [8, 8], strides = [1, 1]} : vector<8x64xf32> to vector<8x8xf32>
    %453 = vector.extract_strided_slice %399 {offsets = [0, 48], sizes = [8, 8], strides = [1, 1]} : vector<8x64xf32> to vector<8x8xf32>
    %454 = arith.truncf %451 : vector<8x8xf32> to vector<8x8xbf16>
    %455 = arith.truncf %452 : vector<8x8xf32> to vector<8x8xbf16>
    %cst_141 = arith.constant dense<0.000000e+00> : vector<8x8xf32>
    %456 = tpu.matmul %454, %455, %cst_141 {dimension_numbers = #tpu.dot_dimension_numbers<[1], [1], [0], [0], [0, 0, 1, 0], [], []>} : vector<8x8xbf16>, vector<8x8xbf16>, vector<8x8xf32> -> vector<8x8xf32>
    %cst_142 = arith.constant 0.353553385 : f32
    %457 = vector.broadcast %cst_142 : f32 to vector<8x8xf32>
    %458 = arith.mulf %456, %457 : vector<8x8xf32>
    %cst_143 = arith.constant dense<0xFF800000> : vector<8xf32>
    %459 = vector.multi_reduction <maximumf>, %458, %cst_143 [1] : vector<8x8xf32> to vector<8xf32>
    %460 = vector.shape_cast %459 : vector<8xf32> to vector<8x1xf32>
    %461 = vector.broadcast %460 : vector<8x1xf32> to vector<8x8xf32>
    %462 = arith.subf %458, %461 : vector<8x8xf32>
    %463 = math.exp %462 : vector<8x8xf32>
    %cst_144 = arith.constant dense<0.000000e+00> : vector<8xf32>
    %464 = vector.multi_reduction <add>, %463, %cst_144 [1] : vector<8x8xf32> to vector<8xf32>
    %465 = vector.shape_cast %464 : vector<8xf32> to vector<8x1xf32>
    %466 = vector.broadcast %465 : vector<8x1xf32> to vector<8x8xf32>
    %467 = arith.divf %463, %466 : vector<8x8xf32>
    %468 = arith.truncf %467 : vector<8x8xf32> to vector<8x8xbf16>
    %469 = arith.truncf %453 : vector<8x8xf32> to vector<8x8xbf16>
    %cst_145 = arith.constant dense<0.000000e+00> : vector<8x8xf32>
    %470 = tpu.matmul %468, %469, %cst_145 {dimension_numbers = #tpu.dot_dimension_numbers<[1], [0], [0], [1], [0, 0, 1, 1], [], []>} : vector<8x8xbf16>, vector<8x8xbf16>, vector<8x8xf32> -> vector<8x8xf32>
    %471 = vector.extract_strided_slice %384 {offsets = [16, 0], sizes = [8, 32], strides = [1, 1]} : vector<32x32xf32> to vector<8x32xf32>
    %472 = arith.truncf %470 : vector<8x8xf32> to vector<8x8xbf16>
    %473 = arith.truncf %471 : vector<8x32xf32> to vector<8x32xbf16>
    %cst_146 = arith.constant dense<0.000000e+00> : vector<8x32xf32>
    %474 = tpu.matmul %472, %473, %cst_146 {dimension_numbers = #tpu.dot_dimension_numbers<[1], [0], [0], [1], [0, 0, 1, 1], [], []>} : vector<8x8xbf16>, vector<8x32xbf16>, vector<8x32xf32> -> vector<8x32xf32>
    %475 = arith.addf %450, %474 : vector<8x32xf32>
    %476 = vector.extract_strided_slice %392 {offsets = [0, 24], sizes = [8, 8], strides = [1, 1]} : vector<8x32xf32> to vector<8x8xf32>
    %477 = vector.extract_strided_slice %399 {offsets = [0, 24], sizes = [8, 8], strides = [1, 1]} : vector<8x64xf32> to vector<8x8xf32>
    %478 = vector.extract_strided_slice %399 {offsets = [0, 56], sizes = [8, 8], strides = [1, 1]} : vector<8x64xf32> to vector<8x8xf32>
    %479 = arith.truncf %476 : vector<8x8xf32> to vector<8x8xbf16>
    %480 = arith.truncf %477 : vector<8x8xf32> to vector<8x8xbf16>
    %cst_147 = arith.constant dense<0.000000e+00> : vector<8x8xf32>
    %481 = tpu.matmul %479, %480, %cst_147 {dimension_numbers = #tpu.dot_dimension_numbers<[1], [1], [0], [0], [0, 0, 1, 0], [], []>} : vector<8x8xbf16>, vector<8x8xbf16>, vector<8x8xf32> -> vector<8x8xf32>
    %cst_148 = arith.constant 0.353553385 : f32
    %482 = vector.broadcast %cst_148 : f32 to vector<8x8xf32>
    %483 = arith.mulf %481, %482 : vector<8x8xf32>
    %cst_149 = arith.constant dense<0xFF800000> : vector<8xf32>
    %484 = vector.multi_reduction <maximumf>, %483, %cst_149 [1] : vector<8x8xf32> to vector<8xf32>
    %485 = vector.shape_cast %484 : vector<8xf32> to vector<8x1xf32>
    %486 = vector.broadcast %485 : vector<8x1xf32> to vector<8x8xf32>
    %487 = arith.subf %483, %486 : vector<8x8xf32>
    %488 = math.exp %487 : vector<8x8xf32>
    %cst_150 = arith.constant dense<0.000000e+00> : vector<8xf32>
    %489 = vector.multi_reduction <add>, %488, %cst_150 [1] : vector<8x8xf32> to vector<8xf32>
    %490 = vector.shape_cast %489 : vector<8xf32> to vector<8x1xf32>
    %491 = vector.broadcast %490 : vector<8x1xf32> to vector<8x8xf32>
    %492 = arith.divf %488, %491 : vector<8x8xf32>
    %493 = arith.truncf %492 : vector<8x8xf32> to vector<8x8xbf16>
    %494 = arith.truncf %478 : vector<8x8xf32> to vector<8x8xbf16>
    %cst_151 = arith.constant dense<0.000000e+00> : vector<8x8xf32>
    %495 = tpu.matmul %493, %494, %cst_151 {dimension_numbers = #tpu.dot_dimension_numbers<[1], [0], [0], [1], [0, 0, 1, 1], [], []>} : vector<8x8xbf16>, vector<8x8xbf16>, vector<8x8xf32> -> vector<8x8xf32>
    %496 = vector.extract_strided_slice %384 {offsets = [24, 0], sizes = [8, 32], strides = [1, 1]} : vector<32x32xf32> to vector<8x32xf32>
    %497 = arith.truncf %495 : vector<8x8xf32> to vector<8x8xbf16>
    %498 = arith.truncf %496 : vector<8x32xf32> to vector<8x32xbf16>
    %cst_152 = arith.constant dense<0.000000e+00> : vector<8x32xf32>
    %499 = tpu.matmul %497, %498, %cst_152 {dimension_numbers = #tpu.dot_dimension_numbers<[1], [0], [0], [1], [0, 0, 1, 1], [], []>} : vector<8x8xbf16>, vector<8x32xbf16>, vector<8x32xf32> -> vector<8x32xf32>
    %500 = arith.addf %475, %499 : vector<8x32xf32>
    %501 = arith.addf %381, %500 : vector<8x32xf32>
    %c376 = arith.constant 376 : index
    %c0_153 = arith.constant 0 : index
    %502 = vector.load %arg4[%c376, %c0_153] : memref<736x32xf32, #tpu.memory_space<vmem>>, vector<1x32xf32>
    %c384 = arith.constant 384 : index
    %c0_154 = arith.constant 0 : index
    %503 = vector.load %arg4[%c384, %c0_154] : memref<736x32xf32, #tpu.memory_space<vmem>>, vector<1x32xf32>
    %cst_155 = arith.constant dense<0.000000e+00> : vector<8xf32>
    %504 = vector.multi_reduction <add>, %501, %cst_155 [1] : vector<8x32xf32> to vector<8xf32>
    %505 = vector.shape_cast %504 : vector<8xf32> to vector<8x1xf32>
    %cst_156 = arith.constant 3.200000e+01 : f32
    %506 = vector.broadcast %cst_156 : f32 to vector<8x1xf32>
    %507 = arith.divf %505, %506 : vector<8x1xf32>
    %508 = vector.broadcast %507 : vector<8x1xf32> to vector<8x32xf32>
    %509 = arith.subf %501, %508 : vector<8x32xf32>
    %510 = arith.mulf %509, %509 : vector<8x32xf32>
    %cst_157 = arith.constant dense<0.000000e+00> : vector<8xf32>
    %511 = vector.multi_reduction <add>, %510, %cst_157 [1] : vector<8x32xf32> to vector<8xf32>
    %512 = vector.shape_cast %511 : vector<8xf32> to vector<8x1xf32>
    %cst_158 = arith.constant 3.200000e+01 : f32
    %513 = vector.broadcast %cst_158 : f32 to vector<8x1xf32>
    %514 = arith.divf %512, %513 : vector<8x1xf32>
    %cst_159 = arith.constant 9.99999974E-6 : f32
    %515 = vector.broadcast %cst_159 : f32 to vector<8x1xf32>
    %516 = arith.addf %514, %515 : vector<8x1xf32>
    %517 = math.rsqrt %516 : vector<8x1xf32>
    %518 = vector.broadcast %517 : vector<8x1xf32> to vector<8x32xf32>
    %519 = arith.mulf %509, %518 : vector<8x32xf32>
    %520 = vector.broadcast %502 : vector<1x32xf32> to vector<8x32xf32>
    %521 = arith.mulf %519, %520 : vector<8x32xf32>
    %522 = vector.broadcast %503 : vector<1x32xf32> to vector<8x32xf32>
    %523 = arith.addf %521, %522 : vector<8x32xf32>
    %c120 = arith.constant 120 : index
    %c0_160 = arith.constant 0 : index
    %524 = vector.load %arg6[%c120, %c0_160] : memref<240x96xf32, #tpu.memory_space<vmem>>, vector<32x96xf32>
    %c152 = arith.constant 152 : index
    %c0_161 = arith.constant 0 : index
    %525 = vector.load %arg6[%c152, %c0_161] : memref<240x96xf32, #tpu.memory_space<vmem>>, vector<1x96xf32>
    %c392 = arith.constant 392 : index
    %c0_162 = arith.constant 0 : index
    %526 = vector.load %arg4[%c392, %c0_162] : memref<736x32xf32, #tpu.memory_space<vmem>>, vector<32x32xf32>
    %c424 = arith.constant 424 : index
    %c0_163 = arith.constant 0 : index
    %527 = vector.load %arg4[%c424, %c0_163] : memref<736x32xf32, #tpu.memory_space<vmem>>, vector<1x32xf32>
    %528 = vector.extract_strided_slice %524 {offsets = [0, 0], sizes = [32, 32], strides = [1, 1]} : vector<32x96xf32> to vector<32x32xf32>
    %529 = arith.truncf %523 : vector<8x32xf32> to vector<8x32xbf16>
    %530 = arith.truncf %528 : vector<32x32xf32> to vector<32x32xbf16>
    %cst_164 = arith.constant dense<0.000000e+00> : vector<8x32xf32>
    %531 = tpu.matmul %529, %530, %cst_164 {dimension_numbers = #tpu.dot_dimension_numbers<[1], [0], [0], [1], [0, 0, 1, 1], [], []>} : vector<8x32xbf16>, vector<32x32xbf16>, vector<8x32xf32> -> vector<8x32xf32>
    %532 = vector.extract_strided_slice %525 {offsets = [0, 0], sizes = [1, 32], strides = [1, 1]} : vector<1x96xf32> to vector<1x32xf32>
    %533 = vector.broadcast %532 : vector<1x32xf32> to vector<8x32xf32>
    %534 = arith.addf %531, %533 : vector<8x32xf32>
    %535 = vector.extract_strided_slice %524 {offsets = [0, 32], sizes = [32, 64], strides = [1, 1]} : vector<32x96xf32> to vector<32x64xf32>
    %536 = arith.truncf %371 : vector<16x32xf32> to vector<16x32xbf16>
    %537 = arith.truncf %535 : vector<32x64xf32> to vector<32x64xbf16>
    %cst_165 = arith.constant dense<0.000000e+00> : vector<16x64xf32>
    %538 = tpu.matmul %536, %537, %cst_165 {dimension_numbers = #tpu.dot_dimension_numbers<[1], [0], [0], [1], [0, 0, 1, 1], [], []>} : vector<16x32xbf16>, vector<32x64xbf16>, vector<16x64xf32> -> vector<16x64xf32>
    %539 = vector.extract_strided_slice %525 {offsets = [0, 32], sizes = [1, 64], strides = [1, 1]} : vector<1x96xf32> to vector<1x64xf32>
    %540 = vector.broadcast %539 : vector<1x64xf32> to vector<16x64xf32>
    %541 = arith.addf %538, %540 : vector<16x64xf32>
    %542 = vector.extract_strided_slice %534 {offsets = [0, 0], sizes = [8, 8], strides = [1, 1]} : vector<8x32xf32> to vector<8x8xf32>
    %543 = vector.extract_strided_slice %541 {offsets = [0, 0], sizes = [16, 8], strides = [1, 1]} : vector<16x64xf32> to vector<16x8xf32>
    %544 = vector.extract_strided_slice %541 {offsets = [0, 32], sizes = [16, 8], strides = [1, 1]} : vector<16x64xf32> to vector<16x8xf32>
    %545 = arith.truncf %542 : vector<8x8xf32> to vector<8x8xbf16>
    %546 = arith.truncf %543 : vector<16x8xf32> to vector<16x8xbf16>
    %cst_166 = arith.constant dense<0.000000e+00> : vector<8x16xf32>
    %547 = tpu.matmul %545, %546, %cst_166 {dimension_numbers = #tpu.dot_dimension_numbers<[1], [1], [0], [0], [0, 0, 1, 0], [], []>} : vector<8x8xbf16>, vector<16x8xbf16>, vector<8x16xf32> -> vector<8x16xf32>
    %cst_167 = arith.constant 0.353553385 : f32
    %548 = vector.broadcast %cst_167 : f32 to vector<8x16xf32>
    %549 = arith.mulf %547, %548 : vector<8x16xf32>
    %cst_168 = arith.constant dense<0xFF800000> : vector<8xf32>
    %550 = vector.multi_reduction <maximumf>, %549, %cst_168 [1] : vector<8x16xf32> to vector<8xf32>
    %551 = vector.shape_cast %550 : vector<8xf32> to vector<8x1xf32>
    %552 = vector.broadcast %551 : vector<8x1xf32> to vector<8x16xf32>
    %553 = arith.subf %549, %552 : vector<8x16xf32>
    %554 = math.exp %553 : vector<8x16xf32>
    %cst_169 = arith.constant dense<0.000000e+00> : vector<8xf32>
    %555 = vector.multi_reduction <add>, %554, %cst_169 [1] : vector<8x16xf32> to vector<8xf32>
    %556 = vector.shape_cast %555 : vector<8xf32> to vector<8x1xf32>
    %557 = vector.broadcast %556 : vector<8x1xf32> to vector<8x16xf32>
    %558 = arith.divf %554, %557 : vector<8x16xf32>
    %559 = arith.truncf %558 : vector<8x16xf32> to vector<8x16xbf16>
    %560 = arith.truncf %544 : vector<16x8xf32> to vector<16x8xbf16>
    %cst_170 = arith.constant dense<0.000000e+00> : vector<8x8xf32>
    %561 = tpu.matmul %559, %560, %cst_170 {dimension_numbers = #tpu.dot_dimension_numbers<[1], [0], [0], [1], [0, 0, 1, 1], [], []>} : vector<8x16xbf16>, vector<16x8xbf16>, vector<8x8xf32> -> vector<8x8xf32>
    %562 = vector.extract_strided_slice %526 {offsets = [0, 0], sizes = [8, 32], strides = [1, 1]} : vector<32x32xf32> to vector<8x32xf32>
    %563 = arith.truncf %561 : vector<8x8xf32> to vector<8x8xbf16>
    %564 = arith.truncf %562 : vector<8x32xf32> to vector<8x32xbf16>
    %cst_171 = arith.constant dense<0.000000e+00> : vector<8x32xf32>
    %565 = tpu.matmul %563, %564, %cst_171 {dimension_numbers = #tpu.dot_dimension_numbers<[1], [0], [0], [1], [0, 0, 1, 1], [], []>} : vector<8x8xbf16>, vector<8x32xbf16>, vector<8x32xf32> -> vector<8x32xf32>
    %566 = vector.broadcast %527 : vector<1x32xf32> to vector<8x32xf32>
    %567 = arith.addf %566, %565 : vector<8x32xf32>
    %568 = vector.extract_strided_slice %534 {offsets = [0, 8], sizes = [8, 8], strides = [1, 1]} : vector<8x32xf32> to vector<8x8xf32>
    %569 = vector.extract_strided_slice %541 {offsets = [0, 8], sizes = [16, 8], strides = [1, 1]} : vector<16x64xf32> to vector<16x8xf32>
    %570 = vector.extract_strided_slice %541 {offsets = [0, 40], sizes = [16, 8], strides = [1, 1]} : vector<16x64xf32> to vector<16x8xf32>
    %571 = arith.truncf %568 : vector<8x8xf32> to vector<8x8xbf16>
    %572 = arith.truncf %569 : vector<16x8xf32> to vector<16x8xbf16>
    %cst_172 = arith.constant dense<0.000000e+00> : vector<8x16xf32>
    %573 = tpu.matmul %571, %572, %cst_172 {dimension_numbers = #tpu.dot_dimension_numbers<[1], [1], [0], [0], [0, 0, 1, 0], [], []>} : vector<8x8xbf16>, vector<16x8xbf16>, vector<8x16xf32> -> vector<8x16xf32>
    %cst_173 = arith.constant 0.353553385 : f32
    %574 = vector.broadcast %cst_173 : f32 to vector<8x16xf32>
    %575 = arith.mulf %573, %574 : vector<8x16xf32>
    %cst_174 = arith.constant dense<0xFF800000> : vector<8xf32>
    %576 = vector.multi_reduction <maximumf>, %575, %cst_174 [1] : vector<8x16xf32> to vector<8xf32>
    %577 = vector.shape_cast %576 : vector<8xf32> to vector<8x1xf32>
    %578 = vector.broadcast %577 : vector<8x1xf32> to vector<8x16xf32>
    %579 = arith.subf %575, %578 : vector<8x16xf32>
    %580 = math.exp %579 : vector<8x16xf32>
    %cst_175 = arith.constant dense<0.000000e+00> : vector<8xf32>
    %581 = vector.multi_reduction <add>, %580, %cst_175 [1] : vector<8x16xf32> to vector<8xf32>
    %582 = vector.shape_cast %581 : vector<8xf32> to vector<8x1xf32>
    %583 = vector.broadcast %582 : vector<8x1xf32> to vector<8x16xf32>
    %584 = arith.divf %580, %583 : vector<8x16xf32>
    %585 = arith.truncf %584 : vector<8x16xf32> to vector<8x16xbf16>
    %586 = arith.truncf %570 : vector<16x8xf32> to vector<16x8xbf16>
    %cst_176 = arith.constant dense<0.000000e+00> : vector<8x8xf32>
    %587 = tpu.matmul %585, %586, %cst_176 {dimension_numbers = #tpu.dot_dimension_numbers<[1], [0], [0], [1], [0, 0, 1, 1], [], []>} : vector<8x16xbf16>, vector<16x8xbf16>, vector<8x8xf32> -> vector<8x8xf32>
    %588 = vector.extract_strided_slice %526 {offsets = [8, 0], sizes = [8, 32], strides = [1, 1]} : vector<32x32xf32> to vector<8x32xf32>
    %589 = arith.truncf %587 : vector<8x8xf32> to vector<8x8xbf16>
    %590 = arith.truncf %588 : vector<8x32xf32> to vector<8x32xbf16>
    %cst_177 = arith.constant dense<0.000000e+00> : vector<8x32xf32>
    %591 = tpu.matmul %589, %590, %cst_177 {dimension_numbers = #tpu.dot_dimension_numbers<[1], [0], [0], [1], [0, 0, 1, 1], [], []>} : vector<8x8xbf16>, vector<8x32xbf16>, vector<8x32xf32> -> vector<8x32xf32>
    %592 = arith.addf %567, %591 : vector<8x32xf32>
    %593 = vector.extract_strided_slice %534 {offsets = [0, 16], sizes = [8, 8], strides = [1, 1]} : vector<8x32xf32> to vector<8x8xf32>
    %594 = vector.extract_strided_slice %541 {offsets = [0, 16], sizes = [16, 8], strides = [1, 1]} : vector<16x64xf32> to vector<16x8xf32>
    %595 = vector.extract_strided_slice %541 {offsets = [0, 48], sizes = [16, 8], strides = [1, 1]} : vector<16x64xf32> to vector<16x8xf32>
    %596 = arith.truncf %593 : vector<8x8xf32> to vector<8x8xbf16>
    %597 = arith.truncf %594 : vector<16x8xf32> to vector<16x8xbf16>
    %cst_178 = arith.constant dense<0.000000e+00> : vector<8x16xf32>
    %598 = tpu.matmul %596, %597, %cst_178 {dimension_numbers = #tpu.dot_dimension_numbers<[1], [1], [0], [0], [0, 0, 1, 0], [], []>} : vector<8x8xbf16>, vector<16x8xbf16>, vector<8x16xf32> -> vector<8x16xf32>
    %cst_179 = arith.constant 0.353553385 : f32
    %599 = vector.broadcast %cst_179 : f32 to vector<8x16xf32>
    %600 = arith.mulf %598, %599 : vector<8x16xf32>
    %cst_180 = arith.constant dense<0xFF800000> : vector<8xf32>
    %601 = vector.multi_reduction <maximumf>, %600, %cst_180 [1] : vector<8x16xf32> to vector<8xf32>
    %602 = vector.shape_cast %601 : vector<8xf32> to vector<8x1xf32>
    %603 = vector.broadcast %602 : vector<8x1xf32> to vector<8x16xf32>
    %604 = arith.subf %600, %603 : vector<8x16xf32>
    %605 = math.exp %604 : vector<8x16xf32>
    %cst_181 = arith.constant dense<0.000000e+00> : vector<8xf32>
    %606 = vector.multi_reduction <add>, %605, %cst_181 [1] : vector<8x16xf32> to vector<8xf32>
    %607 = vector.shape_cast %606 : vector<8xf32> to vector<8x1xf32>
    %608 = vector.broadcast %607 : vector<8x1xf32> to vector<8x16xf32>
    %609 = arith.divf %605, %608 : vector<8x16xf32>
    %610 = arith.truncf %609 : vector<8x16xf32> to vector<8x16xbf16>
    %611 = arith.truncf %595 : vector<16x8xf32> to vector<16x8xbf16>
    %cst_182 = arith.constant dense<0.000000e+00> : vector<8x8xf32>
    %612 = tpu.matmul %610, %611, %cst_182 {dimension_numbers = #tpu.dot_dimension_numbers<[1], [0], [0], [1], [0, 0, 1, 1], [], []>} : vector<8x16xbf16>, vector<16x8xbf16>, vector<8x8xf32> -> vector<8x8xf32>
    %613 = vector.extract_strided_slice %526 {offsets = [16, 0], sizes = [8, 32], strides = [1, 1]} : vector<32x32xf32> to vector<8x32xf32>
    %614 = arith.truncf %612 : vector<8x8xf32> to vector<8x8xbf16>
    %615 = arith.truncf %613 : vector<8x32xf32> to vector<8x32xbf16>
    %cst_183 = arith.constant dense<0.000000e+00> : vector<8x32xf32>
    %616 = tpu.matmul %614, %615, %cst_183 {dimension_numbers = #tpu.dot_dimension_numbers<[1], [0], [0], [1], [0, 0, 1, 1], [], []>} : vector<8x8xbf16>, vector<8x32xbf16>, vector<8x32xf32> -> vector<8x32xf32>
    %617 = arith.addf %592, %616 : vector<8x32xf32>
    %618 = vector.extract_strided_slice %534 {offsets = [0, 24], sizes = [8, 8], strides = [1, 1]} : vector<8x32xf32> to vector<8x8xf32>
    %619 = vector.extract_strided_slice %541 {offsets = [0, 24], sizes = [16, 8], strides = [1, 1]} : vector<16x64xf32> to vector<16x8xf32>
    %620 = vector.extract_strided_slice %541 {offsets = [0, 56], sizes = [16, 8], strides = [1, 1]} : vector<16x64xf32> to vector<16x8xf32>
    %621 = arith.truncf %618 : vector<8x8xf32> to vector<8x8xbf16>
    %622 = arith.truncf %619 : vector<16x8xf32> to vector<16x8xbf16>
    %cst_184 = arith.constant dense<0.000000e+00> : vector<8x16xf32>
    %623 = tpu.matmul %621, %622, %cst_184 {dimension_numbers = #tpu.dot_dimension_numbers<[1], [1], [0], [0], [0, 0, 1, 0], [], []>} : vector<8x8xbf16>, vector<16x8xbf16>, vector<8x16xf32> -> vector<8x16xf32>
    %cst_185 = arith.constant 0.353553385 : f32
    %624 = vector.broadcast %cst_185 : f32 to vector<8x16xf32>
    %625 = arith.mulf %623, %624 : vector<8x16xf32>
    %cst_186 = arith.constant dense<0xFF800000> : vector<8xf32>
    %626 = vector.multi_reduction <maximumf>, %625, %cst_186 [1] : vector<8x16xf32> to vector<8xf32>
    %627 = vector.shape_cast %626 : vector<8xf32> to vector<8x1xf32>
    %628 = vector.broadcast %627 : vector<8x1xf32> to vector<8x16xf32>
    %629 = arith.subf %625, %628 : vector<8x16xf32>
    %630 = math.exp %629 : vector<8x16xf32>
    %cst_187 = arith.constant dense<0.000000e+00> : vector<8xf32>
    %631 = vector.multi_reduction <add>, %630, %cst_187 [1] : vector<8x16xf32> to vector<8xf32>
    %632 = vector.shape_cast %631 : vector<8xf32> to vector<8x1xf32>
    %633 = vector.broadcast %632 : vector<8x1xf32> to vector<8x16xf32>
    %634 = arith.divf %630, %633 : vector<8x16xf32>
    %635 = arith.truncf %634 : vector<8x16xf32> to vector<8x16xbf16>
    %636 = arith.truncf %620 : vector<16x8xf32> to vector<16x8xbf16>
    %cst_188 = arith.constant dense<0.000000e+00> : vector<8x8xf32>
    %637 = tpu.matmul %635, %636, %cst_188 {dimension_numbers = #tpu.dot_dimension_numbers<[1], [0], [0], [1], [0, 0, 1, 1], [], []>} : vector<8x16xbf16>, vector<16x8xbf16>, vector<8x8xf32> -> vector<8x8xf32>
    %638 = vector.extract_strided_slice %526 {offsets = [24, 0], sizes = [8, 32], strides = [1, 1]} : vector<32x32xf32> to vector<8x32xf32>
    %639 = arith.truncf %637 : vector<8x8xf32> to vector<8x8xbf16>
    %640 = arith.truncf %638 : vector<8x32xf32> to vector<8x32xbf16>
    %cst_189 = arith.constant dense<0.000000e+00> : vector<8x32xf32>
    %641 = tpu.matmul %639, %640, %cst_189 {dimension_numbers = #tpu.dot_dimension_numbers<[1], [0], [0], [1], [0, 0, 1, 1], [], []>} : vector<8x8xbf16>, vector<8x32xbf16>, vector<8x32xf32> -> vector<8x32xf32>
    %642 = arith.addf %617, %641 : vector<8x32xf32>
    %643 = arith.addf %523, %642 : vector<8x32xf32>
    %c432 = arith.constant 432 : index
    %c0_190 = arith.constant 0 : index
    %644 = vector.load %arg4[%c432, %c0_190] : memref<736x32xf32, #tpu.memory_space<vmem>>, vector<1x32xf32>
    %c440 = arith.constant 440 : index
    %c0_191 = arith.constant 0 : index
    %645 = vector.load %arg4[%c440, %c0_191] : memref<736x32xf32, #tpu.memory_space<vmem>>, vector<1x32xf32>
    %cst_192 = arith.constant dense<0.000000e+00> : vector<8xf32>
    %646 = vector.multi_reduction <add>, %643, %cst_192 [1] : vector<8x32xf32> to vector<8xf32>
    %647 = vector.shape_cast %646 : vector<8xf32> to vector<8x1xf32>
    %cst_193 = arith.constant 3.200000e+01 : f32
    %648 = vector.broadcast %cst_193 : f32 to vector<8x1xf32>
    %649 = arith.divf %647, %648 : vector<8x1xf32>
    %650 = vector.broadcast %649 : vector<8x1xf32> to vector<8x32xf32>
    %651 = arith.subf %643, %650 : vector<8x32xf32>
    %652 = arith.mulf %651, %651 : vector<8x32xf32>
    %cst_194 = arith.constant dense<0.000000e+00> : vector<8xf32>
    %653 = vector.multi_reduction <add>, %652, %cst_194 [1] : vector<8x32xf32> to vector<8xf32>
    %654 = vector.shape_cast %653 : vector<8xf32> to vector<8x1xf32>
    %cst_195 = arith.constant 3.200000e+01 : f32
    %655 = vector.broadcast %cst_195 : f32 to vector<8x1xf32>
    %656 = arith.divf %654, %655 : vector<8x1xf32>
    %cst_196 = arith.constant 9.99999974E-6 : f32
    %657 = vector.broadcast %cst_196 : f32 to vector<8x1xf32>
    %658 = arith.addf %656, %657 : vector<8x1xf32>
    %659 = math.rsqrt %658 : vector<8x1xf32>
    %660 = vector.broadcast %659 : vector<8x1xf32> to vector<8x32xf32>
    %661 = arith.mulf %651, %660 : vector<8x32xf32>
    %662 = vector.broadcast %644 : vector<1x32xf32> to vector<8x32xf32>
    %663 = arith.mulf %661, %662 : vector<8x32xf32>
    %664 = vector.broadcast %645 : vector<1x32xf32> to vector<8x32xf32>
    %665 = arith.addf %663, %664 : vector<8x32xf32>
    %c80_197 = arith.constant 80 : index
    %c0_198 = arith.constant 0 : index
    %666 = vector.load %arg5[%c80_197, %c0_198] : memref<160x64xf32, #tpu.memory_space<vmem>>, vector<32x64xf32>
    %667 = arith.truncf %665 : vector<8x32xf32> to vector<8x32xbf16>
    %668 = arith.truncf %666 : vector<32x64xf32> to vector<32x64xbf16>
    %cst_199 = arith.constant dense<0.000000e+00> : vector<8x64xf32>
    %669 = tpu.matmul %667, %668, %cst_199 {dimension_numbers = #tpu.dot_dimension_numbers<[1], [0], [0], [1], [0, 0, 1, 1], [], []>} : vector<8x32xbf16>, vector<32x64xbf16>, vector<8x64xf32> -> vector<8x64xf32>
    %c112_200 = arith.constant 112 : index
    %c0_201 = arith.constant 0 : index
    %670 = vector.load %arg5[%c112_200, %c0_201] : memref<160x64xf32, #tpu.memory_space<vmem>>, vector<1x64xf32>
    %671 = vector.broadcast %670 : vector<1x64xf32> to vector<8x64xf32>
    %672 = arith.addf %669, %671 : vector<8x64xf32>
    %cst_202 = arith.constant 0.000000e+00 : f32
    %673 = vector.broadcast %cst_202 : f32 to vector<8x64xf32>
    %674 = arith.maximumf %672, %673 : vector<8x64xf32>
    %c448 = arith.constant 448 : index
    %c0_203 = arith.constant 0 : index
    %675 = vector.load %arg4[%c448, %c0_203] : memref<736x32xf32, #tpu.memory_space<vmem>>, vector<64x32xf32>
    %676 = arith.truncf %674 : vector<8x64xf32> to vector<8x64xbf16>
    %677 = arith.truncf %675 : vector<64x32xf32> to vector<64x32xbf16>
    %cst_204 = arith.constant dense<0.000000e+00> : vector<8x32xf32>
    %678 = tpu.matmul %676, %677, %cst_204 {dimension_numbers = #tpu.dot_dimension_numbers<[1], [0], [0], [1], [0, 0, 1, 1], [], []>} : vector<8x64xbf16>, vector<64x32xbf16>, vector<8x32xf32> -> vector<8x32xf32>
    %c512 = arith.constant 512 : index
    %c0_205 = arith.constant 0 : index
    %679 = vector.load %arg4[%c512, %c0_205] : memref<736x32xf32, #tpu.memory_space<vmem>>, vector<1x32xf32>
    %680 = vector.broadcast %679 : vector<1x32xf32> to vector<8x32xf32>
    %681 = arith.addf %678, %680 : vector<8x32xf32>
    %682 = arith.addf %665, %681 : vector<8x32xf32>
    %c520 = arith.constant 520 : index
    %c0_206 = arith.constant 0 : index
    %683 = vector.load %arg4[%c520, %c0_206] : memref<736x32xf32, #tpu.memory_space<vmem>>, vector<1x32xf32>
    %c528 = arith.constant 528 : index
    %c0_207 = arith.constant 0 : index
    %684 = vector.load %arg4[%c528, %c0_207] : memref<736x32xf32, #tpu.memory_space<vmem>>, vector<1x32xf32>
    %cst_208 = arith.constant dense<0.000000e+00> : vector<8xf32>
    %685 = vector.multi_reduction <add>, %682, %cst_208 [1] : vector<8x32xf32> to vector<8xf32>
    %686 = vector.shape_cast %685 : vector<8xf32> to vector<8x1xf32>
    %cst_209 = arith.constant 3.200000e+01 : f32
    %687 = vector.broadcast %cst_209 : f32 to vector<8x1xf32>
    %688 = arith.divf %686, %687 : vector<8x1xf32>
    %689 = vector.broadcast %688 : vector<8x1xf32> to vector<8x32xf32>
    %690 = arith.subf %682, %689 : vector<8x32xf32>
    %691 = arith.mulf %690, %690 : vector<8x32xf32>
    %cst_210 = arith.constant dense<0.000000e+00> : vector<8xf32>
    %692 = vector.multi_reduction <add>, %691, %cst_210 [1] : vector<8x32xf32> to vector<8xf32>
    %693 = vector.shape_cast %692 : vector<8xf32> to vector<8x1xf32>
    %cst_211 = arith.constant 3.200000e+01 : f32
    %694 = vector.broadcast %cst_211 : f32 to vector<8x1xf32>
    %695 = arith.divf %693, %694 : vector<8x1xf32>
    %cst_212 = arith.constant 9.99999974E-6 : f32
    %696 = vector.broadcast %cst_212 : f32 to vector<8x1xf32>
    %697 = arith.addf %695, %696 : vector<8x1xf32>
    %698 = math.rsqrt %697 : vector<8x1xf32>
    %699 = vector.broadcast %698 : vector<8x1xf32> to vector<8x32xf32>
    %700 = arith.mulf %690, %699 : vector<8x32xf32>
    %701 = vector.broadcast %683 : vector<1x32xf32> to vector<8x32xf32>
    %702 = arith.mulf %700, %701 : vector<8x32xf32>
    %703 = vector.broadcast %684 : vector<1x32xf32> to vector<8x32xf32>
    %704 = arith.addf %702, %703 : vector<8x32xf32>
    %c160 = arith.constant 160 : index
    %c0_213 = arith.constant 0 : index
    %705 = vector.load %arg6[%c160, %c0_213] : memref<240x96xf32, #tpu.memory_space<vmem>>, vector<32x96xf32>
    %c192_214 = arith.constant 192 : index
    %c0_215 = arith.constant 0 : index
    %706 = vector.load %arg6[%c192_214, %c0_215] : memref<240x96xf32, #tpu.memory_space<vmem>>, vector<1x96xf32>
    %c536 = arith.constant 536 : index
    %c0_216 = arith.constant 0 : index
    %707 = vector.load %arg4[%c536, %c0_216] : memref<736x32xf32, #tpu.memory_space<vmem>>, vector<32x32xf32>
    %c568 = arith.constant 568 : index
    %c0_217 = arith.constant 0 : index
    %708 = vector.load %arg4[%c568, %c0_217] : memref<736x32xf32, #tpu.memory_space<vmem>>, vector<1x32xf32>
    %709 = vector.extract_strided_slice %705 {offsets = [0, 0], sizes = [32, 32], strides = [1, 1]} : vector<32x96xf32> to vector<32x32xf32>
    %710 = arith.truncf %704 : vector<8x32xf32> to vector<8x32xbf16>
    %711 = arith.truncf %709 : vector<32x32xf32> to vector<32x32xbf16>
    %cst_218 = arith.constant dense<0.000000e+00> : vector<8x32xf32>
    %712 = tpu.matmul %710, %711, %cst_218 {dimension_numbers = #tpu.dot_dimension_numbers<[1], [0], [0], [1], [0, 0, 1, 1], [], []>} : vector<8x32xbf16>, vector<32x32xbf16>, vector<8x32xf32> -> vector<8x32xf32>
    %713 = vector.extract_strided_slice %706 {offsets = [0, 0], sizes = [1, 32], strides = [1, 1]} : vector<1x96xf32> to vector<1x32xf32>
    %714 = vector.broadcast %713 : vector<1x32xf32> to vector<8x32xf32>
    %715 = arith.addf %712, %714 : vector<8x32xf32>
    %716 = vector.extract_strided_slice %705 {offsets = [0, 32], sizes = [32, 64], strides = [1, 1]} : vector<32x96xf32> to vector<32x64xf32>
    %717 = arith.truncf %704 : vector<8x32xf32> to vector<8x32xbf16>
    %718 = arith.truncf %716 : vector<32x64xf32> to vector<32x64xbf16>
    %cst_219 = arith.constant dense<0.000000e+00> : vector<8x64xf32>
    %719 = tpu.matmul %717, %718, %cst_219 {dimension_numbers = #tpu.dot_dimension_numbers<[1], [0], [0], [1], [0, 0, 1, 1], [], []>} : vector<8x32xbf16>, vector<32x64xbf16>, vector<8x64xf32> -> vector<8x64xf32>
    %720 = vector.extract_strided_slice %706 {offsets = [0, 32], sizes = [1, 64], strides = [1, 1]} : vector<1x96xf32> to vector<1x64xf32>
    %721 = vector.broadcast %720 : vector<1x64xf32> to vector<8x64xf32>
    %722 = arith.addf %719, %721 : vector<8x64xf32>
    %723 = vector.extract_strided_slice %715 {offsets = [0, 0], sizes = [8, 8], strides = [1, 1]} : vector<8x32xf32> to vector<8x8xf32>
    %724 = vector.extract_strided_slice %722 {offsets = [0, 0], sizes = [8, 8], strides = [1, 1]} : vector<8x64xf32> to vector<8x8xf32>
    %725 = vector.extract_strided_slice %722 {offsets = [0, 32], sizes = [8, 8], strides = [1, 1]} : vector<8x64xf32> to vector<8x8xf32>
    %726 = arith.truncf %723 : vector<8x8xf32> to vector<8x8xbf16>
    %727 = arith.truncf %724 : vector<8x8xf32> to vector<8x8xbf16>
    %cst_220 = arith.constant dense<0.000000e+00> : vector<8x8xf32>
    %728 = tpu.matmul %726, %727, %cst_220 {dimension_numbers = #tpu.dot_dimension_numbers<[1], [1], [0], [0], [0, 0, 1, 0], [], []>} : vector<8x8xbf16>, vector<8x8xbf16>, vector<8x8xf32> -> vector<8x8xf32>
    %cst_221 = arith.constant 0.353553385 : f32
    %729 = vector.broadcast %cst_221 : f32 to vector<8x8xf32>
    %730 = arith.mulf %728, %729 : vector<8x8xf32>
    %cst_222 = arith.constant dense<0xFF800000> : vector<8xf32>
    %731 = vector.multi_reduction <maximumf>, %730, %cst_222 [1] : vector<8x8xf32> to vector<8xf32>
    %732 = vector.shape_cast %731 : vector<8xf32> to vector<8x1xf32>
    %733 = vector.broadcast %732 : vector<8x1xf32> to vector<8x8xf32>
    %734 = arith.subf %730, %733 : vector<8x8xf32>
    %735 = math.exp %734 : vector<8x8xf32>
    %cst_223 = arith.constant dense<0.000000e+00> : vector<8xf32>
    %736 = vector.multi_reduction <add>, %735, %cst_223 [1] : vector<8x8xf32> to vector<8xf32>
    %737 = vector.shape_cast %736 : vector<8xf32> to vector<8x1xf32>
    %738 = vector.broadcast %737 : vector<8x1xf32> to vector<8x8xf32>
    %739 = arith.divf %735, %738 : vector<8x8xf32>
    %740 = arith.truncf %739 : vector<8x8xf32> to vector<8x8xbf16>
    %741 = arith.truncf %725 : vector<8x8xf32> to vector<8x8xbf16>
    %cst_224 = arith.constant dense<0.000000e+00> : vector<8x8xf32>
    %742 = tpu.matmul %740, %741, %cst_224 {dimension_numbers = #tpu.dot_dimension_numbers<[1], [0], [0], [1], [0, 0, 1, 1], [], []>} : vector<8x8xbf16>, vector<8x8xbf16>, vector<8x8xf32> -> vector<8x8xf32>
    %743 = vector.extract_strided_slice %707 {offsets = [0, 0], sizes = [8, 32], strides = [1, 1]} : vector<32x32xf32> to vector<8x32xf32>
    %744 = arith.truncf %742 : vector<8x8xf32> to vector<8x8xbf16>
    %745 = arith.truncf %743 : vector<8x32xf32> to vector<8x32xbf16>
    %cst_225 = arith.constant dense<0.000000e+00> : vector<8x32xf32>
    %746 = tpu.matmul %744, %745, %cst_225 {dimension_numbers = #tpu.dot_dimension_numbers<[1], [0], [0], [1], [0, 0, 1, 1], [], []>} : vector<8x8xbf16>, vector<8x32xbf16>, vector<8x32xf32> -> vector<8x32xf32>
    %747 = vector.broadcast %708 : vector<1x32xf32> to vector<8x32xf32>
    %748 = arith.addf %747, %746 : vector<8x32xf32>
    %749 = vector.extract_strided_slice %715 {offsets = [0, 8], sizes = [8, 8], strides = [1, 1]} : vector<8x32xf32> to vector<8x8xf32>
    %750 = vector.extract_strided_slice %722 {offsets = [0, 8], sizes = [8, 8], strides = [1, 1]} : vector<8x64xf32> to vector<8x8xf32>
    %751 = vector.extract_strided_slice %722 {offsets = [0, 40], sizes = [8, 8], strides = [1, 1]} : vector<8x64xf32> to vector<8x8xf32>
    %752 = arith.truncf %749 : vector<8x8xf32> to vector<8x8xbf16>
    %753 = arith.truncf %750 : vector<8x8xf32> to vector<8x8xbf16>
    %cst_226 = arith.constant dense<0.000000e+00> : vector<8x8xf32>
    %754 = tpu.matmul %752, %753, %cst_226 {dimension_numbers = #tpu.dot_dimension_numbers<[1], [1], [0], [0], [0, 0, 1, 0], [], []>} : vector<8x8xbf16>, vector<8x8xbf16>, vector<8x8xf32> -> vector<8x8xf32>
    %cst_227 = arith.constant 0.353553385 : f32
    %755 = vector.broadcast %cst_227 : f32 to vector<8x8xf32>
    %756 = arith.mulf %754, %755 : vector<8x8xf32>
    %cst_228 = arith.constant dense<0xFF800000> : vector<8xf32>
    %757 = vector.multi_reduction <maximumf>, %756, %cst_228 [1] : vector<8x8xf32> to vector<8xf32>
    %758 = vector.shape_cast %757 : vector<8xf32> to vector<8x1xf32>
    %759 = vector.broadcast %758 : vector<8x1xf32> to vector<8x8xf32>
    %760 = arith.subf %756, %759 : vector<8x8xf32>
    %761 = math.exp %760 : vector<8x8xf32>
    %cst_229 = arith.constant dense<0.000000e+00> : vector<8xf32>
    %762 = vector.multi_reduction <add>, %761, %cst_229 [1] : vector<8x8xf32> to vector<8xf32>
    %763 = vector.shape_cast %762 : vector<8xf32> to vector<8x1xf32>
    %764 = vector.broadcast %763 : vector<8x1xf32> to vector<8x8xf32>
    %765 = arith.divf %761, %764 : vector<8x8xf32>
    %766 = arith.truncf %765 : vector<8x8xf32> to vector<8x8xbf16>
    %767 = arith.truncf %751 : vector<8x8xf32> to vector<8x8xbf16>
    %cst_230 = arith.constant dense<0.000000e+00> : vector<8x8xf32>
    %768 = tpu.matmul %766, %767, %cst_230 {dimension_numbers = #tpu.dot_dimension_numbers<[1], [0], [0], [1], [0, 0, 1, 1], [], []>} : vector<8x8xbf16>, vector<8x8xbf16>, vector<8x8xf32> -> vector<8x8xf32>
    %769 = vector.extract_strided_slice %707 {offsets = [8, 0], sizes = [8, 32], strides = [1, 1]} : vector<32x32xf32> to vector<8x32xf32>
    %770 = arith.truncf %768 : vector<8x8xf32> to vector<8x8xbf16>
    %771 = arith.truncf %769 : vector<8x32xf32> to vector<8x32xbf16>
    %cst_231 = arith.constant dense<0.000000e+00> : vector<8x32xf32>
    %772 = tpu.matmul %770, %771, %cst_231 {dimension_numbers = #tpu.dot_dimension_numbers<[1], [0], [0], [1], [0, 0, 1, 1], [], []>} : vector<8x8xbf16>, vector<8x32xbf16>, vector<8x32xf32> -> vector<8x32xf32>
    %773 = arith.addf %748, %772 : vector<8x32xf32>
    %774 = vector.extract_strided_slice %715 {offsets = [0, 16], sizes = [8, 8], strides = [1, 1]} : vector<8x32xf32> to vector<8x8xf32>
    %775 = vector.extract_strided_slice %722 {offsets = [0, 16], sizes = [8, 8], strides = [1, 1]} : vector<8x64xf32> to vector<8x8xf32>
    %776 = vector.extract_strided_slice %722 {offsets = [0, 48], sizes = [8, 8], strides = [1, 1]} : vector<8x64xf32> to vector<8x8xf32>
    %777 = arith.truncf %774 : vector<8x8xf32> to vector<8x8xbf16>
    %778 = arith.truncf %775 : vector<8x8xf32> to vector<8x8xbf16>
    %cst_232 = arith.constant dense<0.000000e+00> : vector<8x8xf32>
    %779 = tpu.matmul %777, %778, %cst_232 {dimension_numbers = #tpu.dot_dimension_numbers<[1], [1], [0], [0], [0, 0, 1, 0], [], []>} : vector<8x8xbf16>, vector<8x8xbf16>, vector<8x8xf32> -> vector<8x8xf32>
    %cst_233 = arith.constant 0.353553385 : f32
    %780 = vector.broadcast %cst_233 : f32 to vector<8x8xf32>
    %781 = arith.mulf %779, %780 : vector<8x8xf32>
    %cst_234 = arith.constant dense<0xFF800000> : vector<8xf32>
    %782 = vector.multi_reduction <maximumf>, %781, %cst_234 [1] : vector<8x8xf32> to vector<8xf32>
    %783 = vector.shape_cast %782 : vector<8xf32> to vector<8x1xf32>
    %784 = vector.broadcast %783 : vector<8x1xf32> to vector<8x8xf32>
    %785 = arith.subf %781, %784 : vector<8x8xf32>
    %786 = math.exp %785 : vector<8x8xf32>
    %cst_235 = arith.constant dense<0.000000e+00> : vector<8xf32>
    %787 = vector.multi_reduction <add>, %786, %cst_235 [1] : vector<8x8xf32> to vector<8xf32>
    %788 = vector.shape_cast %787 : vector<8xf32> to vector<8x1xf32>
    %789 = vector.broadcast %788 : vector<8x1xf32> to vector<8x8xf32>
    %790 = arith.divf %786, %789 : vector<8x8xf32>
    %791 = arith.truncf %790 : vector<8x8xf32> to vector<8x8xbf16>
    %792 = arith.truncf %776 : vector<8x8xf32> to vector<8x8xbf16>
    %cst_236 = arith.constant dense<0.000000e+00> : vector<8x8xf32>
    %793 = tpu.matmul %791, %792, %cst_236 {dimension_numbers = #tpu.dot_dimension_numbers<[1], [0], [0], [1], [0, 0, 1, 1], [], []>} : vector<8x8xbf16>, vector<8x8xbf16>, vector<8x8xf32> -> vector<8x8xf32>
    %794 = vector.extract_strided_slice %707 {offsets = [16, 0], sizes = [8, 32], strides = [1, 1]} : vector<32x32xf32> to vector<8x32xf32>
    %795 = arith.truncf %793 : vector<8x8xf32> to vector<8x8xbf16>
    %796 = arith.truncf %794 : vector<8x32xf32> to vector<8x32xbf16>
    %cst_237 = arith.constant dense<0.000000e+00> : vector<8x32xf32>
    %797 = tpu.matmul %795, %796, %cst_237 {dimension_numbers = #tpu.dot_dimension_numbers<[1], [0], [0], [1], [0, 0, 1, 1], [], []>} : vector<8x8xbf16>, vector<8x32xbf16>, vector<8x32xf32> -> vector<8x32xf32>
    %798 = arith.addf %773, %797 : vector<8x32xf32>
    %799 = vector.extract_strided_slice %715 {offsets = [0, 24], sizes = [8, 8], strides = [1, 1]} : vector<8x32xf32> to vector<8x8xf32>
    %800 = vector.extract_strided_slice %722 {offsets = [0, 24], sizes = [8, 8], strides = [1, 1]} : vector<8x64xf32> to vector<8x8xf32>
    %801 = vector.extract_strided_slice %722 {offsets = [0, 56], sizes = [8, 8], strides = [1, 1]} : vector<8x64xf32> to vector<8x8xf32>
    %802 = arith.truncf %799 : vector<8x8xf32> to vector<8x8xbf16>
    %803 = arith.truncf %800 : vector<8x8xf32> to vector<8x8xbf16>
    %cst_238 = arith.constant dense<0.000000e+00> : vector<8x8xf32>
    %804 = tpu.matmul %802, %803, %cst_238 {dimension_numbers = #tpu.dot_dimension_numbers<[1], [1], [0], [0], [0, 0, 1, 0], [], []>} : vector<8x8xbf16>, vector<8x8xbf16>, vector<8x8xf32> -> vector<8x8xf32>
    %cst_239 = arith.constant 0.353553385 : f32
    %805 = vector.broadcast %cst_239 : f32 to vector<8x8xf32>
    %806 = arith.mulf %804, %805 : vector<8x8xf32>
    %cst_240 = arith.constant dense<0xFF800000> : vector<8xf32>
    %807 = vector.multi_reduction <maximumf>, %806, %cst_240 [1] : vector<8x8xf32> to vector<8xf32>
    %808 = vector.shape_cast %807 : vector<8xf32> to vector<8x1xf32>
    %809 = vector.broadcast %808 : vector<8x1xf32> to vector<8x8xf32>
    %810 = arith.subf %806, %809 : vector<8x8xf32>
    %811 = math.exp %810 : vector<8x8xf32>
    %cst_241 = arith.constant dense<0.000000e+00> : vector<8xf32>
    %812 = vector.multi_reduction <add>, %811, %cst_241 [1] : vector<8x8xf32> to vector<8xf32>
    %813 = vector.shape_cast %812 : vector<8xf32> to vector<8x1xf32>
    %814 = vector.broadcast %813 : vector<8x1xf32> to vector<8x8xf32>
    %815 = arith.divf %811, %814 : vector<8x8xf32>
    %816 = arith.truncf %815 : vector<8x8xf32> to vector<8x8xbf16>
    %817 = arith.truncf %801 : vector<8x8xf32> to vector<8x8xbf16>
    %cst_242 = arith.constant dense<0.000000e+00> : vector<8x8xf32>
    %818 = tpu.matmul %816, %817, %cst_242 {dimension_numbers = #tpu.dot_dimension_numbers<[1], [0], [0], [1], [0, 0, 1, 1], [], []>} : vector<8x8xbf16>, vector<8x8xbf16>, vector<8x8xf32> -> vector<8x8xf32>
    %819 = vector.extract_strided_slice %707 {offsets = [24, 0], sizes = [8, 32], strides = [1, 1]} : vector<32x32xf32> to vector<8x32xf32>
    %820 = arith.truncf %818 : vector<8x8xf32> to vector<8x8xbf16>
    %821 = arith.truncf %819 : vector<8x32xf32> to vector<8x32xbf16>
    %cst_243 = arith.constant dense<0.000000e+00> : vector<8x32xf32>
    %822 = tpu.matmul %820, %821, %cst_243 {dimension_numbers = #tpu.dot_dimension_numbers<[1], [0], [0], [1], [0, 0, 1, 1], [], []>} : vector<8x8xbf16>, vector<8x32xbf16>, vector<8x32xf32> -> vector<8x32xf32>
    %823 = arith.addf %798, %822 : vector<8x32xf32>
    %824 = arith.addf %704, %823 : vector<8x32xf32>
    %c576 = arith.constant 576 : index
    %c0_244 = arith.constant 0 : index
    %825 = vector.load %arg4[%c576, %c0_244] : memref<736x32xf32, #tpu.memory_space<vmem>>, vector<1x32xf32>
    %c584 = arith.constant 584 : index
    %c0_245 = arith.constant 0 : index
    %826 = vector.load %arg4[%c584, %c0_245] : memref<736x32xf32, #tpu.memory_space<vmem>>, vector<1x32xf32>
    %cst_246 = arith.constant dense<0.000000e+00> : vector<8xf32>
    %827 = vector.multi_reduction <add>, %824, %cst_246 [1] : vector<8x32xf32> to vector<8xf32>
    %828 = vector.shape_cast %827 : vector<8xf32> to vector<8x1xf32>
    %cst_247 = arith.constant 3.200000e+01 : f32
    %829 = vector.broadcast %cst_247 : f32 to vector<8x1xf32>
    %830 = arith.divf %828, %829 : vector<8x1xf32>
    %831 = vector.broadcast %830 : vector<8x1xf32> to vector<8x32xf32>
    %832 = arith.subf %824, %831 : vector<8x32xf32>
    %833 = arith.mulf %832, %832 : vector<8x32xf32>
    %cst_248 = arith.constant dense<0.000000e+00> : vector<8xf32>
    %834 = vector.multi_reduction <add>, %833, %cst_248 [1] : vector<8x32xf32> to vector<8xf32>
    %835 = vector.shape_cast %834 : vector<8xf32> to vector<8x1xf32>
    %cst_249 = arith.constant 3.200000e+01 : f32
    %836 = vector.broadcast %cst_249 : f32 to vector<8x1xf32>
    %837 = arith.divf %835, %836 : vector<8x1xf32>
    %cst_250 = arith.constant 9.99999974E-6 : f32
    %838 = vector.broadcast %cst_250 : f32 to vector<8x1xf32>
    %839 = arith.addf %837, %838 : vector<8x1xf32>
    %840 = math.rsqrt %839 : vector<8x1xf32>
    %841 = vector.broadcast %840 : vector<8x1xf32> to vector<8x32xf32>
    %842 = arith.mulf %832, %841 : vector<8x32xf32>
    %843 = vector.broadcast %825 : vector<1x32xf32> to vector<8x32xf32>
    %844 = arith.mulf %842, %843 : vector<8x32xf32>
    %845 = vector.broadcast %826 : vector<1x32xf32> to vector<8x32xf32>
    %846 = arith.addf %844, %845 : vector<8x32xf32>
    %c200 = arith.constant 200 : index
    %c0_251 = arith.constant 0 : index
    %847 = vector.load %arg6[%c200, %c0_251] : memref<240x96xf32, #tpu.memory_space<vmem>>, vector<32x96xf32>
    %c232_252 = arith.constant 232 : index
    %c0_253 = arith.constant 0 : index
    %848 = vector.load %arg6[%c232_252, %c0_253] : memref<240x96xf32, #tpu.memory_space<vmem>>, vector<1x96xf32>
    %c592 = arith.constant 592 : index
    %c0_254 = arith.constant 0 : index
    %849 = vector.load %arg4[%c592, %c0_254] : memref<736x32xf32, #tpu.memory_space<vmem>>, vector<32x32xf32>
    %c624 = arith.constant 624 : index
    %c0_255 = arith.constant 0 : index
    %850 = vector.load %arg4[%c624, %c0_255] : memref<736x32xf32, #tpu.memory_space<vmem>>, vector<1x32xf32>
    %851 = vector.extract_strided_slice %847 {offsets = [0, 0], sizes = [32, 32], strides = [1, 1]} : vector<32x96xf32> to vector<32x32xf32>
    %852 = arith.truncf %846 : vector<8x32xf32> to vector<8x32xbf16>
    %853 = arith.truncf %851 : vector<32x32xf32> to vector<32x32xbf16>
    %cst_256 = arith.constant dense<0.000000e+00> : vector<8x32xf32>
    %854 = tpu.matmul %852, %853, %cst_256 {dimension_numbers = #tpu.dot_dimension_numbers<[1], [0], [0], [1], [0, 0, 1, 1], [], []>} : vector<8x32xbf16>, vector<32x32xbf16>, vector<8x32xf32> -> vector<8x32xf32>
    %855 = vector.extract_strided_slice %848 {offsets = [0, 0], sizes = [1, 32], strides = [1, 1]} : vector<1x96xf32> to vector<1x32xf32>
    %856 = vector.broadcast %855 : vector<1x32xf32> to vector<8x32xf32>
    %857 = arith.addf %854, %856 : vector<8x32xf32>
    %858 = vector.extract_strided_slice %847 {offsets = [0, 32], sizes = [32, 64], strides = [1, 1]} : vector<32x96xf32> to vector<32x64xf32>
    %859 = arith.truncf %371 : vector<16x32xf32> to vector<16x32xbf16>
    %860 = arith.truncf %858 : vector<32x64xf32> to vector<32x64xbf16>
    %cst_257 = arith.constant dense<0.000000e+00> : vector<16x64xf32>
    %861 = tpu.matmul %859, %860, %cst_257 {dimension_numbers = #tpu.dot_dimension_numbers<[1], [0], [0], [1], [0, 0, 1, 1], [], []>} : vector<16x32xbf16>, vector<32x64xbf16>, vector<16x64xf32> -> vector<16x64xf32>
    %862 = vector.extract_strided_slice %848 {offsets = [0, 32], sizes = [1, 64], strides = [1, 1]} : vector<1x96xf32> to vector<1x64xf32>
    %863 = vector.broadcast %862 : vector<1x64xf32> to vector<16x64xf32>
    %864 = arith.addf %861, %863 : vector<16x64xf32>
    %865 = vector.extract_strided_slice %857 {offsets = [0, 0], sizes = [8, 8], strides = [1, 1]} : vector<8x32xf32> to vector<8x8xf32>
    %866 = vector.extract_strided_slice %864 {offsets = [0, 0], sizes = [16, 8], strides = [1, 1]} : vector<16x64xf32> to vector<16x8xf32>
    %867 = vector.extract_strided_slice %864 {offsets = [0, 32], sizes = [16, 8], strides = [1, 1]} : vector<16x64xf32> to vector<16x8xf32>
    %868 = arith.truncf %865 : vector<8x8xf32> to vector<8x8xbf16>
    %869 = arith.truncf %866 : vector<16x8xf32> to vector<16x8xbf16>
    %cst_258 = arith.constant dense<0.000000e+00> : vector<8x16xf32>
    %870 = tpu.matmul %868, %869, %cst_258 {dimension_numbers = #tpu.dot_dimension_numbers<[1], [1], [0], [0], [0, 0, 1, 0], [], []>} : vector<8x8xbf16>, vector<16x8xbf16>, vector<8x16xf32> -> vector<8x16xf32>
    %cst_259 = arith.constant 0.353553385 : f32
    %871 = vector.broadcast %cst_259 : f32 to vector<8x16xf32>
    %872 = arith.mulf %870, %871 : vector<8x16xf32>
    %cst_260 = arith.constant dense<0xFF800000> : vector<8xf32>
    %873 = vector.multi_reduction <maximumf>, %872, %cst_260 [1] : vector<8x16xf32> to vector<8xf32>
    %874 = vector.shape_cast %873 : vector<8xf32> to vector<8x1xf32>
    %875 = vector.broadcast %874 : vector<8x1xf32> to vector<8x16xf32>
    %876 = arith.subf %872, %875 : vector<8x16xf32>
    %877 = math.exp %876 : vector<8x16xf32>
    %cst_261 = arith.constant dense<0.000000e+00> : vector<8xf32>
    %878 = vector.multi_reduction <add>, %877, %cst_261 [1] : vector<8x16xf32> to vector<8xf32>
    %879 = vector.shape_cast %878 : vector<8xf32> to vector<8x1xf32>
    %880 = vector.broadcast %879 : vector<8x1xf32> to vector<8x16xf32>
    %881 = arith.divf %877, %880 : vector<8x16xf32>
    %882 = arith.truncf %881 : vector<8x16xf32> to vector<8x16xbf16>
    %883 = arith.truncf %867 : vector<16x8xf32> to vector<16x8xbf16>
    %cst_262 = arith.constant dense<0.000000e+00> : vector<8x8xf32>
    %884 = tpu.matmul %882, %883, %cst_262 {dimension_numbers = #tpu.dot_dimension_numbers<[1], [0], [0], [1], [0, 0, 1, 1], [], []>} : vector<8x16xbf16>, vector<16x8xbf16>, vector<8x8xf32> -> vector<8x8xf32>
    %885 = vector.extract_strided_slice %849 {offsets = [0, 0], sizes = [8, 32], strides = [1, 1]} : vector<32x32xf32> to vector<8x32xf32>
    %886 = arith.truncf %884 : vector<8x8xf32> to vector<8x8xbf16>
    %887 = arith.truncf %885 : vector<8x32xf32> to vector<8x32xbf16>
    %cst_263 = arith.constant dense<0.000000e+00> : vector<8x32xf32>
    %888 = tpu.matmul %886, %887, %cst_263 {dimension_numbers = #tpu.dot_dimension_numbers<[1], [0], [0], [1], [0, 0, 1, 1], [], []>} : vector<8x8xbf16>, vector<8x32xbf16>, vector<8x32xf32> -> vector<8x32xf32>
    %889 = vector.broadcast %850 : vector<1x32xf32> to vector<8x32xf32>
    %890 = arith.addf %889, %888 : vector<8x32xf32>
    %891 = vector.extract_strided_slice %857 {offsets = [0, 8], sizes = [8, 8], strides = [1, 1]} : vector<8x32xf32> to vector<8x8xf32>
    %892 = vector.extract_strided_slice %864 {offsets = [0, 8], sizes = [16, 8], strides = [1, 1]} : vector<16x64xf32> to vector<16x8xf32>
    %893 = vector.extract_strided_slice %864 {offsets = [0, 40], sizes = [16, 8], strides = [1, 1]} : vector<16x64xf32> to vector<16x8xf32>
    %894 = arith.truncf %891 : vector<8x8xf32> to vector<8x8xbf16>
    %895 = arith.truncf %892 : vector<16x8xf32> to vector<16x8xbf16>
    %cst_264 = arith.constant dense<0.000000e+00> : vector<8x16xf32>
    %896 = tpu.matmul %894, %895, %cst_264 {dimension_numbers = #tpu.dot_dimension_numbers<[1], [1], [0], [0], [0, 0, 1, 0], [], []>} : vector<8x8xbf16>, vector<16x8xbf16>, vector<8x16xf32> -> vector<8x16xf32>
    %cst_265 = arith.constant 0.353553385 : f32
    %897 = vector.broadcast %cst_265 : f32 to vector<8x16xf32>
    %898 = arith.mulf %896, %897 : vector<8x16xf32>
    %cst_266 = arith.constant dense<0xFF800000> : vector<8xf32>
    %899 = vector.multi_reduction <maximumf>, %898, %cst_266 [1] : vector<8x16xf32> to vector<8xf32>
    %900 = vector.shape_cast %899 : vector<8xf32> to vector<8x1xf32>
    %901 = vector.broadcast %900 : vector<8x1xf32> to vector<8x16xf32>
    %902 = arith.subf %898, %901 : vector<8x16xf32>
    %903 = math.exp %902 : vector<8x16xf32>
    %cst_267 = arith.constant dense<0.000000e+00> : vector<8xf32>
    %904 = vector.multi_reduction <add>, %903, %cst_267 [1] : vector<8x16xf32> to vector<8xf32>
    %905 = vector.shape_cast %904 : vector<8xf32> to vector<8x1xf32>
    %906 = vector.broadcast %905 : vector<8x1xf32> to vector<8x16xf32>
    %907 = arith.divf %903, %906 : vector<8x16xf32>
    %908 = arith.truncf %907 : vector<8x16xf32> to vector<8x16xbf16>
    %909 = arith.truncf %893 : vector<16x8xf32> to vector<16x8xbf16>
    %cst_268 = arith.constant dense<0.000000e+00> : vector<8x8xf32>
    %910 = tpu.matmul %908, %909, %cst_268 {dimension_numbers = #tpu.dot_dimension_numbers<[1], [0], [0], [1], [0, 0, 1, 1], [], []>} : vector<8x16xbf16>, vector<16x8xbf16>, vector<8x8xf32> -> vector<8x8xf32>
    %911 = vector.extract_strided_slice %849 {offsets = [8, 0], sizes = [8, 32], strides = [1, 1]} : vector<32x32xf32> to vector<8x32xf32>
    %912 = arith.truncf %910 : vector<8x8xf32> to vector<8x8xbf16>
    %913 = arith.truncf %911 : vector<8x32xf32> to vector<8x32xbf16>
    %cst_269 = arith.constant dense<0.000000e+00> : vector<8x32xf32>
    %914 = tpu.matmul %912, %913, %cst_269 {dimension_numbers = #tpu.dot_dimension_numbers<[1], [0], [0], [1], [0, 0, 1, 1], [], []>} : vector<8x8xbf16>, vector<8x32xbf16>, vector<8x32xf32> -> vector<8x32xf32>
    %915 = arith.addf %890, %914 : vector<8x32xf32>
    %916 = vector.extract_strided_slice %857 {offsets = [0, 16], sizes = [8, 8], strides = [1, 1]} : vector<8x32xf32> to vector<8x8xf32>
    %917 = vector.extract_strided_slice %864 {offsets = [0, 16], sizes = [16, 8], strides = [1, 1]} : vector<16x64xf32> to vector<16x8xf32>
    %918 = vector.extract_strided_slice %864 {offsets = [0, 48], sizes = [16, 8], strides = [1, 1]} : vector<16x64xf32> to vector<16x8xf32>
    %919 = arith.truncf %916 : vector<8x8xf32> to vector<8x8xbf16>
    %920 = arith.truncf %917 : vector<16x8xf32> to vector<16x8xbf16>
    %cst_270 = arith.constant dense<0.000000e+00> : vector<8x16xf32>
    %921 = tpu.matmul %919, %920, %cst_270 {dimension_numbers = #tpu.dot_dimension_numbers<[1], [1], [0], [0], [0, 0, 1, 0], [], []>} : vector<8x8xbf16>, vector<16x8xbf16>, vector<8x16xf32> -> vector<8x16xf32>
    %cst_271 = arith.constant 0.353553385 : f32
    %922 = vector.broadcast %cst_271 : f32 to vector<8x16xf32>
    %923 = arith.mulf %921, %922 : vector<8x16xf32>
    %cst_272 = arith.constant dense<0xFF800000> : vector<8xf32>
    %924 = vector.multi_reduction <maximumf>, %923, %cst_272 [1] : vector<8x16xf32> to vector<8xf32>
    %925 = vector.shape_cast %924 : vector<8xf32> to vector<8x1xf32>
    %926 = vector.broadcast %925 : vector<8x1xf32> to vector<8x16xf32>
    %927 = arith.subf %923, %926 : vector<8x16xf32>
    %928 = math.exp %927 : vector<8x16xf32>
    %cst_273 = arith.constant dense<0.000000e+00> : vector<8xf32>
    %929 = vector.multi_reduction <add>, %928, %cst_273 [1] : vector<8x16xf32> to vector<8xf32>
    %930 = vector.shape_cast %929 : vector<8xf32> to vector<8x1xf32>
    %931 = vector.broadcast %930 : vector<8x1xf32> to vector<8x16xf32>
    %932 = arith.divf %928, %931 : vector<8x16xf32>
    %933 = arith.truncf %932 : vector<8x16xf32> to vector<8x16xbf16>
    %934 = arith.truncf %918 : vector<16x8xf32> to vector<16x8xbf16>
    %cst_274 = arith.constant dense<0.000000e+00> : vector<8x8xf32>
    %935 = tpu.matmul %933, %934, %cst_274 {dimension_numbers = #tpu.dot_dimension_numbers<[1], [0], [0], [1], [0, 0, 1, 1], [], []>} : vector<8x16xbf16>, vector<16x8xbf16>, vector<8x8xf32> -> vector<8x8xf32>
    %936 = vector.extract_strided_slice %849 {offsets = [16, 0], sizes = [8, 32], strides = [1, 1]} : vector<32x32xf32> to vector<8x32xf32>
    %937 = arith.truncf %935 : vector<8x8xf32> to vector<8x8xbf16>
    %938 = arith.truncf %936 : vector<8x32xf32> to vector<8x32xbf16>
    %cst_275 = arith.constant dense<0.000000e+00> : vector<8x32xf32>
    %939 = tpu.matmul %937, %938, %cst_275 {dimension_numbers = #tpu.dot_dimension_numbers<[1], [0], [0], [1], [0, 0, 1, 1], [], []>} : vector<8x8xbf16>, vector<8x32xbf16>, vector<8x32xf32> -> vector<8x32xf32>
    %940 = arith.addf %915, %939 : vector<8x32xf32>
    %941 = vector.extract_strided_slice %857 {offsets = [0, 24], sizes = [8, 8], strides = [1, 1]} : vector<8x32xf32> to vector<8x8xf32>
    %942 = vector.extract_strided_slice %864 {offsets = [0, 24], sizes = [16, 8], strides = [1, 1]} : vector<16x64xf32> to vector<16x8xf32>
    %943 = vector.extract_strided_slice %864 {offsets = [0, 56], sizes = [16, 8], strides = [1, 1]} : vector<16x64xf32> to vector<16x8xf32>
    %944 = arith.truncf %941 : vector<8x8xf32> to vector<8x8xbf16>
    %945 = arith.truncf %942 : vector<16x8xf32> to vector<16x8xbf16>
    %cst_276 = arith.constant dense<0.000000e+00> : vector<8x16xf32>
    %946 = tpu.matmul %944, %945, %cst_276 {dimension_numbers = #tpu.dot_dimension_numbers<[1], [1], [0], [0], [0, 0, 1, 0], [], []>} : vector<8x8xbf16>, vector<16x8xbf16>, vector<8x16xf32> -> vector<8x16xf32>
    %cst_277 = arith.constant 0.353553385 : f32
    %947 = vector.broadcast %cst_277 : f32 to vector<8x16xf32>
    %948 = arith.mulf %946, %947 : vector<8x16xf32>
    %cst_278 = arith.constant dense<0xFF800000> : vector<8xf32>
    %949 = vector.multi_reduction <maximumf>, %948, %cst_278 [1] : vector<8x16xf32> to vector<8xf32>
    %950 = vector.shape_cast %949 : vector<8xf32> to vector<8x1xf32>
    %951 = vector.broadcast %950 : vector<8x1xf32> to vector<8x16xf32>
    %952 = arith.subf %948, %951 : vector<8x16xf32>
    %953 = math.exp %952 : vector<8x16xf32>
    %cst_279 = arith.constant dense<0.000000e+00> : vector<8xf32>
    %954 = vector.multi_reduction <add>, %953, %cst_279 [1] : vector<8x16xf32> to vector<8xf32>
    %955 = vector.shape_cast %954 : vector<8xf32> to vector<8x1xf32>
    %956 = vector.broadcast %955 : vector<8x1xf32> to vector<8x16xf32>
    %957 = arith.divf %953, %956 : vector<8x16xf32>
    %958 = arith.truncf %957 : vector<8x16xf32> to vector<8x16xbf16>
    %959 = arith.truncf %943 : vector<16x8xf32> to vector<16x8xbf16>
    %cst_280 = arith.constant dense<0.000000e+00> : vector<8x8xf32>
    %960 = tpu.matmul %958, %959, %cst_280 {dimension_numbers = #tpu.dot_dimension_numbers<[1], [0], [0], [1], [0, 0, 1, 1], [], []>} : vector<8x16xbf16>, vector<16x8xbf16>, vector<8x8xf32> -> vector<8x8xf32>
    %961 = vector.extract_strided_slice %849 {offsets = [24, 0], sizes = [8, 32], strides = [1, 1]} : vector<32x32xf32> to vector<8x32xf32>
    %962 = arith.truncf %960 : vector<8x8xf32> to vector<8x8xbf16>
    %963 = arith.truncf %961 : vector<8x32xf32> to vector<8x32xbf16>
    %cst_281 = arith.constant dense<0.000000e+00> : vector<8x32xf32>
    %964 = tpu.matmul %962, %963, %cst_281 {dimension_numbers = #tpu.dot_dimension_numbers<[1], [0], [0], [1], [0, 0, 1, 1], [], []>} : vector<8x8xbf16>, vector<8x32xbf16>, vector<8x32xf32> -> vector<8x32xf32>
    %965 = arith.addf %940, %964 : vector<8x32xf32>
    %966 = arith.addf %846, %965 : vector<8x32xf32>
    %c632 = arith.constant 632 : index
    %c0_282 = arith.constant 0 : index
    %967 = vector.load %arg4[%c632, %c0_282] : memref<736x32xf32, #tpu.memory_space<vmem>>, vector<1x32xf32>
    %c640 = arith.constant 640 : index
    %c0_283 = arith.constant 0 : index
    %968 = vector.load %arg4[%c640, %c0_283] : memref<736x32xf32, #tpu.memory_space<vmem>>, vector<1x32xf32>
    %cst_284 = arith.constant dense<0.000000e+00> : vector<8xf32>
    %969 = vector.multi_reduction <add>, %966, %cst_284 [1] : vector<8x32xf32> to vector<8xf32>
    %970 = vector.shape_cast %969 : vector<8xf32> to vector<8x1xf32>
    %cst_285 = arith.constant 3.200000e+01 : f32
    %971 = vector.broadcast %cst_285 : f32 to vector<8x1xf32>
    %972 = arith.divf %970, %971 : vector<8x1xf32>
    %973 = vector.broadcast %972 : vector<8x1xf32> to vector<8x32xf32>
    %974 = arith.subf %966, %973 : vector<8x32xf32>
    %975 = arith.mulf %974, %974 : vector<8x32xf32>
    %cst_286 = arith.constant dense<0.000000e+00> : vector<8xf32>
    %976 = vector.multi_reduction <add>, %975, %cst_286 [1] : vector<8x32xf32> to vector<8xf32>
    %977 = vector.shape_cast %976 : vector<8xf32> to vector<8x1xf32>
    %cst_287 = arith.constant 3.200000e+01 : f32
    %978 = vector.broadcast %cst_287 : f32 to vector<8x1xf32>
    %979 = arith.divf %977, %978 : vector<8x1xf32>
    %cst_288 = arith.constant 9.99999974E-6 : f32
    %980 = vector.broadcast %cst_288 : f32 to vector<8x1xf32>
    %981 = arith.addf %979, %980 : vector<8x1xf32>
    %982 = math.rsqrt %981 : vector<8x1xf32>
    %983 = vector.broadcast %982 : vector<8x1xf32> to vector<8x32xf32>
    %984 = arith.mulf %974, %983 : vector<8x32xf32>
    %985 = vector.broadcast %967 : vector<1x32xf32> to vector<8x32xf32>
    %986 = arith.mulf %984, %985 : vector<8x32xf32>
    %987 = vector.broadcast %968 : vector<1x32xf32> to vector<8x32xf32>
    %988 = arith.addf %986, %987 : vector<8x32xf32>
    %c120_289 = arith.constant 120 : index
    %c0_290 = arith.constant 0 : index
    %989 = vector.load %arg5[%c120_289, %c0_290] : memref<160x64xf32, #tpu.memory_space<vmem>>, vector<32x64xf32>
    %990 = arith.truncf %988 : vector<8x32xf32> to vector<8x32xbf16>
    %991 = arith.truncf %989 : vector<32x64xf32> to vector<32x64xbf16>
    %cst_291 = arith.constant dense<0.000000e+00> : vector<8x64xf32>
    %992 = tpu.matmul %990, %991, %cst_291 {dimension_numbers = #tpu.dot_dimension_numbers<[1], [0], [0], [1], [0, 0, 1, 1], [], []>} : vector<8x32xbf16>, vector<32x64xbf16>, vector<8x64xf32> -> vector<8x64xf32>
    %c152_292 = arith.constant 152 : index
    %c0_293 = arith.constant 0 : index
    %993 = vector.load %arg5[%c152_292, %c0_293] : memref<160x64xf32, #tpu.memory_space<vmem>>, vector<1x64xf32>
    %994 = vector.broadcast %993 : vector<1x64xf32> to vector<8x64xf32>
    %995 = arith.addf %992, %994 : vector<8x64xf32>
    %cst_294 = arith.constant 0.000000e+00 : f32
    %996 = vector.broadcast %cst_294 : f32 to vector<8x64xf32>
    %997 = arith.maximumf %995, %996 : vector<8x64xf32>
    %c648 = arith.constant 648 : index
    %c0_295 = arith.constant 0 : index
    %998 = vector.load %arg4[%c648, %c0_295] : memref<736x32xf32, #tpu.memory_space<vmem>>, vector<64x32xf32>
    %999 = arith.truncf %997 : vector<8x64xf32> to vector<8x64xbf16>
    %1000 = arith.truncf %998 : vector<64x32xf32> to vector<64x32xbf16>
    %cst_296 = arith.constant dense<0.000000e+00> : vector<8x32xf32>
    %1001 = tpu.matmul %999, %1000, %cst_296 {dimension_numbers = #tpu.dot_dimension_numbers<[1], [0], [0], [1], [0, 0, 1, 1], [], []>} : vector<8x64xbf16>, vector<64x32xbf16>, vector<8x32xf32> -> vector<8x32xf32>
    %c712 = arith.constant 712 : index
    %c0_297 = arith.constant 0 : index
    %1002 = vector.load %arg4[%c712, %c0_297] : memref<736x32xf32, #tpu.memory_space<vmem>>, vector<1x32xf32>
    %1003 = vector.broadcast %1002 : vector<1x32xf32> to vector<8x32xf32>
    %1004 = arith.addf %1001, %1003 : vector<8x32xf32>
    %1005 = arith.addf %988, %1004 : vector<8x32xf32>
    %c720 = arith.constant 720 : index
    %c0_298 = arith.constant 0 : index
    %1006 = vector.load %arg4[%c720, %c0_298] : memref<736x32xf32, #tpu.memory_space<vmem>>, vector<1x32xf32>
    %c728 = arith.constant 728 : index
    %c0_299 = arith.constant 0 : index
    %1007 = vector.load %arg4[%c728, %c0_299] : memref<736x32xf32, #tpu.memory_space<vmem>>, vector<1x32xf32>
    %cst_300 = arith.constant dense<0.000000e+00> : vector<8xf32>
    %1008 = vector.multi_reduction <add>, %1005, %cst_300 [1] : vector<8x32xf32> to vector<8xf32>
    %1009 = vector.shape_cast %1008 : vector<8xf32> to vector<8x1xf32>
    %cst_301 = arith.constant 3.200000e+01 : f32
    %1010 = vector.broadcast %cst_301 : f32 to vector<8x1xf32>
    %1011 = arith.divf %1009, %1010 : vector<8x1xf32>
    %1012 = vector.broadcast %1011 : vector<8x1xf32> to vector<8x32xf32>
    %1013 = arith.subf %1005, %1012 : vector<8x32xf32>
    %1014 = arith.mulf %1013, %1013 : vector<8x32xf32>
    %cst_302 = arith.constant dense<0.000000e+00> : vector<8xf32>
    %1015 = vector.multi_reduction <add>, %1014, %cst_302 [1] : vector<8x32xf32> to vector<8xf32>
    %1016 = vector.shape_cast %1015 : vector<8xf32> to vector<8x1xf32>
    %cst_303 = arith.constant 3.200000e+01 : f32
    %1017 = vector.broadcast %cst_303 : f32 to vector<8x1xf32>
    %1018 = arith.divf %1016, %1017 : vector<8x1xf32>
    %cst_304 = arith.constant 9.99999974E-6 : f32
    %1019 = vector.broadcast %cst_304 : f32 to vector<8x1xf32>
    %1020 = arith.addf %1018, %1019 : vector<8x1xf32>
    %1021 = math.rsqrt %1020 : vector<8x1xf32>
    %1022 = vector.broadcast %1021 : vector<8x1xf32> to vector<8x32xf32>
    %1023 = arith.mulf %1013, %1022 : vector<8x32xf32>
    %1024 = vector.broadcast %1006 : vector<1x32xf32> to vector<8x32xf32>
    %1025 = arith.mulf %1023, %1024 : vector<8x32xf32>
    %1026 = vector.broadcast %1007 : vector<1x32xf32> to vector<8x32xf32>
    %1027 = arith.addf %1025, %1026 : vector<8x32xf32>
    %c0_305 = arith.constant 0 : index
    %c0_306 = arith.constant 0 : index
    %1028 = vector.load %arg7[%c0_305, %c0_306] : memref<40x128xf32, #tpu.memory_space<vmem>>, vector<32x128xf32>
    %1029 = arith.truncf %1027 : vector<8x32xf32> to vector<8x32xbf16>
    %1030 = arith.truncf %1028 : vector<32x128xf32> to vector<32x128xbf16>
    %cst_307 = arith.constant dense<0.000000e+00> : vector<8x128xf32>
    %1031 = tpu.matmul %1029, %1030, %cst_307 {dimension_numbers = #tpu.dot_dimension_numbers<[1], [0], [0], [1], [0, 0, 1, 1], [], []>} : vector<8x32xbf16>, vector<32x128xbf16>, vector<8x128xf32> -> vector<8x128xf32>
    %c32_308 = arith.constant 32 : index
    %c0_309 = arith.constant 0 : index
    %1032 = vector.load %arg7[%c32_308, %c0_309] : memref<40x128xf32, #tpu.memory_space<vmem>>, vector<1x128xf32>
    %1033 = vector.broadcast %1032 : vector<1x128xf32> to vector<8x128xf32>
    %1034 = arith.addf %1031, %1033 : vector<8x128xf32>
    %cst_310 = arith.constant dense<0xFF800000> : vector<8xf32>
    %1035 = vector.multi_reduction <maximumf>, %1034, %cst_310 [1] : vector<8x128xf32> to vector<8xf32>
    %1036 = vector.shape_cast %1035 : vector<8xf32> to vector<8x1xf32>
    %1037 = vector.broadcast %1036 : vector<8x1xf32> to vector<8x128xf32>
    %1038 = arith.subf %1034, %1037 : vector<8x128xf32>
    %1039 = math.exp %1038 : vector<8x128xf32>
    %cst_311 = arith.constant dense<0.000000e+00> : vector<8xf32>
    %1040 = vector.multi_reduction <add>, %1039, %cst_311 [1] : vector<8x128xf32> to vector<8xf32>
    %1041 = vector.shape_cast %1040 : vector<8xf32> to vector<8x1xf32>
    %1042 = vector.broadcast %1041 : vector<8x1xf32> to vector<8x128xf32>
    %1043 = arith.divf %1039, %1042 : vector<8x128xf32>
    %c0_312 = arith.constant 0 : index
    %c0_313 = arith.constant 0 : index
    %1044 = vector.load %arg8[%c0_312, %c0_313] : memref<8x128xf32, #tpu.memory_space<vmem>>, vector<8x128xf32>
    tpu.vector_store %arg8[%c0_312, %c0_313], %1043 {strides = array<i32>} : memref<8x128xf32, #tpu.memory_space<vmem>>, vector<8x128xf32>,
    return
  }
}

</mosaic_0001>

<bundles_post_ra>
// kernel: fwd.1
= control target key start
LH: loop header
LB: loop body
LE: loop exit
PB: predicated region body
PF: predicated region fallthrough
CT: control target
= control target key end

     0   :  { %v6826_v0 = vmov 0.0   ;;  %vm6827_vm0 = vmmov 0   ;;  %vm47_vm1 = vcmask 1041408   ;;  %s6828_s23 = smov 96   ;;  %vm43_vm2 = vcmask 162816   ;;  %s6830_s11 = smov 88   ;;  %s8150_s4 = inlined_call_operand.vmem [shape: f32[736,32], index: 4, kind: input, shape index: {}]   ;;  %s8151_s6 = inlined_call_operand.vmem [shape: f32[240,96], index: 6, kind: input, shape index: {}]   ;;  %s8152_s0 = inlined_call_operand.vmem [shape: f32[16,20], index: 0, kind: input, shape index: {}]   ;;  %s8153_s2 = inlined_call_operand.vmem [shape: f32[16,32], index: 2, kind: input, shape index: {}]   ;;  %s8154_s5 = inlined_call_operand.vmem [shape: f32[160,64], index: 5, kind: input, shape index: {}]   ;;  %s8155_s1 = inlined_call_operand.vmem [shape: f32[8,4], index: 1, kind: input, shape index: {}]   ;;  %s8156_s3 = inlined_call_operand.vmem [shape: f32[8,32], index: 3, kind: input, shape index: {}]   ;;  %s8157_s7 = inlined_call_operand.vmem [shape: f32[40,128], index: 7, kind: input, shape index: {}]   ;;  %s8158_s8 = inlined_call_operand.vmem [shape: f32[8,128], index: 8, kind: output, shape index: {}]  }
   0x1   :  { %6027 = vmatprep.subr.bf16.mxu0 %v6826_v0  ;;  %v32_v1 = vld [vmem:[%s8150_s4] sm:$0xff]  ;;  %v33_v2 = vld [vmem:[%s8150_s4 + $0x8] sm:$0xff]  ;;  %v34_v3 = vld [vmem:[%s8150_s4 + $0x10] sm:$0xf]  ;;  %6031 = vmatprep.mubr.msk.bf16.mxu0 %vm6827_vm0, %v6826_v0  ;;  %vm113_vm3 = vcmask 261120   ;;  %vm213_vm4 = vcmask 64512  }
   0x2   :  { %v36_v4 = vpack.c.bf16 %v33_v2, %v32_v1  ;;  %v37_v5 = vpack.c.bf16 %v34_v3, %v34_v3  ;;  %v96_v6 = vld [vmem:[%s8151_s6] sm:$0xff]  ;;  %6035 = vmatprep.subr.bf16.mxu1 %v6826_v0  ;;  %6039 = vmatprep.mubr.msk.bf16.mxu1 %vm6827_vm0, %v6826_v0  ;;  %v97_v7 = vld [vmem:[%s8151_s6 + $0x8] sm:$0xff]  ;;  %v98_v8 = vld [vmem:[%s8151_s6 + $0x10] sm:$0xff]  ;;  %vm263_vm5 = vcmask 130048   ;;  %vm340_vm6 = vcmask 1043456   ;;  %s6831_s12 = smov 112  }
   0x3   :  { %v99_v9 = vld [vmem:[%s8151_s6 + $0x18] sm:$0xff]  ;;  %v30_v10 = vld [vmem:[%s8152_s0] sm:$0xff]  ;;  %v31_v11 = vld [vmem:[%s8152_s0 + $0x8] sm:$0xff]  ;;  %v107_v12 = vpack.c.bf16 %v97_v7, %v96_v6  ;;  %s6832_s15 = smov 104   ;;  %s6833_s16 = smov 80   ;;  %vm1033_vm7 = vcmask 523264  }
   0x4   :  { %6028 = vmatpush3.bf16.msra.mxu0 %v36_v4  ;;  %v49_v13 = vsel %vm47_vm1, %v37_v5, 0  ;;  %v108_v14 = vpack.c.bf16 %v99_v9, %v98_v8  ;;  %v35_v15 = vpack.c.bf16 %v31_v11, %v30_v10  ;;  %v5671_v16 = vld [vmem:[%s8151_s6 + $0x20] ss:$0 sm:$0xff]  ;;  %v5669_v19 = vld [vmem:[%s8150_s4 + $0x18] ss:$0 sm:$0xff]  ;;  %v93_v25 = vld [vmem:[%s8153_s2 + $0x8] sm:$0xff] }
   0x5   :  { %6029 = vmatprep.subr.bf16.mxu0 %v6826_v0  ;;  %160 = vrot.lane.b32.xlu0 %v107_v12, %s6828_s23  ;;  %v92_v23 = vld [vmem:[%s8153_s2] sm:$0xff]  ;;  %s6829_s2 = smov 120   ;;  %s6834_s21 = smov 72   ;;  %vm2147_vm8 = vcmask 31744  }
   0x6   :  { %6036 = vmatpush3.bf16.msra.mxu1 %v107_v12  ;;  %167 = vrot.lane.b32.xlu1 %v5671_v16, %s6828_s23 }
   0x7   :  { %6037 = vmatprep.subr.bf16.mxu1 %v6826_v0 }
   0x8   :  { %6030 = vmatpush3.bf16.msra.mxu0 %v49_v13  ;;  %v101_v13 = vld [vmem:[%s8150_s4 + $0x30] sm:$0xff] }
   0x9   :  { %6043 = vmatprep.subr.bf16.mxu0 %v6826_v0  ;;  %162 = vrot.lane.b32.xlu0 %v108_v14, %s6828_s23 }
   0xa   :  { %6038 = vmatpush3.bf16.msra.mxu1 %v108_v14  ;;  %v336_v14 = vpack.c.bf16 %v101_v13, %v101_v13 }
   0xb   :  { %6032 = vmatmul.mubr.msk.bf16.vlgmr.msra.gmra.mrb[0].mxu0 %vm43_vm2, %v35_v15  ;;  %6051 = vmatprep.subr.bf16.mxu1 %v6826_v0 }
   0xc   :  { %6047 = vmatprep.mubr.msk.bf16.mxu0 %vm6827_vm0, %v6826_v0  ;;  %v342_v15 = vsel %vm340_vm6, %v336_v14, 0 }
  0x77   :  { %v161_v17 = vpop.permute.xlu0 %160 }
  0x78   :  { %6044 = vmatpush3.bf16.msra.mxu0 %v161_v17  ;;  %v168_v31 = vpop.permute.xlu1 %167 }
  0x79   :  { %6045 = vmatprep.subr.bf16.mxu0 %v6826_v0 }
  0x7b   :  { %v163_v18 = vpop.permute.xlu0 %162 }
  0x7c   :  { %6046 = vmatpush3.bf16.msra.mxu0 %v163_v18 }
  0x7d   :  { %6057 = vmatprep.subr.bf16.mxu0 %v6826_v0 }
  0xde   :  { %v85_v20 = vpop.f32.mrb[0].mxu0 }
  0xdf   :  { %v86_v21 = vadd.f32 %v5669_v19, %v85_v20  ;;  %v6033_v22 = vpop.f32.mrb[1].mxu0 }
  0xe0   :  { %v88_v24 = vpop.f32.mrb[2].mxu0 }
  0xe1   :  { %v89_v26 = vadd.f32 %v5669_v19, %v88_v24  ;;  %v6034_v27 = vpop.f32.mrb[3].mxu0  ;;  %v6937_v28 = vadd.f32 %v92_v23, %v86_v21 }
  0xe3   :  { %v6939_v29 = vadd.f32 %v93_v25, %v89_v26 }
  0xe5   :  { %v106_v30 = vpack.c.bf16 %v6939_v29, %v6937_v28 }
  0xe7   :  { %6040 = vmatmul.mubr.msk.bf16.vlgmr.msra.gmra.mrb[0].mxu1 %vm113_vm3, %v106_v30  ;;  %6048 = vmatmul.mubr.msk.bf16.vlgmr.msra.gmra.mrb[4].mxu0 %vm113_vm3, %v106_v30 }
  0xe8   :  { %6053 = vmatprep.mubr.msk.bf16.mxu1 %vm6827_vm0, %v6826_v0  ;;  %6059 = vmatprep.mubr.msk.bf16.mxu0 %vm6827_vm0, %v6826_v0 }
 0x1ba   :  { %v151_v32 = vpop.f32.mrb[0].mxu1  ;;  %v204_v33 = vpop.f32.mrb[4].mxu0 }
 0x1bb   :  { %v6041_v34 = vpop.f32.mrb[1].mxu1  ;;  %v6049_v35 = vpop.f32.mrb[5].mxu0  ;;  %v152_v38 = vadd.f32 %v5671_v16, %v151_v32  ;;  %v205_v39 = vadd.f32 %v204_v33, %v168_v31 }
 0x1bc   :  { %v154_v36 = vpop.f32.mrb[2].mxu1  ;;  %v207_v37 = vpop.f32.mrb[6].mxu0 }
 0x1bd   :  { %v155_v40 = vadd.f32 %v5671_v16, %v154_v36  ;;  %v208_v41 = vadd.f32 %v207_v37, %v168_v31  ;;  %v6042_v42 = vpop.f32.mrb[3].mxu1  ;;  %v6050_v43 = vpop.f32.mrb[7].mxu0 }
 0x1bf   :  { %v6949_v44 = vpack.c.bf16 %v155_v40, %v152_v38  ;;  %v6951_v45 = vpack.c.bf16 %v208_v41, %v205_v39 }
 0x1c1   :  { %v218_v46 = vsel %vm213_vm4, %v6951_v45, 0 }
 0x1c2   :  { %6052 = vmatpush3.bf16.xpose.msra.mxu1 %v218_v46 }
 0x1c3   :  { %6063 = vmatprep.subr.bf16.mxu1 %v6826_v0 }
 0x1c9   :  { %6054 = vmatmul.mubr.msk.bf16.vlgmr.msra.gmra.mrb[4].mxu1 %vm213_vm4, %v6949_v44 }
 0x1ca   :  { %6065 = vmatprep.mubr.msk.bf16.mxu1 %vm6827_vm0, %v6826_v0  ;;  %6064 = vmatpush3.bf16.msra.mxu1 %v342_v15 }
 0x1cb   :  { %6075 = vmatprep.subr.bf16.mxu1 %v6826_v0 }
 0x29c   :  { %v254_v47 = vpop.f32.mrb[4].mxu1 }
 0x29d   :  { %v261_v48 = vmul.f32 0.35355338, %v254_v47  ;;  %v6055_v49 = vpop.f32.mrb[5].mxu1 }
 0x29e   :  { %v257_v50 = vpop.f32.mrb[6].mxu1 }
 0x29f   :  { %v262_v51 = vmul.f32 0.35355338, %v257_v50  ;;  %v6056_v52 = vpop.f32.mrb[7].mxu1  ;;  %v264_v53 = vsel %vm263_vm5, %v261_v48, -inf }
 0x2a0   :  { %265 = vmax.xlane.f32.xlu1 %v264_v53 }
 0x2a1   :  { %v267_v54 = vsel %vm263_vm5, %v262_v51, -inf }
 0x2a2   :  { %268 = vmax.xlane.f32.xlu0 %v267_v54 }
 0x32d   :  { %v266_v55 = vpop.xlane.xlu1 %265 }
 0x32e   :  { %v270_v56 = vsub.f32 %v261_v48, %v266_v55 }
 0x32f   :  { %v269_v57 = vpop.xlane.xlu0 %268 }
 0x330   :  { %v272_v58 = vmul.f32 1.442695, %v270_v56  ;;  %v271_v59 = vsub.f32 %v262_v51, %v269_v57 }
 0x332   :  { %6666 = vpow2.f32 %v272_v58  ;;  %v274_v60 = vmul.f32 1.442695, %v271_v59  ;;  %v102_v58 = vld [vmem:[%s8150_s4 + $0x38] sm:$0xff] }
 0x333   :  { %v516_v59 = vpack.c.bf16 %v102_v58, %v102_v58 }
 0x334   :  { %6668 = vpow2.f32 %v274_v60 }
 0x335   :  { %v521_v60 = vsel %vm340_vm6, %v516_v59, 0 }
 0x33c   :  { %v6667_v61 = vpop.eup %6666 }
 0x33d   :  { %v276_v62 = vsel %vm263_vm5, %v6667_v61, 0.0 }
 0x33e   :  { %v6669_v63 = vpop.eup %6668  ;;  %277 = vadd.xlane.f32.xlu0 %v276_v62 }
 0x33f   :  { %v279_v1 = vsel %vm263_vm5, %v6669_v63, 0.0 }
 0x340   :  { %280 = vadd.xlane.f32.xlu1 %v279_v1 }
 0x351   :  { %394 = vrot.lane.b32.xlu1 %v6951_v45, %s6829_s2 }
 0x354   :  { %288 = vrot.lane.b32.xlu0 %v6951_v45, %s6828_s23 }
 0x355   :  { %392 = vrot.lane.b32.xlu1 %v6949_v44, %s6829_s2 }
 0x3cb   :  { %v278_v2 = vpop.xlane.xlu0 %277 }
 0x3cc   :  { %6670 = vrcp.f32 %v278_v2 }
 0x3cd   :  { %v281_v3 = vpop.xlane.xlu1 %280 }
 0x3ce   :  { %6672 = vrcp.f32 %v281_v3 }
 0x3cf   :  { %v289_v4 = vpop.permute.xlu0 %288 }
 0x3d0   :  { %6058 = vmatpush3.bf16.msra.mxu0 %v289_v4 }
 0x3d1   :  { %6069 = vmatprep.subr.bf16.mxu0 %v6826_v0  ;;  %v395_v9 = vpop.permute.xlu1 %394 }
 0x3d2   :  { %v400_v11 = vsel %vm213_vm4, %v395_v9, 0 }
 0x3d5   :  { %v393_v12 = vpop.permute.xlu1 %392 }
 0x3d6   :  { %v6671_v5 = vpop.eup %6670 }
 0x3d7   :  { %v283_v7 = vmul.f32 %v6671_v5, %v6667_v61 }
 0x3d8   :  { %v6673_v6 = vpop.eup %6672 }
 0x3d9   :  { %v285_v8 = vmul.f32 %v6673_v6, %v6669_v63 }
 0x3db   :  { %v286_v10 = vpack.c.bf16 %v285_v8, %v283_v7 }
 0x3dd   :  { %6060 = vmatmul.mubr.msk.bf16.vlgmr.msra.gmra.mrb[8].mxu0 %vm263_vm5, %v286_v10 }
 0x3de   :  { %6070 = vmatpush3.bf16.xpose.msra.mxu0 %v400_v11  ;;  %6071 = vmatprep.mubr.msk.bf16.mxu0 %vm6827_vm0, %v6826_v0 }
 0x3df   :  { %6081 = vmatprep.subr.bf16.mxu0 %v6826_v0 }
 0x3e5   :  { %6072 = vmatmul.mubr.msk.bf16.vlgmr.msra.gmra.mrb[12].mxu0 %vm213_vm4, %v393_v12 }
 0x3e6   :  { %6083 = vmatprep.mubr.msk.bf16.mxu0 %vm6827_vm0, %v6826_v0  ;;  %6082 = vmatpush3.bf16.msra.mxu0 %v521_v60 }
 0x3e7   :  { %6093 = vmatprep.subr.bf16.mxu0 %v6826_v0 }
 0x4b0   :  { %v328_v16 = vpop.f32.mrb[8].mxu0 }
 0x4b1   :  { %v6061_v17 = vpop.f32.mrb[9].mxu0 }
 0x4b2   :  { %v331_v18 = vpop.f32.mrb[10].mxu0 }
 0x4b3   :  { %v335_v19 = vpack.c.bf16 %v331_v18, %v328_v16  ;;  %v6062_v20 = vpop.f32.mrb[11].mxu0 }
 0x4b5   :  { %6066 = vmatmul.mubr.msk.bf16.vlgmr.msra.gmra.mrb[8].mxu1 %vm213_vm4, %v335_v19 }
 0x4b6   :  { %6077 = vmatprep.mubr.msk.bf16.mxu1 %vm6827_vm0, %v6826_v0 }
 0x4b8   :  { %v436_v21 = vpop.f32.mrb[12].mxu0 }
 0x4b9   :  { %v443_v22 = vmul.f32 0.35355338, %v436_v21  ;;  %v6073_v23 = vpop.f32.mrb[13].mxu0  ;;  %v5677_v21 = vld [vmem:[%s8150_s4 + $0x50] ss:$0 sm:$0xff] }
 0x4ba   :  { %v439_v24 = vpop.f32.mrb[14].mxu0 }
 0x4bb   :  { %v444_v25 = vmul.f32 0.35355338, %v439_v24  ;;  %v6074_v26 = vpop.f32.mrb[15].mxu0  ;;  %v445_v27 = vsel %vm263_vm5, %v443_v22, -inf }
 0x4bc   :  { %446 = vmax.xlane.f32.xlu0 %v445_v27 }
 0x4bd   :  { %v448_v30 = vsel %vm263_vm5, %v444_v25, -inf }
 0x4be   :  { %449 = vmax.xlane.f32.xlu1 %v448_v30 }
 0x4cf   :  { %468 = vrot.lane.b32.xlu1 %v6951_v45, %s6830_s11 }
 0x4d3   :  { %566 = vrot.lane.b32.xlu1 %v6949_v44, %s6831_s12 }
 0x549   :  { %v447_v31 = vpop.xlane.xlu0 %446 }
 0x54a   :  { %v451_v32 = vsub.f32 %v443_v22, %v447_v31 }
 0x54b   :  { %v450_v33 = vpop.xlane.xlu1 %449 }
 0x54c   :  { %v453_v34 = vmul.f32 1.442695, %v451_v32  ;;  %v452_v35 = vsub.f32 %v444_v25, %v450_v33 }
 0x54e   :  { %6674 = vpow2.f32 %v453_v34  ;;  %v455_v36 = vmul.f32 1.442695, %v452_v35 }
 0x54f   :  { %v469_v37 = vpop.permute.xlu1 %468 }
 0x550   :  { %6676 = vpow2.f32 %v455_v36  ;;  %6076 = vmatpush3.bf16.msra.mxu1 %v469_v37 }
 0x551   :  { %6087 = vmatprep.subr.bf16.mxu1 %v6826_v0 }
 0x553   :  { %v567_v57 = vpop.permute.xlu1 %566 }
 0x558   :  { %v6675_v38 = vpop.eup %6674 }
 0x559   :  { %v457_v39 = vsel %vm263_vm5, %v6675_v38, 0.0 }
 0x55a   :  { %v6677_v40 = vpop.eup %6676  ;;  %458 = vadd.xlane.f32.xlu0 %v457_v39 }
 0x55b   :  { %v460_v41 = vsel %vm263_vm5, %v6677_v40, 0.0 }
 0x55e   :  { %461 = vadd.xlane.f32.xlu0 %v460_v41 }
 0x574   :  { %568 = vrot.lane.b32.xlu0 %v6951_v45, %s6831_s12 }
 0x588   :  { %v6998_v42 = vpop.f32.mrb[8].mxu1 }
 0x589   :  { %v6067_v43 = vpop.f32.mrb[9].mxu1  ;;  %v389_v22 = vadd.f32 %v5677_v21, %v6998_v42  ;;  %v103_v42 = vld [vmem:[%s8150_s4 + $0x40] sm:$0xff] }
 0x58a   :  { %v7000_v46 = vpop.f32.mrb[10].mxu1  ;;  %v690_v43 = vpack.c.bf16 %v103_v42, %v103_v42 }
 0x58b   :  { %v6068_v47 = vpop.f32.mrb[11].mxu1  ;;  %v390_v24 = vadd.f32 %v5677_v21, %v7000_v46 }
 0x58c   :  { %v695_v46 = vsel %vm340_vm6, %v690_v43, 0 }
 0x5e7   :  { %v459_v48 = vpop.xlane.xlu0 %458 }
 0x5e8   :  { %6678 = vrcp.f32 %v459_v48 }
 0x5eb   :  { %v462_v49 = vpop.xlane.xlu0 %461 }
 0x5ec   :  { %6680 = vrcp.f32 %v462_v49 }
 0x5ef   :  { %v569_v54 = vpop.permute.xlu0 %568 }
 0x5f0   :  { %v574_v56 = vsel %vm213_vm4, %v569_v54, 0 }
 0x5f2   :  { %v6679_v50 = vpop.eup %6678 }
 0x5f3   :  { %v464_v52 = vmul.f32 %v6679_v50, %v6675_v38 }
 0x5f6   :  { %v6681_v51 = vpop.eup %6680 }
 0x5f7   :  { %v466_v53 = vmul.f32 %v6681_v51, %v6677_v40 }
 0x5f9   :  { %v467_v55 = vpack.c.bf16 %v466_v53, %v464_v52 }
 0x5fb   :  { %6078 = vmatmul.mubr.msk.bf16.vlgmr.msra.gmra.mrb[12].mxu1 %vm263_vm5, %v467_v55 }
 0x5fc   :  { %6088 = vmatpush3.bf16.xpose.msra.mxu1 %v574_v56  ;;  %6089 = vmatprep.mubr.msk.bf16.mxu1 %vm6827_vm0, %v6826_v0 }
 0x5fd   :  { %6099 = vmatprep.subr.bf16.mxu1 %v6826_v0 }
 0x603   :  { %6090 = vmatmul.mubr.msk.bf16.vlgmr.msra.gmra.mrb[16].mxu1 %vm213_vm4, %v567_v57 }
 0x604   :  { %6101 = vmatprep.mubr.msk.bf16.mxu1 %vm6827_vm0, %v6826_v0  ;;  %6100 = vmatpush3.bf16.msra.mxu1 %v695_v46 }
 0x605   :  { %6111 = vmatprep.subr.bf16.mxu1 %v6826_v0 }
 0x6ce   :  { %v508_v61 = vpop.f32.mrb[12].mxu1 }
 0x6cf   :  { %v6079_v62 = vpop.f32.mrb[13].mxu1 }
 0x6d0   :  { %v511_v63 = vpop.f32.mrb[14].mxu1 }
 0x6d1   :  { %v515_v1 = vpack.c.bf16 %v511_v63, %v508_v61  ;;  %v6080_v2 = vpop.f32.mrb[15].mxu1 }
 0x6d3   :  { %6084 = vmatmul.mubr.msk.bf16.vlgmr.msra.gmra.mrb[16].mxu0 %vm213_vm4, %v515_v1 }
 0x6d4   :  { %6095 = vmatprep.mubr.msk.bf16.mxu0 %vm6827_vm0, %v6826_v0 }
 0x6d6   :  { %v610_v3 = vpop.f32.mrb[16].mxu1 }
 0x6d7   :  { %v617_v4 = vmul.f32 0.35355338, %v610_v3  ;;  %v6091_v5 = vpop.f32.mrb[17].mxu1 }
 0x6d8   :  { %v613_v6 = vpop.f32.mrb[18].mxu1 }
 0x6d9   :  { %v618_v7 = vmul.f32 0.35355338, %v613_v6  ;;  %v6092_v8 = vpop.f32.mrb[19].mxu1  ;;  %v619_v9 = vsel %vm263_vm5, %v617_v4, -inf }
 0x6da   :  { %620 = vmax.xlane.f32.xlu1 %v619_v9 }
 0x6db   :  { %v622_v10 = vsel %vm263_vm5, %v618_v7, -inf }
 0x6dc   :  { %623 = vmax.xlane.f32.xlu0 %v622_v10 }
 0x767   :  { %v621_v11 = vpop.xlane.xlu1 %620 }
 0x768   :  { %v625_v12 = vsub.f32 %v617_v4, %v621_v11 }
 0x769   :  { %v624_v13 = vpop.xlane.xlu0 %623 }
 0x76a   :  { %v627_v14 = vmul.f32 1.442695, %v625_v12  ;;  %v626_v15 = vsub.f32 %v618_v7, %v624_v13 }
 0x76c   :  { %6682 = vpow2.f32 %v627_v14  ;;  %v629_v16 = vmul.f32 1.442695, %v626_v15 }
 0x76e   :  { %6684 = vpow2.f32 %v629_v16 }
 0x776   :  { %v6683_v17 = vpop.eup %6682 }
 0x777   :  { %v631_v18 = vsel %vm263_vm5, %v6683_v17, 0.0 }
 0x778   :  { %v6685_v19 = vpop.eup %6684  ;;  %632 = vadd.xlane.f32.xlu0 %v631_v18 }
 0x779   :  { %v634_v20 = vsel %vm263_vm5, %v6685_v19, 0.0 }
 0x77a   :  { %635 = vadd.xlane.f32.xlu1 %v634_v20 }
 0x78b   :  { %742 = vrot.lane.b32.xlu1 %v6951_v45, %s6832_s15 }
 0x78e   :  { %642 = vrot.lane.b32.xlu0 %v6951_v45, %s6833_s16 }
 0x78f   :  { %740 = vrot.lane.b32.xlu1 %v6949_v44, %s6832_s15 }
 0x7a6   :  { %v557_v23 = vpop.f32.mrb[16].mxu0 }
 0x7a7   :  { %v7033_v25 = vadd.f32 %v557_v23, %v389_v22  ;;  %v6085_v26 = vpop.f32.mrb[17].mxu0 }
 0x7a8   :  { %v560_v27 = vpop.f32.mrb[18].mxu0 }
 0x7a9   :  { %v7035_v30 = vadd.f32 %v560_v27, %v390_v24  ;;  %v6086_v31 = vpop.f32.mrb[19].mxu0 }
 0x805   :  { %v633_v32 = vpop.xlane.xlu0 %632 }
 0x806   :  { %6686 = vrcp.f32 %v633_v32 }
 0x807   :  { %v636_v33 = vpop.xlane.xlu1 %635 }
 0x808   :  { %6688 = vrcp.f32 %v636_v33 }
 0x809   :  { %v643_v44 = vpop.permute.xlu0 %642 }
 0x80a   :  { %6094 = vmatpush3.bf16.msra.mxu0 %v643_v44 }
 0x80b   :  { %6105 = vmatprep.subr.bf16.mxu0 %v6826_v0  ;;  %v743_v38 = vpop.permute.xlu1 %742 }
 0x80c   :  { %v748_v40 = vsel %vm213_vm4, %v743_v38, 0 }
 0x80f   :  { %v741_v41 = vpop.permute.xlu1 %740 }
 0x810   :  { %v6687_v34 = vpop.eup %6686 }
 0x811   :  { %v638_v36 = vmul.f32 %v6687_v34, %v6683_v17 }
 0x812   :  { %v6689_v35 = vpop.eup %6688 }
 0x813   :  { %v640_v37 = vmul.f32 %v6689_v35, %v6685_v19 }
 0x815   :  { %v641_v39 = vpack.c.bf16 %v640_v37, %v638_v36 }
 0x817   :  { %6096 = vmatmul.mubr.msk.bf16.vlgmr.msra.gmra.mrb[20].mxu0 %vm263_vm5, %v641_v39 }
 0x818   :  { %6106 = vmatpush3.bf16.xpose.msra.mxu0 %v748_v40  ;;  %6107 = vmatprep.mubr.msk.bf16.mxu0 %vm6827_vm0, %v6826_v0 }
 0x819   :  { %6117 = vmatprep.subr.bf16.mxu0 %v6826_v0 }
 0x81f   :  { %6108 = vmatmul.mubr.msk.bf16.vlgmr.msra.gmra.mrb[24].mxu0 %vm213_vm4, %v741_v41 }
 0x820   :  { %6119 = vmatprep.mubr.msk.bf16.mxu0 %vm6827_vm0, %v6826_v0 }
 0x8ea   :  { %v682_v47 = vpop.f32.mrb[20].mxu0 }
 0x8eb   :  { %v6097_v48 = vpop.f32.mrb[21].mxu0 }
 0x8ec   :  { %v685_v49 = vpop.f32.mrb[22].mxu0 }
 0x8ed   :  { %v689_v50 = vpack.c.bf16 %v685_v49, %v682_v47  ;;  %v6098_v51 = vpop.f32.mrb[23].mxu0 }
 0x8ef   :  { %6102 = vmatmul.mubr.msk.bf16.vlgmr.msra.gmra.mrb[20].mxu1 %vm213_vm4, %v689_v50  ;;  %v958_v50 = vld [vmem:[%s8154_s5 + $0x8] sm:$0xff] }
 0x8f0   :  { %6113 = vmatprep.mubr.msk.bf16.mxu1 %vm6827_vm0, %v6826_v0 }
 0x8f2   :  { %v784_v52 = vpop.f32.mrb[24].mxu0 }
 0x8f3   :  { %v791_v53 = vmul.f32 0.35355338, %v784_v52  ;;  %v6109_v54 = vpop.f32.mrb[25].mxu0  ;;  %v959_v52 = vld [vmem:[%s8154_s5 + $0x10] sm:$0xff] }
 0x8f4   :  { %v787_v55 = vpop.f32.mrb[26].mxu0 }
 0x8f5   :  { %v792_v56 = vmul.f32 0.35355338, %v787_v55  ;;  %v6110_v57 = vpop.f32.mrb[27].mxu0  ;;  %v793_v58 = vsel %vm263_vm5, %v791_v53, -inf  ;;  %v1015_v55 = vld [vmem:[%s8150_s4 + $0x68] sm:$0xff] }
 0x8f6   :  { %794 = vmax.xlane.f32.xlu0 %v793_v58  ;;  %v1017_v57 = vld [vmem:[%s8150_s4 + $0x78] sm:$0xff] }
 0x8f7   :  { %v796_v59 = vsel %vm263_vm5, %v792_v56, -inf }
 0x8f8   :  { %797 = vmax.xlane.f32.xlu1 %v796_v59  ;;  %v1018_v59 = vld [vmem:[%s8150_s4 + $0x80] sm:$0xff] }
 0x909   :  { %816 = vrot.lane.b32.xlu1 %v6951_v45, %s6834_s21  ;;  %v104_v45 = vld [vmem:[%s8150_s4 + $0x48] sm:$0xff] }
 0x90a   :  { %v864_v8 = vpack.c.bf16 %v104_v45, %v104_v45 }
 0x90c   :  { %v869_v9 = vsel %vm340_vm6, %v864_v8, 0 }
 0x90d   :  { %6118 = vmatpush3.bf16.msra.mxu0 %v869_v9  ;;  %v5688_v9 = vld [vmem:[%s8150_s4 + $0x60] ss:$0 sm:$0xff] }
 0x90e   :  { %6131 = vmatprep.subr.bf16.mxu0 %v6826_v0 }
 0x983   :  { %v795_v60 = vpop.xlane.xlu0 %794 }
 0x984   :  { %v799_v61 = vsub.f32 %v791_v53, %v795_v60  ;;  %v960_v53 = vld [vmem:[%s8154_s5 + $0x18] sm:$0xff]  ;;  %v1025_v60 = vpack.c.bf16 %v1018_v59, %v1017_v57 }
 0x985   :  { %v798_v62 = vpop.xlane.xlu1 %797  ;;  %v963_v54 = vpack.c.bf16 %v960_v53, %v959_v52 }
 0x986   :  { %v801_v63 = vmul.f32 1.442695, %v799_v61  ;;  %v800_v1 = vsub.f32 %v792_v56, %v798_v62  ;;  %v1016_v56 = vld [vmem:[%s8150_s4 + $0x70] sm:$0xff] }
 0x987   :  { %v1024_v58 = vpack.c.bf16 %v1016_v56, %v1015_v55 }
 0x988   :  { %6690 = vpow2.f32 %v801_v63  ;;  %v803_v2 = vmul.f32 1.442695, %v800_v1 }
 0x989   :  { %v817_v3 = vpop.permute.xlu1 %816 }
 0x98a   :  { %6692 = vpow2.f32 %v803_v2  ;;  %6112 = vmatpush3.bf16.msra.mxu1 %v817_v3 }
 0x98b   :  { %6123 = vmatprep.subr.bf16.mxu1 %v6826_v0 }
 0x992   :  { %v6691_v4 = vpop.eup %6690 }
 0x993   :  { %v805_v5 = vsel %vm263_vm5, %v6691_v4, 0.0 }
 0x994   :  { %v6693_v6 = vpop.eup %6692  ;;  %806 = vadd.xlane.f32.xlu0 %v805_v5 }
 0x995   :  { %v808_v7 = vsel %vm263_vm5, %v6693_v6, 0.0 }
 0x998   :  { %809 = vadd.xlane.f32.xlu0 %v808_v7 }
 0x9c2   :  { %v731_v10 = vpop.f32.mrb[20].mxu1 }
 0x9c3   :  { %v738_v11 = vadd.f32 %v731_v10, %v7033_v25  ;;  %v6103_v12 = vpop.f32.mrb[21].mxu1 }
 0x9c4   :  { %v734_v13 = vpop.f32.mrb[22].mxu1 }
 0x9c5   :  { %v739_v14 = vadd.f32 %v734_v13, %v7035_v30  ;;  %v6104_v15 = vpop.f32.mrb[23].mxu1 }
 0x9c6   :  { %v1020_v15 = vld [vmem:[%s8150_s4 + $0x90] sm:$0xff] }
 0xa21   :  { %v807_v16 = vpop.xlane.xlu0 %806 }
 0xa22   :  { %6694 = vrcp.f32 %v807_v16 }
 0xa25   :  { %v810_v17 = vpop.xlane.xlu0 %809 }
 0xa26   :  { %6696 = vrcp.f32 %v810_v17  ;;  %v1021_v17 = vld [vmem:[%s8150_s4 + $0x98] sm:$0xff] }
 0xa2c   :  { %v6695_v18 = vpop.eup %6694 }
 0xa2d   :  { %v812_v20 = vmul.f32 %v6695_v18, %v6691_v4  ;;  %v1022_v18 = vld [vmem:[%s8150_s4 + $0xa0] sm:$0xff] }
 0xa30   :  { %v6697_v19 = vpop.eup %6696 }
 0xa31   :  { %v814_v21 = vmul.f32 %v6697_v19, %v6693_v6  ;;  %v5687_v6 = vld [vmem:[%s8150_s4 + $0x58] ss:$0 sm:$0xff]  ;;  %v1027_v19 = vpack.c.bf16 %v1022_v18, %v1021_v17 }
 0xa33   :  { %v815_v22 = vpack.c.bf16 %v814_v21, %v812_v20  ;;  %v5689_v20 = vld [vmem:[%s8154_s5 + $0x20] ss:$0 sm:$0xff] }
 0xa35   :  { %6114 = vmatmul.mubr.msk.bf16.vlgmr.msra.gmra.mrb[24].mxu1 %vm263_vm5, %v815_v22 }
 0xa36   :  { %6127 = vmatprep.mubr.msk.bf16.mxu1 %vm6827_vm0, %v6826_v0 }
 0xb08   :  { %v856_v23 = vpop.f32.mrb[24].mxu1 }
 0xb09   :  { %v6115_v24 = vpop.f32.mrb[25].mxu1 }
 0xb0a   :  { %v859_v25 = vpop.f32.mrb[26].mxu1 }
 0xb0b   :  { %v863_v26 = vpack.c.bf16 %v859_v25, %v856_v23  ;;  %v6116_v27 = vpop.f32.mrb[27].mxu1 }
 0xb0d   :  { %6120 = vmatmul.mubr.msk.bf16.vlgmr.msra.gmra.mrb[28].mxu0 %vm213_vm4, %v863_v26 }
 0xb0e   :  { %6139 = vmatprep.mubr.msk.bf16.mxu0 %vm6827_vm0, %v6826_v0  ;;  %6132 = vmatpush3.bf16.msra.mxu0 %v1024_v58  ;;  %v5695_v58 = vld [vmem:[%s8151_s6 + $0x48] ss:$0 sm:$0xff] }
 0xb0f   :  { %6133 = vmatprep.subr.bf16.mxu0 %v6826_v0 }
 0xb12   :  { %6134 = vmatpush3.bf16.msra.mxu0 %v1025_v60 }
 0xb13   :  { %6135 = vmatprep.subr.bf16.mxu0 %v6826_v0 }
 0xbe0   :  { %v905_v30 = vpop.f32.mrb[28].mxu0 }
 0xbe1   :  { %v912_v31 = vadd.f32 %v905_v30, %v738_v11  ;;  %v6121_v32 = vpop.f32.mrb[29].mxu0 }
 0xbe2   :  { %v908_v33 = vpop.f32.mrb[30].mxu0  ;;  %v5691_v32 = vld [vmem:[%s8150_s4 + $0xa8] ss:$0 sm:$0xff] }
 0xbe3   :  { %v913_v44 = vadd.f32 %v908_v33, %v739_v14  ;;  %v6122_v34 = vpop.f32.mrb[31].mxu0  ;;  %v914_v35 = vadd.f32 %v912_v31, %v6937_v28  ;;  %v1019_v14 = vld [vmem:[%s8150_s4 + $0x88] sm:$0xff] }
 0xbe4   :  { %v1026_v16 = vpack.c.bf16 %v1020_v15, %v1019_v14 }
 0xbe5   :  { %v918_v36 = vsel %vm113_vm3, %v914_v35, 0.0  ;;  %v915_v37 = vadd.f32 %v913_v44, %v6939_v29  ;;  %v957_v29 = vld [vmem:[%s8154_s5] sm:$0xff] }
 0xbe6   :  { %919 = vadd.xlane.f32.xlu0 %v918_v36  ;;  %v962_v51 = vpack.c.bf16 %v958_v50, %v957_v29  ;;  %6136 = vmatpush3.bf16.msra.mxu0 %v1026_v16 }
 0xbe7   :  { %v921_v38 = vsel %vm113_vm3, %v915_v37, 0.0  ;;  %6137 = vmatprep.subr.bf16.mxu0 %v6826_v0 }
 0xbe8   :  { %6124 = vmatpush3.bf16.msra.mxu1 %v962_v51 }
 0xbe9   :  { %6125 = vmatprep.subr.bf16.mxu1 %v6826_v0 }
 0xbea   :  { %922 = vadd.xlane.f32.xlu0 %v921_v38  ;;  %6138 = vmatpush3.bf16.msra.mxu0 %v1027_v19 }
 0xbeb   :  { %6159 = vmatprep.subr.bf16.mxu0 %v6826_v0 }
 0xbec   :  { %6126 = vmatpush3.bf16.msra.mxu1 %v963_v54 }
 0xbed   :  { %6143 = vmatprep.subr.bf16.mxu1 %v6826_v0 }
 0xc73   :  { %v920_v39 = vpop.xlane.xlu0 %919 }
 0xc74   :  { %v925_v40 = vmul.f32 0.03125, %v920_v39 }
 0xc76   :  { %v927_v41 = vsub.f32 %v914_v35, %v925_v40 }
 0xc77   :  { %v923_v42 = vpop.xlane.xlu0 %922 }
 0xc78   :  { %v926_v43 = vmul.f32 0.03125, %v923_v42  ;;  %v929_v46 = vmul.f32 %v927_v41, %v927_v41  ;;  %v1120_v42 = vld [vmem:[%s8151_s6 + $0x28] sm:$0xff] }
 0xc7a   :  { %v928_v47 = vsub.f32 %v915_v37, %v926_v43  ;;  %v931_v48 = vsel %vm113_vm3, %v929_v46, 0.0  ;;  %v1121_v43 = vld [vmem:[%s8151_s6 + $0x30] sm:$0xff] }
 0xc7b   :  { %932 = vadd.xlane.f32.xlu0 %v931_v48  ;;  %v1131_v46 = vpack.c.bf16 %v1121_v43, %v1120_v42  ;;  %v1123_v48 = vld [vmem:[%s8151_s6 + $0x40] sm:$0xff] }
 0xc7c   :  { %v930_v49 = vmul.f32 %v928_v47, %v928_v47 }
 0xc7e   :  { %v934_v28 = vsel %vm113_vm3, %v930_v49, 0.0 }
 0xc7f   :  { %935 = vadd.xlane.f32.xlu0 %v934_v28 }
 0xd08   :  { %v933_v61 = vpop.xlane.xlu0 %932 }
 0xd09   :  { %v937_v62 = vmul.f32 0.03125, %v933_v61 }
 0xd0b   :  { %v939_v63 = vadd.f32 1e-05, %v937_v62 }
 0xd0c   :  { %v936_v1 = vpop.xlane.xlu0 %935 }
 0xd0d   :  { %6698 = vrsqrt.f32 %v939_v63  ;;  %v938_v2 = vmul.f32 0.03125, %v936_v1 }
 0xd0f   :  { %v940_v3 = vadd.f32 1e-05, %v938_v2 }
 0xd11   :  { %6700 = vrsqrt.f32 %v940_v3 }
 0xd17   :  { %v6699_v4 = vpop.eup %6698 }
 0xd18   :  { %v943_v5 = vmul.f32 %v6699_v4, %v927_v41  ;;  %v5693_v4 = vld [vmem:[%s8150_s4 + $0xb0] ss:$0 sm:$0xff] }
 0xd1a   :  { %v949_v45 = vmul.f32 %v5687_v6, %v943_v5 }
 0xd1b   :  { %v6701_v7 = vpop.eup %6700 }
 0xd1c   :  { %v944_v8 = vmul.f32 %v6701_v7, %v928_v47  ;;  %v955_v11 = vadd.f32 %v5688_v9, %v949_v45  ;;  %v1122_v47 = vld [vmem:[%s8151_s6 + $0x38] sm:$0xff] }
 0xd1d   :  { %v1132_v49 = vpack.c.bf16 %v1123_v48, %v1122_v47  ;;  %v5694_v45 = vld [vmem:[%s8150_s4 + $0xb8] ss:$0 sm:$0xff] }
 0xd1e   :  { %v950_v10 = vmul.f32 %v5687_v6, %v944_v8 }
 0xd20   :  { %v956_v12 = vadd.f32 %v5688_v9, %v950_v10 }
 0xd22   :  { %v961_v13 = vpack.c.bf16 %v956_v12, %v955_v11 }
 0xd24   :  { %6128 = vmatmul.mubr.msk.bf16.vlgmr.msra.gmra.mrb[28].mxu1 %vm113_vm3, %v961_v13 }
 0xd25   :  { %6147 = vmatprep.mubr.msk.bf16.mxu1 %vm6827_vm0, %v6826_v0  ;;  %6144 = vmatpush3.bf16.msra.mxu1 %v1131_v46 }
 0xd26   :  { %6145 = vmatprep.subr.bf16.mxu1 %v6826_v0 }
 0xd29   :  { %6146 = vmatpush3.bf16.msra.mxu1 %v1132_v49 }
 0xd2a   :  { %6151 = vmatprep.subr.bf16.mxu1 %v6826_v0 }
 0xdf7   :  { %v1006_v21 = vpop.f32.mrb[28].mxu1 }
 0xdf8   :  { %v1007_v22 = vadd.f32 %v5689_v20, %v1006_v21  ;;  %v6129_v23 = vpop.f32.mrb[29].mxu1 }
 0xdf9   :  { %v1009_v24 = vpop.f32.mrb[30].mxu1 }
 0xdfa   :  { %v1010_v25 = vadd.f32 %v5689_v20, %v1009_v24  ;;  %v6130_v26 = vpop.f32.mrb[31].mxu1  ;;  %v1013_v27 = vmax.f32 %v1007_v22, 0.0 }
 0xdfc   :  { %v1014_v30 = vmax.f32 %v1010_v25, 0.0 }
 0xdfe   :  { %v1023_v31 = vpack.c.bf16 %v1014_v30, %v1013_v27 }
 0xe00   :  { %6140 = vmatmul.mubr.msk.bf16.vlgmr.msra.gmra.mrb[32].mxu0 %vm1033_vm7, %v1023_v31 }
 0xe01   :  { %6161 = vmatprep.mubr.msk.bf16.mxu0 %vm6827_vm0, %v6826_v0 }
 0xed3   :  { %v1071_v33 = vpop.f32.mrb[32].mxu0 }
 0xed4   :  { %v1072_v44 = vadd.f32 %v5691_v32, %v1071_v33  ;;  %v6141_v34 = vpop.f32.mrb[33].mxu0 }
 0xed5   :  { %v1074_v35 = vpop.f32.mrb[34].mxu0 }
 0xed6   :  { %v1075_v36 = vadd.f32 %v5691_v32, %v1074_v35  ;;  %v6142_v37 = vpop.f32.mrb[35].mxu0  ;;  %v1078_v38 = vadd.f32 %v1072_v44, %v955_v11 }
 0xed8   :  { %v1082_v39 = vsel %vm113_vm3, %v1078_v38, 0.0  ;;  %v1079_v40 = vadd.f32 %v1075_v36, %v956_v12 }
 0xed9   :  { %1083 = vadd.xlane.f32.xlu1 %v1082_v39 }
 0xeda   :  { %v1085_v41 = vsel %vm113_vm3, %v1079_v40, 0.0 }
 0xedb   :  { %1086 = vadd.xlane.f32.xlu0 %v1085_v41 }
 0xeea   :  { %1190 = vrot.lane.b32.xlu1 %v5695_v58, %s6828_s23 }
 0xf66   :  { %v1084_v28 = vpop.xlane.xlu1 %1083 }
 0xf67   :  { %v1088_v29 = vmul.f32 0.03125, %v1084_v28 }
 0xf68   :  { %v1087_v50 = vpop.xlane.xlu0 %1086 }
 0xf69   :  { %v1090_v51 = vsub.f32 %v1078_v38, %v1088_v29  ;;  %v1089_v52 = vmul.f32 0.03125, %v1087_v50 }
 0xf6a   :  { %v1191_v21 = vpop.permute.xlu1 %1190 }
 0xf6b   :  { %v1091_v53 = vsub.f32 %v1079_v40, %v1089_v52  ;;  %v1092_v54 = vmul.f32 %v1090_v51, %v1090_v51 }
 0xf6d   :  { %v1094_v55 = vsel %vm113_vm3, %v1092_v54, 0.0  ;;  %v1093_v56 = vmul.f32 %v1091_v53, %v1091_v53 }
 0xf6e   :  { %1095 = vadd.xlane.f32.xlu0 %v1094_v55 }
 0xf6f   :  { %v1097_v57 = vsel %vm113_vm3, %v1093_v56, 0.0 }
 0xf72   :  { %1098 = vadd.xlane.f32.xlu0 %v1097_v57 }
 0xf88   :  { %1183 = vrot.lane.b32.xlu0 %v1131_v46, %s6828_s23 }
 0xf8c   :  { %1185 = vrot.lane.b32.xlu0 %v1132_v49, %s6828_s23 }
 0xffb   :  { %v1096_v59 = vpop.xlane.xlu0 %1095 }
 0xffc   :  { %v1100_v60 = vmul.f32 0.03125, %v1096_v59 }
 0xffe   :  { %v1102_v61 = vadd.f32 1e-05, %v1100_v60  ;;  %v1125_v60 = vld [vmem:[%s8150_s4 + $0xc0] sm:$0xff] }
 0xfff   :  { %v1099_v62 = vpop.xlane.xlu0 %1098 }
0x1000   :  { %6702 = vrsqrt.f32 %v1102_v61  ;;  %v1101_v63 = vmul.f32 0.03125, %v1099_v62  ;;  %v1357_v61 = vpack.c.bf16 %v1125_v60, %v1125_v60 }
0x1002   :  { %v1103_v1 = vadd.f32 1e-05, %v1101_v63  ;;  %v1362_v62 = vsel %vm340_vm6, %v1357_v61, 0 }
0x1003   :  { %v1184_v11 = vpop.permute.xlu0 %1183 }
0x1004   :  { %6704 = vrsqrt.f32 %v1103_v1 }
0x1007   :  { %v1186_v13 = vpop.permute.xlu0 %1185 }
0x100a   :  { %v6703_v2 = vpop.eup %6702 }
0x100b   :  { %v1106_v3 = vmul.f32 %v6703_v2, %v1090_v51 }
0x100d   :  { %v1112_v6 = vmul.f32 %v5693_v4, %v1106_v3 }
0x100e   :  { %v6705_v5 = vpop.eup %6704 }
0x100f   :  { %v1107_v7 = vmul.f32 %v6705_v5, %v1091_v53  ;;  %v7170_v9 = vadd.f32 %v5694_v45, %v1112_v6 }
0x1011   :  { %v1113_v8 = vmul.f32 %v5693_v4, %v1107_v7 }
0x1013   :  { %v7172_v10 = vadd.f32 %v5694_v45, %v1113_v8 }
0x1015   :  { %v1130_v12 = vpack.c.bf16 %v7172_v10, %v7170_v9 }
0x1017   :  { %6148 = vmatmul.mubr.msk.bf16.vlgmr.msra.gmra.mrb[32].mxu1 %vm113_vm3, %v1130_v12 }
0x1018   :  { %6152 = vmatpush3.bf16.msra.mxu1 %v1184_v11  ;;  %6155 = vmatprep.mubr.msk.bf16.mxu1 %vm6827_vm0, %v6826_v0 }
0x1019   :  { %6153 = vmatprep.subr.bf16.mxu1 %v6826_v0 }
0x101c   :  { %6154 = vmatpush3.bf16.msra.mxu1 %v1186_v13 }
0x101d   :  { %6165 = vmatprep.subr.bf16.mxu1 %v6826_v0 }
0x101f   :  { %6156 = vmatmul.mubr.msk.bf16.vlgmr.msra.gmra.mrb[36].mxu1 %vm113_vm3, %v1130_v12 }
0x1020   :  { %6167 = vmatprep.mubr.msk.bf16.mxu1 %vm6827_vm0, %v6826_v0 }
0x10ea   :  { %v1174_v14 = vpop.f32.mrb[32].mxu1 }
0x10eb   :  { %v6149_v15 = vpop.f32.mrb[33].mxu1  ;;  %v1175_v17 = vadd.f32 %v5695_v58, %v1174_v14 }
0x10ec   :  { %v1177_v16 = vpop.f32.mrb[34].mxu1 }
0x10ed   :  { %v1178_v18 = vadd.f32 %v5695_v58, %v1177_v16  ;;  %v6150_v19 = vpop.f32.mrb[35].mxu1 }
0x10ef   :  { %v7184_v20 = vpack.c.bf16 %v1178_v18, %v1175_v17 }
0x10f2   :  { %v1227_v22 = vpop.f32.mrb[36].mxu1 }
0x10f3   :  { %v6157_v23 = vpop.f32.mrb[37].mxu1  ;;  %v1228_v25 = vadd.f32 %v1227_v22, %v1191_v21 }
0x10f4   :  { %v1230_v24 = vpop.f32.mrb[38].mxu1 }
0x10f5   :  { %v1231_v26 = vadd.f32 %v1230_v24, %v1191_v21  ;;  %v6158_v27 = vpop.f32.mrb[39].mxu1 }
0x10f7   :  { %v7186_v30 = vpack.c.bf16 %v1231_v26, %v1228_v25 }
0x10f9   :  { %v1240_v31 = vsel %vm213_vm4, %v7186_v30, 0 }
0x10fa   :  { %6160 = vmatpush3.bf16.xpose.msra.mxu0 %v1240_v31 }
0x10fb   :  { %6171 = vmatprep.subr.bf16.mxu0 %v6826_v0 }
0x1101   :  { %6162 = vmatmul.mubr.msk.bf16.vlgmr.msra.gmra.mrb[36].mxu0 %vm213_vm4, %v7184_v20 }
0x1102   :  { %6173 = vmatprep.mubr.msk.bf16.mxu0 %vm6827_vm0, %v6826_v0  ;;  %6172 = vmatpush3.bf16.msra.mxu0 %v1362_v62 }
0x1103   :  { %6183 = vmatprep.subr.bf16.mxu0 %v6826_v0 }
0x11d4   :  { %v1276_v32 = vpop.f32.mrb[36].mxu0 }
0x11d5   :  { %v1283_v33 = vmul.f32 0.35355338, %v1276_v32  ;;  %v6163_v44 = vpop.f32.mrb[37].mxu0 }
0x11d6   :  { %v1279_v34 = vpop.f32.mrb[38].mxu0 }
0x11d7   :  { %v1284_v35 = vmul.f32 0.35355338, %v1279_v34  ;;  %v6164_v36 = vpop.f32.mrb[39].mxu0  ;;  %v1285_v37 = vsel %vm263_vm5, %v1283_v33, -inf }
0x11d8   :  { %1286 = vmax.xlane.f32.xlu0 %v1285_v37 }
0x11d9   :  { %v1288_v38 = vsel %vm263_vm5, %v1284_v35, -inf }
0x11da   :  { %1289 = vmax.xlane.f32.xlu1 %v1288_v38 }
0x11eb   :  { %1414 = vrot.lane.b32.xlu1 %v7186_v30, %s6829_s2 }
0x1265   :  { %v1287_v39 = vpop.xlane.xlu0 %1286 }
0x1266   :  { %v1291_v40 = vsub.f32 %v1283_v33, %v1287_v39 }
0x1267   :  { %v1290_v41 = vpop.xlane.xlu1 %1289 }
0x1268   :  { %v1293_v42 = vmul.f32 1.442695, %v1291_v40  ;;  %v1292_v43 = vsub.f32 %v1284_v35, %v1290_v41 }
0x126a   :  { %6706 = vpow2.f32 %v1293_v42  ;;  %v1295_v46 = vmul.f32 1.442695, %v1292_v43  ;;  %v1126_v42 = vld [vmem:[%s8150_s4 + $0xc8] sm:$0xff] }
0x126b   :  { %v1415_v56 = vpop.permute.xlu1 %1414  ;;  %v1536_v43 = vpack.c.bf16 %v1126_v42, %v1126_v42 }
0x126c   :  { %6708 = vpow2.f32 %v1295_v46  ;;  %v1420_v58 = vsel %vm213_vm4, %v1415_v56, 0 }
0x126d   :  { %v1541_v46 = vsel %vm340_vm6, %v1536_v43, 0 }
0x1274   :  { %v6707_v47 = vpop.eup %6706 }
0x1275   :  { %v1297_v48 = vsel %vm263_vm5, %v6707_v47, 0.0 }
0x1276   :  { %v6709_v49 = vpop.eup %6708  ;;  %1298 = vadd.xlane.f32.xlu0 %v1297_v48 }
0x1277   :  { %v1300_v28 = vsel %vm263_vm5, %v6709_v49, 0.0 }
0x127a   :  { %1301 = vadd.xlane.f32.xlu0 %v1300_v28 }
0x1290   :  { %1309 = vrot.lane.b32.xlu0 %v7186_v30, %s6828_s23 }
0x1294   :  { %1412 = vrot.lane.b32.xlu0 %v7184_v20, %s6829_s2 }
0x1303   :  { %v1299_v29 = vpop.xlane.xlu0 %1298 }
0x1304   :  { %6710 = vrcp.f32 %v1299_v29 }
0x1307   :  { %v1302_v50 = vpop.xlane.xlu0 %1301 }
0x1308   :  { %6712 = vrcp.f32 %v1302_v50 }
0x130b   :  { %v1310_v51 = vpop.permute.xlu0 %1309 }
0x130c   :  { %6166 = vmatpush3.bf16.msra.mxu1 %v1310_v51 }
0x130d   :  { %6177 = vmatprep.subr.bf16.mxu1 %v6826_v0 }
0x130e   :  { %v6711_v52 = vpop.eup %6710 }
0x130f   :  { %v1304_v54 = vmul.f32 %v6711_v52, %v6707_v47  ;;  %v1413_v59 = vpop.permute.xlu0 %1412 }
0x1312   :  { %v6713_v53 = vpop.eup %6712 }
0x1313   :  { %v1306_v55 = vmul.f32 %v6713_v53, %v6709_v49 }
0x1315   :  { %v1307_v57 = vpack.c.bf16 %v1306_v55, %v1304_v54 }
0x1317   :  { %6168 = vmatmul.mubr.msk.bf16.vlgmr.msra.gmra.mrb[40].mxu1 %vm263_vm5, %v1307_v57 }
0x1318   :  { %6178 = vmatpush3.bf16.xpose.msra.mxu1 %v1420_v58  ;;  %6179 = vmatprep.mubr.msk.bf16.mxu1 %vm6827_vm0, %v6826_v0 }
0x1319   :  { %6189 = vmatprep.subr.bf16.mxu1 %v6826_v0 }
0x131f   :  { %6180 = vmatmul.mubr.msk.bf16.vlgmr.msra.gmra.mrb[44].mxu1 %vm213_vm4, %v1413_v59 }
0x1320   :  { %6191 = vmatprep.mubr.msk.bf16.mxu1 %vm6827_vm0, %v6826_v0  ;;  %6190 = vmatpush3.bf16.msra.mxu1 %v1541_v46 }
0x1321   :  { %6201 = vmatprep.subr.bf16.mxu1 %v6826_v0 }
0x13ea   :  { %v1349_v63 = vpop.f32.mrb[40].mxu1 }
0x13eb   :  { %v6169_v1 = vpop.f32.mrb[41].mxu1 }
0x13ec   :  { %v1352_v2 = vpop.f32.mrb[42].mxu1 }
0x13ed   :  { %v1356_v3 = vpack.c.bf16 %v1352_v2, %v1349_v63  ;;  %v6170_v4 = vpop.f32.mrb[43].mxu1 }
0x13ef   :  { %6174 = vmatmul.mubr.msk.bf16.vlgmr.msra.gmra.mrb[40].mxu0 %vm213_vm4, %v1356_v3 }
0x13f0   :  { %6185 = vmatprep.mubr.msk.bf16.mxu0 %vm6827_vm0, %v6826_v0 }
0x13f2   :  { %v1456_v5 = vpop.f32.mrb[44].mxu1 }
0x13f3   :  { %v1463_v6 = vmul.f32 0.35355338, %v1456_v5  ;;  %v6181_v7 = vpop.f32.mrb[45].mxu1  ;;  %v5701_v5 = vld [vmem:[%s8150_s4 + $0xe0] ss:$0 sm:$0xff] }
0x13f4   :  { %v1459_v45 = vpop.f32.mrb[46].mxu1 }
0x13f5   :  { %v1464_v8 = vmul.f32 0.35355338, %v1459_v45  ;;  %v6182_v11 = vpop.f32.mrb[47].mxu1  ;;  %v1465_v12 = vsel %vm263_vm5, %v1463_v6, -inf }
0x13f6   :  { %1466 = vmax.xlane.f32.xlu0 %v1465_v12 }
0x13f7   :  { %v1468_v13 = vsel %vm263_vm5, %v1464_v8, -inf }
0x13f8   :  { %1469 = vmax.xlane.f32.xlu1 %v1468_v13 }
0x1409   :  { %1488 = vrot.lane.b32.xlu1 %v7186_v30, %s6830_s11 }
0x140d   :  { %1586 = vrot.lane.b32.xlu1 %v7184_v20, %s6831_s12 }
0x1483   :  { %v1467_v14 = vpop.xlane.xlu0 %1466 }
0x1484   :  { %v1471_v15 = vsub.f32 %v1463_v6, %v1467_v14 }
0x1485   :  { %v1470_v16 = vpop.xlane.xlu1 %1469 }
0x1486   :  { %v1473_v17 = vmul.f32 1.442695, %v1471_v15  ;;  %v1472_v18 = vsub.f32 %v1464_v8, %v1470_v16 }
0x1488   :  { %6714 = vpow2.f32 %v1473_v17  ;;  %v1475_v19 = vmul.f32 1.442695, %v1472_v18 }
0x1489   :  { %v1489_v21 = vpop.permute.xlu1 %1488 }
0x148a   :  { %6716 = vpow2.f32 %v1475_v19  ;;  %6184 = vmatpush3.bf16.msra.mxu0 %v1489_v21 }
0x148b   :  { %6195 = vmatprep.subr.bf16.mxu0 %v6826_v0 }
0x148d   :  { %v1587_v41 = vpop.permute.xlu1 %1586 }
0x1492   :  { %v6715_v22 = vpop.eup %6714 }
0x1493   :  { %v1477_v23 = vsel %vm263_vm5, %v6715_v22, 0.0 }
0x1494   :  { %v6717_v24 = vpop.eup %6716  ;;  %1478 = vadd.xlane.f32.xlu0 %v1477_v23 }
0x1495   :  { %v1480_v25 = vsel %vm263_vm5, %v6717_v24, 0.0 }
0x1498   :  { %1481 = vadd.xlane.f32.xlu0 %v1480_v25 }
0x14ae   :  { %1588 = vrot.lane.b32.xlu0 %v7186_v30, %s6831_s12 }
0x14c2   :  { %v1398_v26 = vpop.f32.mrb[40].mxu0 }
0x14c3   :  { %v6175_v27 = vpop.f32.mrb[41].mxu0  ;;  %v1409_v6 = vadd.f32 %v5701_v5, %v1398_v26  ;;  %v1127_v26 = vld [vmem:[%s8150_s4 + $0xd0] sm:$0xff] }
0x14c4   :  { %v1401_v31 = vpop.f32.mrb[42].mxu0  ;;  %v1710_v27 = vpack.c.bf16 %v1127_v26, %v1127_v26 }
0x14c5   :  { %v6176_v32 = vpop.f32.mrb[43].mxu0  ;;  %v1410_v45 = vadd.f32 %v5701_v5, %v1401_v31 }
0x14c6   :  { %v1715_v31 = vsel %vm340_vm6, %v1710_v27, 0 }
0x1521   :  { %v1479_v33 = vpop.xlane.xlu0 %1478 }
0x1522   :  { %6718 = vrcp.f32 %v1479_v33 }
0x1525   :  { %v1482_v44 = vpop.xlane.xlu0 %1481 }
0x1526   :  { %6720 = vrcp.f32 %v1482_v44 }
0x1529   :  { %v1589_v38 = vpop.permute.xlu0 %1588 }
0x152a   :  { %v1594_v40 = vsel %vm213_vm4, %v1589_v38, 0 }
0x152c   :  { %v6719_v34 = vpop.eup %6718 }
0x152d   :  { %v1484_v36 = vmul.f32 %v6719_v34, %v6715_v22 }
0x1530   :  { %v6721_v35 = vpop.eup %6720 }
0x1531   :  { %v1486_v37 = vmul.f32 %v6721_v35, %v6717_v24 }
0x1533   :  { %v1487_v39 = vpack.c.bf16 %v1486_v37, %v1484_v36 }
0x1535   :  { %6186 = vmatmul.mubr.msk.bf16.vlgmr.msra.gmra.mrb[44].mxu0 %vm263_vm5, %v1487_v39 }
0x1536   :  { %6196 = vmatpush3.bf16.xpose.msra.mxu0 %v1594_v40  ;;  %6197 = vmatprep.mubr.msk.bf16.mxu0 %vm6827_vm0, %v6826_v0 }
0x1537   :  { %6207 = vmatprep.subr.bf16.mxu0 %v6826_v0 }
0x153d   :  { %6198 = vmatmul.mubr.msk.bf16.vlgmr.msra.gmra.mrb[48].mxu0 %vm213_vm4, %v1587_v41 }
0x153e   :  { %6209 = vmatprep.mubr.msk.bf16.mxu0 %vm6827_vm0, %v6826_v0  ;;  %6208 = vmatpush3.bf16.msra.mxu0 %v1715_v31 }
0x153f   :  { %6219 = vmatprep.subr.bf16.mxu0 %v6826_v0 }
0x1608   :  { %v1528_v47 = vpop.f32.mrb[44].mxu0 }
0x1609   :  { %v6187_v48 = vpop.f32.mrb[45].mxu0 }
0x160a   :  { %v1531_v49 = vpop.f32.mrb[46].mxu0 }
0x160b   :  { %v1535_v28 = vpack.c.bf16 %v1531_v49, %v1528_v47  ;;  %v6188_v29 = vpop.f32.mrb[47].mxu0 }
0x160d   :  { %6192 = vmatmul.mubr.msk.bf16.vlgmr.msra.gmra.mrb[48].mxu1 %vm213_vm4, %v1535_v28 }
0x160e   :  { %6203 = vmatprep.mubr.msk.bf16.mxu1 %vm6827_vm0, %v6826_v0 }
0x1610   :  { %v1630_v50 = vpop.f32.mrb[48].mxu0 }
0x1611   :  { %v1637_v51 = vmul.f32 0.35355338, %v1630_v50  ;;  %v6199_v52 = vpop.f32.mrb[49].mxu0 }
0x1612   :  { %v1633_v53 = vpop.f32.mrb[50].mxu0 }
0x1613   :  { %v1638_v54 = vmul.f32 0.35355338, %v1633_v53  ;;  %v6200_v55 = vpop.f32.mrb[51].mxu0  ;;  %v1639_v56 = vsel %vm263_vm5, %v1637_v51, -inf }
0x1614   :  { %1640 = vmax.xlane.f32.xlu1 %v1639_v56 }
0x1615   :  { %v1642_v57 = vsel %vm263_vm5, %v1638_v54, -inf }
0x1616   :  { %1643 = vmax.xlane.f32.xlu0 %v1642_v57 }
0x16a1   :  { %v1641_v58 = vpop.xlane.xlu1 %1640 }
0x16a2   :  { %v1645_v59 = vsub.f32 %v1637_v51, %v1641_v58 }
0x16a3   :  { %v1644_v60 = vpop.xlane.xlu0 %1643 }
0x16a4   :  { %v1647_v61 = vmul.f32 1.442695, %v1645_v59  ;;  %v1646_v62 = vsub.f32 %v1638_v54, %v1644_v60 }
0x16a6   :  { %6722 = vpow2.f32 %v1647_v61  ;;  %v1649_v63 = vmul.f32 1.442695, %v1646_v62 }
0x16a8   :  { %6724 = vpow2.f32 %v1649_v63 }
0x16b0   :  { %v6723_v1 = vpop.eup %6722 }
0x16b1   :  { %v1651_v2 = vsel %vm263_vm5, %v6723_v1, 0.0 }
0x16b2   :  { %v6725_v3 = vpop.eup %6724  ;;  %1652 = vadd.xlane.f32.xlu0 %v1651_v2 }
0x16b3   :  { %v1654_v4 = vsel %vm263_vm5, %v6725_v3, 0.0 }
0x16b4   :  { %1655 = vadd.xlane.f32.xlu1 %v1654_v4 }
0x16c5   :  { %1762 = vrot.lane.b32.xlu1 %v7186_v30, %s6832_s15 }
0x16c8   :  { %1662 = vrot.lane.b32.xlu0 %v7186_v30, %s6833_s16 }
0x16c9   :  { %1760 = vrot.lane.b32.xlu1 %v7184_v20, %s6832_s15 }
0x16e0   :  { %v1577_v7 = vpop.f32.mrb[48].mxu1 }
0x16e1   :  { %v7262_v8 = vadd.f32 %v1577_v7, %v1409_v6  ;;  %v6193_v11 = vpop.f32.mrb[49].mxu1 }
0x16e2   :  { %v1580_v12 = vpop.f32.mrb[50].mxu1 }
0x16e3   :  { %v7264_v13 = vadd.f32 %v1580_v12, %v1410_v45  ;;  %v6194_v14 = vpop.f32.mrb[51].mxu1 }
0x173f   :  { %v1653_v15 = vpop.xlane.xlu0 %1652 }
0x1740   :  { %6726 = vrcp.f32 %v1653_v15 }
0x1741   :  { %v1656_v16 = vpop.xlane.xlu1 %1655 }
0x1742   :  { %6728 = vrcp.f32 %v1656_v16 }
0x1743   :  { %v1663_v17 = vpop.permute.xlu0 %1662 }
0x1744   :  { %6202 = vmatpush3.bf16.msra.mxu1 %v1663_v17 }
0x1745   :  { %6213 = vmatprep.subr.bf16.mxu1 %v6826_v0  ;;  %v1763_v22 = vpop.permute.xlu1 %1762 }
0x1746   :  { %v1768_v24 = vsel %vm213_vm4, %v1763_v22, 0 }
0x1749   :  { %v1761_v25 = vpop.permute.xlu1 %1760 }
0x174a   :  { %v6727_v20 = vpop.eup %6726 }
0x174b   :  { %v1658_v19 = vmul.f32 %v6727_v20, %v6723_v1 }
0x174c   :  { %v6729_v18 = vpop.eup %6728 }
0x174d   :  { %v1660_v21 = vmul.f32 %v6729_v18, %v6725_v3 }
0x174f   :  { %v1661_v23 = vpack.c.bf16 %v1660_v21, %v1658_v19 }
0x1751   :  { %6204 = vmatmul.mubr.msk.bf16.vlgmr.msra.gmra.mrb[52].mxu1 %vm263_vm5, %v1661_v23 }
0x1752   :  { %6214 = vmatpush3.bf16.xpose.msra.mxu1 %v1768_v24  ;;  %6215 = vmatprep.mubr.msk.bf16.mxu1 %vm6827_vm0, %v6826_v0 }
0x1753   :  { %6225 = vmatprep.subr.bf16.mxu1 %v6826_v0 }
0x1759   :  { %6216 = vmatmul.mubr.msk.bf16.vlgmr.msra.gmra.mrb[56].mxu1 %vm213_vm4, %v1761_v25 }
0x175a   :  { %6227 = vmatprep.mubr.msk.bf16.mxu1 %vm6827_vm0, %v6826_v0 }
0x1824   :  { %v1702_v32 = vpop.f32.mrb[52].mxu1 }
0x1825   :  { %v6205_v33 = vpop.f32.mrb[53].mxu1 }
0x1826   :  { %v1705_v44 = vpop.f32.mrb[54].mxu1 }
0x1827   :  { %v1709_v34 = vpack.c.bf16 %v1705_v44, %v1702_v32  ;;  %v6206_v35 = vpop.f32.mrb[55].mxu1 }
0x1829   :  { %6210 = vmatmul.mubr.msk.bf16.vlgmr.msra.gmra.mrb[52].mxu0 %vm213_vm4, %v1709_v34  ;;  %v1977_v34 = vld [vmem:[%s8154_s5 + $0x30] sm:$0xff] }
0x182a   :  { %6221 = vmatprep.mubr.msk.bf16.mxu0 %vm6827_vm0, %v6826_v0 }
0x182c   :  { %v1804_v36 = vpop.f32.mrb[56].mxu1 }
0x182d   :  { %v1811_v37 = vmul.f32 0.35355338, %v1804_v36  ;;  %v6217_v38 = vpop.f32.mrb[57].mxu1  ;;  %v1978_v36 = vld [vmem:[%s8154_s5 + $0x38] sm:$0xff] }
0x182e   :  { %v1807_v39 = vpop.f32.mrb[58].mxu1 }
0x182f   :  { %v1812_v40 = vmul.f32 0.35355338, %v1807_v39  ;;  %v6218_v41 = vpop.f32.mrb[59].mxu1  ;;  %v1813_v42 = vsel %vm263_vm5, %v1811_v37, -inf  ;;  %v2196_v39 = vld [vmem:[%s8151_s6 + $0x50] sm:$0xff] }
0x1830   :  { %1814 = vmax.xlane.f32.xlu0 %v1813_v42  ;;  %v2198_v41 = vld [vmem:[%s8151_s6 + $0x60] sm:$0xff] }
0x1831   :  { %v1816_v43 = vsel %vm263_vm5, %v1812_v40, -inf }
0x1832   :  { %1817 = vmax.xlane.f32.xlu1 %v1816_v43  ;;  %v2199_v43 = vld [vmem:[%s8151_s6 + $0x68] sm:$0xff] }
0x1843   :  { %1836 = vrot.lane.b32.xlu1 %v7186_v30, %s6834_s21  ;;  %v1128_v30 = vld [vmem:[%s8150_s4 + $0xd8] sm:$0xff] }
0x1844   :  { %v1884_v55 = vpack.c.bf16 %v1128_v30, %v1128_v30 }
0x1846   :  { %v1889_v56 = vsel %vm340_vm6, %v1884_v55, 0 }
0x1847   :  { %6226 = vmatpush3.bf16.msra.mxu1 %v1889_v56 }
0x1848   :  { %6239 = vmatprep.subr.bf16.mxu1 %v6826_v0 }
0x18bd   :  { %v1815_v46 = vpop.xlane.xlu0 %1814 }
0x18be   :  { %v1819_v47 = vsub.f32 %v1811_v37, %v1815_v46  ;;  %v1979_v37 = vld [vmem:[%s8154_s5 + $0x40] sm:$0xff]  ;;  %v2034_v46 = vld [vmem:[%s8150_s4 + $0xf8] sm:$0xff] }
0x18bf   :  { %v1818_v48 = vpop.xlane.xlu1 %1817  ;;  %v1982_v38 = vpack.c.bf16 %v1979_v37, %v1978_v36 }
0x18c0   :  { %v1821_v49 = vmul.f32 1.442695, %v1819_v47  ;;  %v1820_v28 = vsub.f32 %v1812_v40, %v1818_v48  ;;  %v2197_v40 = vld [vmem:[%s8151_s6 + $0x58] sm:$0xff]  ;;  %v2035_v47 = vld [vmem:[%s8150_s4 + $0x100] sm:$0xff]  ;;  %v2208_v48 = vpack.c.bf16 %v2199_v43, %v2198_v41 }
0x18c1   :  { %v2207_v42 = vpack.c.bf16 %v2197_v40, %v2196_v39 }
0x18c2   :  { %6730 = vpow2.f32 %v1821_v49  ;;  %v1823_v29 = vmul.f32 1.442695, %v1820_v28  ;;  %v2043_v49 = vpack.c.bf16 %v2035_v47, %v2034_v46  ;;  %v2036_v28 = vld [vmem:[%s8150_s4 + $0x108] sm:$0xff] }
0x18c3   :  { %v1837_v50 = vpop.permute.xlu1 %1836  ;;  %2258 = vrot.lane.b32.xlu1 %v2207_v42, %s6828_s23 }
0x18c4   :  { %6732 = vpow2.f32 %v1823_v29  ;;  %6220 = vmatpush3.bf16.msra.mxu0 %v1837_v50  ;;  %v2037_v29 = vld [vmem:[%s8150_s4 + $0x110] sm:$0xff] }
0x18c5   :  { %6231 = vmatprep.subr.bf16.mxu0 %v6826_v0  ;;  %v2044_v50 = vpack.c.bf16 %v2037_v29, %v2036_v28 }
0x18cc   :  { %v6731_v51 = vpop.eup %6730 }
0x18cd   :  { %v1825_v52 = vsel %vm263_vm5, %v6731_v51, 0.0 }
0x18ce   :  { %v6733_v53 = vpop.eup %6732  ;;  %1826 = vadd.xlane.f32.xlu0 %v1825_v52 }
0x18cf   :  { %v1828_v54 = vsel %vm263_vm5, %v6733_v53, 0.0 }
0x18d2   :  { %1829 = vadd.xlane.f32.xlu0 %v1828_v54 }
0x18fc   :  { %v1751_v57 = vpop.f32.mrb[52].mxu0 }
0x18fd   :  { %v1758_v58 = vadd.f32 %v1751_v57, %v7262_v8  ;;  %v6211_v59 = vpop.f32.mrb[53].mxu0 }
0x18fe   :  { %v1754_v60 = vpop.f32.mrb[54].mxu0 }
0x18ff   :  { %v1759_v61 = vadd.f32 %v1754_v60, %v7264_v13  ;;  %v6212_v62 = vpop.f32.mrb[55].mxu0  ;;  %v2139_v60 = vld [vmem:[%s8150_s4 + $0x20] sm:$0xf] }
0x195b   :  { %v1827_v63 = vpop.xlane.xlu0 %1826 }
0x195c   :  { %6734 = vrcp.f32 %v1827_v63  ;;  %v5712_v63 = vld [vmem:[%s8150_s4 + $0xf0] ss:$0 sm:$0xff] }
0x195f   :  { %v1830_v1 = vpop.xlane.xlu0 %1829 }
0x1960   :  { %6736 = vrcp.f32 %v1830_v1 }
0x1966   :  { %v6735_v2 = vpop.eup %6734 }
0x1967   :  { %v1832_v4 = vmul.f32 %v6735_v2, %v6731_v51  ;;  %v2141_v2 = vpack.c.bf16 %v2139_v60, %v2139_v60 }
0x196a   :  { %v6737_v3 = vpop.eup %6736 }
0x196b   :  { %v1834_v5 = vmul.f32 %v6737_v3, %v6733_v53 }
0x196d   :  { %v1835_v6 = vpack.c.bf16 %v1834_v5, %v1832_v4 }
0x196f   :  { %6222 = vmatmul.mubr.msk.bf16.vlgmr.msra.gmra.mrb[56].mxu0 %vm263_vm5, %v1835_v6  ;;  %v2152_v6 = vsel %vm47_vm1, %v2141_v2, 0 }
0x1970   :  { %6235 = vmatprep.mubr.msk.bf16.mxu0 %vm6827_vm0, %v6826_v0 }
0x1a42   :  { %v1876_v7 = vpop.f32.mrb[56].mxu0 }
0x1a43   :  { %v6223_v45 = vpop.f32.mrb[57].mxu0 }
0x1a44   :  { %v1879_v8 = vpop.f32.mrb[58].mxu0 }
0x1a45   :  { %v1883_v11 = vpack.c.bf16 %v1879_v8, %v1876_v7  ;;  %v6224_v12 = vpop.f32.mrb[59].mxu0  ;;  %v2138_v7 = vld [vmem:[%s8155_s1] sm:$0xff]  ;;  %v2038_v8 = vld [vmem:[%s8150_s4 + $0x118] sm:$0xff] }
0x1a46   :  { %v2140_v45 = vpack.c.bf16 %v2138_v7, %v2138_v7 }
0x1a47   :  { %6228 = vmatmul.mubr.msk.bf16.vlgmr.msra.gmra.mrb[60].mxu1 %vm213_vm4, %v1883_v11  ;;  %v2039_v11 = vld [vmem:[%s8150_s4 + $0x120] sm:$0xff] }
0x1a48   :  { %6247 = vmatprep.mubr.msk.bf16.mxu1 %vm6827_vm0, %v6826_v0  ;;  %6240 = vmatpush3.bf16.msra.mxu1 %v2043_v49  ;;  %v2045_v12 = vpack.c.bf16 %v2039_v11, %v2038_v8 }
0x1a49   :  { %6241 = vmatprep.subr.bf16.mxu1 %v6826_v0 }
0x1a4c   :  { %6242 = vmatpush3.bf16.msra.mxu1 %v2044_v50 }
0x1a4d   :  { %6243 = vmatprep.subr.bf16.mxu1 %v6826_v0 }
0x1a50   :  { %6244 = vmatpush3.bf16.msra.mxu1 %v2045_v12 }
0x1a51   :  { %6245 = vmatprep.subr.bf16.mxu1 %v6826_v0 }
0x1b1a   :  { %v1925_v13 = vpop.f32.mrb[60].mxu1 }
0x1b1b   :  { %v1932_v14 = vadd.f32 %v1925_v13, %v1758_v58  ;;  %v6229_v15 = vpop.f32.mrb[61].mxu1  ;;  %v5711_v58 = vld [vmem:[%s8150_s4 + $0xe8] ss:$0 sm:$0xff] }
0x1b1c   :  { %v1928_v16 = vpop.f32.mrb[62].mxu1  ;;  %v2040_v13 = vld [vmem:[%s8150_s4 + $0x128] sm:$0xff] }
0x1b1d   :  { %v1933_v17 = vadd.f32 %v1928_v16, %v1759_v61  ;;  %v6230_v20 = vpop.f32.mrb[63].mxu1  ;;  %v1934_v18 = vadd.f32 %v1932_v14, %v7170_v9  ;;  %v2041_v14 = vld [vmem:[%s8150_s4 + $0x130] sm:$0xff] }
0x1b1e   :  { %v2046_v15 = vpack.c.bf16 %v2041_v14, %v2040_v13  ;;  %v5721_v16 = vld [vmem:[%s8151_s6 + $0x70] ss:$0 sm:$0xff] }
0x1b1f   :  { %v1938_v19 = vsel %vm113_vm3, %v1934_v18, 0.0  ;;  %v1935_v21 = vadd.f32 %v1933_v17, %v7172_v10  ;;  %v1976_v10 = vld [vmem:[%s8154_s5 + $0x28] sm:$0xff]  ;;  %2265 = vrot.lane.b32.xlu1 %v5721_v16, %s6828_s23 }
0x1b20   :  { %1939 = vadd.xlane.f32.xlu0 %v1938_v19  ;;  %v1981_v35 = vpack.c.bf16 %v1977_v34, %v1976_v10  ;;  %6246 = vmatpush3.bf16.msra.mxu1 %v2046_v15  ;;  %v5713_v17 = vld [vmem:[%s8154_s5 + $0x48] ss:$0 sm:$0xff]  ;;  %v2201_v15 = vld [vmem:[%s8150_s4 + $0x150] sm:$0xff] }
0x1b21   :  { %v1941_v22 = vsel %vm113_vm3, %v1935_v21, 0.0  ;;  %6265 = vmatprep.subr.bf16.mxu1 %v6826_v0 }
0x1b22   :  { %6232 = vmatpush3.bf16.msra.mxu0 %v1981_v35 }
0x1b23   :  { %6233 = vmatprep.subr.bf16.mxu0 %v6826_v0 }
0x1b24   :  { %1942 = vadd.xlane.f32.xlu0 %v1941_v22 }
0x1b26   :  { %6234 = vmatpush3.bf16.msra.mxu0 %v1982_v38 }
0x1b27   :  { %6251 = vmatprep.subr.bf16.mxu0 %v6826_v0 }
0x1bad   :  { %v1940_v23 = vpop.xlane.xlu0 %1939 }
0x1bae   :  { %v1944_v24 = vmul.f32 0.03125, %v1940_v23 }
0x1bb0   :  { %v1946_v25 = vsub.f32 %v1934_v18, %v1944_v24 }
0x1bb1   :  { %v1943_v26 = vpop.xlane.xlu0 %1942 }
0x1bb2   :  { %v1945_v27 = vmul.f32 0.03125, %v1943_v26  ;;  %v1948_v31 = vmul.f32 %v1946_v25, %v1946_v25  ;;  %v5719_v26 = vld [vmem:[%s8150_s4 + $0x28] ss:$0 sm:$0xff] }
0x1bb4   :  { %v1947_v32 = vsub.f32 %v1935_v21, %v1945_v27  ;;  %v1950_v33 = vsel %vm113_vm3, %v1948_v31, 0.0  ;;  %v2259_v31 = vpop.permute.xlu1 %2258 }
0x1bb5   :  { %1951 = vadd.xlane.f32.xlu0 %v1950_v33  ;;  %v2194_v33 = vld [vmem:[%s8156_s3] sm:$0xff] }
0x1bb6   :  { %v1949_v44 = vmul.f32 %v1947_v32, %v1947_v32 }
0x1bb8   :  { %v1953_v9 = vsel %vm113_vm3, %v1949_v44, 0.0  ;;  %v2266_v43 = vpop.permute.xlu1 %2265 }
0x1bb9   :  { %1954 = vadd.xlane.f32.xlu0 %v1953_v9 }
0x1bcf   :  { %2260 = vrot.lane.b32.xlu0 %v2208_v48, %s6828_s23 }
0x1c42   :  { %v1952_v51 = vpop.xlane.xlu0 %1951 }
0x1c43   :  { %v1956_v52 = vmul.f32 0.03125, %v1952_v51 }
0x1c45   :  { %v1958_v53 = vadd.f32 1e-05, %v1956_v52 }
0x1c46   :  { %v1955_v54 = vpop.xlane.xlu0 %1954 }
0x1c47   :  { %6738 = vrsqrt.f32 %v1958_v53  ;;  %v1957_v30 = vmul.f32 0.03125, %v1955_v54 }
0x1c49   :  { %v1959_v55 = vadd.f32 1e-05, %v1957_v30 }
0x1c4a   :  { %v2261_v36 = vpop.permute.xlu0 %2260 }
0x1c4b   :  { %6740 = vrsqrt.f32 %v1959_v55 }
0x1c51   :  { %v6739_v56 = vpop.eup %6738 }
0x1c52   :  { %v1962_v57 = vmul.f32 %v6739_v56, %v1946_v25 }
0x1c54   :  { %v1968_v61 = vmul.f32 %v5711_v58, %v1962_v57 }
0x1c55   :  { %v6741_v59 = vpop.eup %6740 }
0x1c56   :  { %v1963_v62 = vmul.f32 %v6741_v59, %v1947_v32  ;;  %v7360_v3 = vadd.f32 %v5712_v63, %v1968_v61 }
0x1c58   :  { %v1969_v1 = vmul.f32 %v5711_v58, %v1963_v62 }
0x1c5a   :  { %v7362_v4 = vadd.f32 %v5712_v63, %v1969_v1 }
0x1c5c   :  { %v1980_v5 = vpack.c.bf16 %v7362_v4, %v7360_v3 }
0x1c5e   :  { %6236 = vmatmul.mubr.msk.bf16.vlgmr.msra.gmra.mrb[60].mxu0 %vm113_vm3, %v1980_v5 }
0x1c5f   :  { %6252 = vmatpush3.bf16.msra.mxu0 %v2152_v6  ;;  %6253 = vmatprep.mubr.msk.bf16.mxu0 %vm6827_vm0, %v6826_v0 }
0x1c60   :  { %6257 = vmatprep.subr.bf16.mxu0 %v6826_v0 }
0x1c66   :  { %6254 = vmatmul.mubr.msk.bf16.vlgmr.msra.gmra.mrb[64].mxu0 %vm2147_vm8, %v2140_v45 }
0x1c67   :  { %6258 = vmatpush3.bf16.msra.mxu0 %v2207_v42  ;;  %6261 = vmatprep.mubr.msk.bf16.mxu0 %vm6827_vm0, %v6826_v0 }
0x1c68   :  { %6259 = vmatprep.subr.bf16.mxu0 %v6826_v0 }
0x1c6b   :  { %6260 = vmatpush3.bf16.msra.mxu0 %v2208_v48 }
0x1c6c   :  { %6273 = vmatprep.subr.bf16.mxu0 %v6826_v0 }
0x1d31   :  { %v2025_v20 = vpop.f32.mrb[60].mxu0 }
0x1d32   :  { %v2026_v18 = vadd.f32 %v5713_v17, %v2025_v20  ;;  %v6237_v19 = vpop.f32.mrb[61].mxu0 }
0x1d33   :  { %v2028_v21 = vpop.f32.mrb[62].mxu0 }
0x1d34   :  { %v2029_v22 = vadd.f32 %v5713_v17, %v2028_v21  ;;  %v6238_v23 = vpop.f32.mrb[63].mxu0  ;;  %v2032_v24 = vmax.f32 %v2026_v18, 0.0 }
0x1d36   :  { %v2033_v25 = vmax.f32 %v2029_v22, 0.0 }
0x1d38   :  { %v2042_v27 = vpack.c.bf16 %v2033_v25, %v2032_v24 }
0x1d39   :  { %v2188_v32 = vpop.f32.mrb[64].mxu0 }
0x1d3a   :  { %v2189_v44 = vadd.f32 %v5719_v26, %v2188_v32  ;;  %6248 = vmatmul.mubr.msk.bf16.vlgmr.msra.gmra.mrb[64].mxu1 %vm1033_vm7, %v2042_v27  ;;  %v6255_v9 = vpop.f32.mrb[65].mxu0 }
0x1d3b   :  { %v2191_v10 = vpop.f32.mrb[66].mxu0  ;;  %6266 = vmatpush3.bf16.msra.mxu1 %v2259_v31  ;;  %6269 = vmatprep.mubr.msk.bf16.mxu1 %vm6827_vm0, %v6826_v0 }
0x1d3c   :  { %v7408_v34 = vadd.f32 %v2194_v33, %v2189_v44  ;;  %v6256_v35 = vpop.f32.mrb[67].mxu0  ;;  %6267 = vmatprep.subr.bf16.mxu1 %v6826_v0 }
0x1d3e   :  { %v2206_v37 = vpack.c.bf16 %v7408_v34, %v7408_v34 }
0x1d3f   :  { %6268 = vmatpush3.bf16.msra.mxu1 %v2261_v36 }
0x1d40   :  { %6262 = vmatmul.mubr.msk.bf16.vlgmr.msra.gmra.mrb[68].mxu0 %vm113_vm3, %v2206_v37  ;;  %6279 = vmatprep.subr.bf16.mxu1 %v6826_v0 }
0x1d41   :  { %6275 = vmatprep.mubr.msk.bf16.mxu0 %vm6827_vm0, %v6826_v0 }
0x1d42   :  { %6270 = vmatmul.mubr.msk.bf16.vlgmr.msra.gmra.mrb[68].mxu1 %vm113_vm3, %v2206_v37 }
0x1d43   :  { %6281 = vmatprep.mubr.msk.bf16.mxu1 %vm6827_vm0, %v6826_v0 }
0x1e0d   :  { %v7420_v38 = vpop.f32.mrb[64].mxu1 }
0x1e0e   :  { %v6249_v39 = vpop.f32.mrb[65].mxu1 }
0x1e0f   :  { %v7422_v40 = vpop.f32.mrb[66].mxu1 }
0x1e10   :  { %v6250_v41 = vpop.f32.mrb[67].mxu1 }
0x1e13   :  { %v2250_v42 = vpop.f32.mrb[68].mxu0 }
0x1e14   :  { %v6263_v46 = vpop.f32.mrb[69].mxu0  ;;  %v2251_v54 = vadd.f32 %v5721_v16, %v2250_v42  ;;  %v2419_v16 = vpack.c.bf16 %v2201_v15, %v2201_v15 }
0x1e15   :  { %v2253_v47 = vpop.f32.mrb[70].mxu0  ;;  %v2302_v48 = vpop.f32.mrb[68].mxu1 }
0x1e16   :  { %v2303_v49 = vadd.f32 %v2302_v48, %v2266_v43  ;;  %v6264_v28 = vpop.f32.mrb[71].mxu0  ;;  %v6271_v29 = vpop.f32.mrb[69].mxu1  ;;  %v7429_v30 = vpack.c.bf16 %v2251_v54, %v2251_v54  ;;  %v2424_v17 = vsel %vm340_vm6, %v2419_v16, 0 }
0x1e17   :  { %v2305_v50 = vpop.f32.mrb[70].mxu1 }
0x1e18   :  { %v7424_v51 = vpack.c.bf16 %v2303_v49, %v2303_v49  ;;  %v6272_v52 = vpop.f32.mrb[71].mxu1  ;;  %v2202_v50 = vld [vmem:[%s8150_s4 + $0x158] sm:$0xff] }
0x1e19   :  { %v2584_v52 = vpack.c.bf16 %v2202_v50, %v2202_v50 }
0x1e1a   :  { %v2314_v53 = vsel %vm213_vm4, %v7424_v51, 0 }
0x1e1b   :  { %6274 = vmatpush3.bf16.xpose.msra.mxu0 %v2314_v53  ;;  %v2589_v53 = vsel %vm340_vm6, %v2584_v52, 0 }
0x1e1c   :  { %6285 = vmatprep.subr.bf16.mxu0 %v6826_v0 }
0x1e22   :  { %6276 = vmatmul.mubr.msk.bf16.vlgmr.msra.gmra.mrb[72].mxu0 %vm213_vm4, %v7429_v30 }
0x1e23   :  { %6287 = vmatprep.mubr.msk.bf16.mxu0 %vm6827_vm0, %v6826_v0  ;;  %6286 = vmatpush3.bf16.msra.mxu0 %v2424_v17 }
0x1e24   :  { %6297 = vmatprep.subr.bf16.mxu0 %v6826_v0 }
0x1ef5   :  { %v2350_v55 = vpop.f32.mrb[72].mxu0 }
0x1ef6   :  { %v2356_v56 = vmul.f32 0.35355338, %v2350_v55  ;;  %v6277_v57 = vpop.f32.mrb[73].mxu0 }
0x1ef7   :  { %v2353_v58 = vpop.f32.mrb[74].mxu0 }
0x1ef8   :  { %v6278_v59 = vpop.f32.mrb[75].mxu0  ;;  %v2357_v60 = vsel %vm213_vm4, %v2356_v56, -inf }
0x1ef9   :  { %2358 = vmax.xlane.f32.xlu1 %v2357_v60 }
0x1f0a   :  { %2370 = vrot.lane.b32.xlu1 %v7424_v51, %s6828_s23 }
0x1f0e   :  { %2472 = vrot.lane.b32.xlu1 %v7429_v30, %s6829_s2 }
0x1f86   :  { %v2359_v61 = vpop.xlane.xlu1 %2358 }
0x1f87   :  { %v2360_v62 = vsub.f32 %v2356_v56, %v2359_v61 }
0x1f89   :  { %v2361_v63 = vmul.f32 1.442695, %v2360_v62 }
0x1f8a   :  { %v2371_v1 = vpop.permute.xlu1 %2370 }
0x1f8b   :  { %6742 = vpow2.f32 %v2361_v63  ;;  %v2376_v2 = vsel %vm340_vm6, %v2371_v1, 0 }
0x1f8c   :  { %6280 = vmatpush3.bf16.msra.mxu1 %v2376_v2 }
0x1f8d   :  { %6291 = vmatprep.subr.bf16.mxu1 %v6826_v0 }
0x1f8e   :  { %v2473_v14 = vpop.permute.xlu1 %2472 }
0x1f95   :  { %v6743_v5 = vpop.eup %6742 }
0x1f96   :  { %v2363_v6 = vsel %vm213_vm4, %v6743_v5, 0.0 }
0x1f97   :  { %2364 = vadd.xlane.f32.xlu0 %v2363_v6 }
0x1fad   :  { %2474 = vrot.lane.b32.xlu0 %v7424_v51, %s6829_s2 }
0x2024   :  { %v2365_v7 = vpop.xlane.xlu0 %2364 }
0x2025   :  { %6744 = vrcp.f32 %v2365_v7 }
0x2028   :  { %v2475_v11 = vpop.permute.xlu0 %2474 }
0x2029   :  { %v2480_v13 = vsel %vm213_vm4, %v2475_v11, 0 }
0x202f   :  { %v6745_v45 = vpop.eup %6744 }
0x2030   :  { %v2367_v8 = vmul.f32 %v6745_v45, %v6743_v5 }
0x2032   :  { %v2368_v12 = vpack.c.bf16 %v2367_v8, %v2367_v8 }
0x2034   :  { %6282 = vmatmul.mubr.msk.bf16.vlgmr.msra.gmra.mrb[72].mxu1 %vm213_vm4, %v2368_v12 }
0x2035   :  { %6292 = vmatpush3.bf16.xpose.msra.mxu1 %v2480_v13  ;;  %6293 = vmatprep.mubr.msk.bf16.mxu1 %vm6827_vm0, %v6826_v0 }
0x2036   :  { %6303 = vmatprep.subr.bf16.mxu1 %v6826_v0 }
0x203c   :  { %6294 = vmatmul.mubr.msk.bf16.vlgmr.msra.gmra.mrb[76].mxu1 %vm213_vm4, %v2473_v14 }
0x203d   :  { %6305 = vmatprep.mubr.msk.bf16.mxu1 %vm6827_vm0, %v6826_v0  ;;  %6304 = vmatpush3.bf16.msra.mxu1 %v2589_v53 }
0x203e   :  { %6315 = vmatprep.subr.bf16.mxu1 %v6826_v0 }
0x2107   :  { %v2412_v20 = vpop.f32.mrb[72].mxu1 }
0x2108   :  { %v2418_v18 = vpack.c.bf16 %v2412_v20, %v2412_v20  ;;  %v6283_v19 = vpop.f32.mrb[73].mxu1 }
0x2109   :  { %v2415_v21 = vpop.f32.mrb[74].mxu1 }
0x210a   :  { %v6284_v22 = vpop.f32.mrb[75].mxu1  ;;  %6288 = vmatmul.mubr.msk.bf16.vlgmr.msra.gmra.mrb[76].mxu0 %vm213_vm4, %v2418_v18 }
0x210b   :  { %6299 = vmatprep.mubr.msk.bf16.mxu0 %vm6827_vm0, %v6826_v0 }
0x210f   :  { %v2516_v23 = vpop.f32.mrb[76].mxu1 }
0x2110   :  { %v2522_v24 = vmul.f32 0.35355338, %v2516_v23  ;;  %v6295_v25 = vpop.f32.mrb[77].mxu1 }
0x2111   :  { %v2519_v26 = vpop.f32.mrb[78].mxu1  ;;  %v2203_v25 = vld [vmem:[%s8150_s4 + $0x160] sm:$0xff] }
0x2112   :  { %v6296_v27 = vpop.f32.mrb[79].mxu1  ;;  %v2523_v31 = vsel %vm213_vm4, %v2522_v24, -inf  ;;  %v2744_v26 = vpack.c.bf16 %v2203_v25, %v2203_v25 }
0x2113   :  { %2524 = vmax.xlane.f32.xlu1 %v2523_v31 }
0x2114   :  { %v2749_v27 = vsel %vm340_vm6, %v2744_v26, 0 }
0x2124   :  { %2535 = vrot.lane.b32.xlu1 %v7424_v51, %s6830_s11 }
0x2128   :  { %2632 = vrot.lane.b32.xlu1 %v7429_v30, %s6831_s12 }
0x21a0   :  { %v2525_v32 = vpop.xlane.xlu1 %2524 }
0x21a1   :  { %v2526_v33 = vsub.f32 %v2522_v24, %v2525_v32 }
0x21a3   :  { %v2527_v44 = vmul.f32 1.442695, %v2526_v33 }
0x21a4   :  { %v2536_v9 = vpop.permute.xlu1 %2535 }
0x21a5   :  { %6746 = vpow2.f32 %v2527_v44  ;;  %v2541_v10 = vsel %vm340_vm6, %v2536_v9, 0 }
0x21a6   :  { %6298 = vmatpush3.bf16.msra.mxu0 %v2541_v10  ;;  %v5715_v10 = vld [vmem:[%s8150_s4 + $0x138] ss:$0 sm:$0xff] }
0x21a7   :  { %6309 = vmatprep.subr.bf16.mxu0 %v6826_v0 }
0x21a8   :  { %v2633_v29 = vpop.permute.xlu1 %2632 }
0x21af   :  { %v6747_v35 = vpop.eup %6746 }
0x21b0   :  { %v2529_v36 = vsel %vm213_vm4, %v6747_v35, 0.0 }
0x21b1   :  { %2530 = vadd.xlane.f32.xlu0 %v2529_v36 }
0x21c7   :  { %2634 = vrot.lane.b32.xlu0 %v7424_v51, %s6831_s12 }
0x21dd   :  { %v2460_v37 = vpop.f32.mrb[76].mxu0 }
0x21de   :  { %v6289_v39 = vpop.f32.mrb[77].mxu0 }
0x21df   :  { %v2463_v41 = vpop.f32.mrb[78].mxu0 }
0x21e0   :  { %v6290_v42 = vpop.f32.mrb[79].mxu0 }
0x21e1   :  { %v2093_v42 = vadd.f32 %v5715_v10, %v7422_v40 }
0x223e   :  { %v2531_v43 = vpop.xlane.xlu0 %2530 }
0x223f   :  { %6748 = vrcp.f32 %v2531_v43 }
0x2242   :  { %v2635_v48 = vpop.permute.xlu0 %2634 }
0x2243   :  { %v2640_v28 = vsel %vm213_vm4, %v2635_v48, 0 }
0x2249   :  { %v6749_v46 = vpop.eup %6748 }
0x224a   :  { %v2533_v47 = vmul.f32 %v6749_v46, %v6747_v35  ;;  %v2090_v35 = vadd.f32 %v5715_v10, %v7420_v38 }
0x224c   :  { %v2534_v49 = vpack.c.bf16 %v2533_v47, %v2533_v47  ;;  %v2096_v47 = vadd.f32 %v2090_v35, %v7360_v3  ;;  %v2204_v3 = vld [vmem:[%s8150_s4 + $0x168] sm:$0xff] }
0x224e   :  { %6300 = vmatmul.mubr.msk.bf16.vlgmr.msra.gmra.mrb[80].mxu0 %vm213_vm4, %v2534_v49  ;;  %v2100_v48 = vsel %vm113_vm3, %v2096_v47, 0.0  ;;  %v2097_v49 = vadd.f32 %v2093_v42, %v7362_v4  ;;  %v2904_v4 = vpack.c.bf16 %v2204_v3, %v2204_v3 }
0x224f   :  { %6310 = vmatpush3.bf16.xpose.msra.mxu0 %v2640_v28  ;;  %6311 = vmatprep.mubr.msk.bf16.mxu0 %vm6827_vm0, %v6826_v0 }
0x2250   :  { %6321 = vmatprep.subr.bf16.mxu0 %v6826_v0  ;;  %v2103_v28 = vsel %vm113_vm3, %v2097_v49, 0.0  ;;  %v2909_v53 = vsel %vm340_vm6, %v2904_v4, 0 }
0x2256   :  { %6312 = vmatmul.mubr.msk.bf16.vlgmr.msra.gmra.mrb[84].mxu0 %vm213_vm4, %v2633_v29 }
0x2257   :  { %6323 = vmatprep.mubr.msk.bf16.mxu0 %vm6827_vm0, %v6826_v0  ;;  %6322 = vmatpush3.bf16.msra.mxu0 %v2749_v27 }
0x2258   :  { %6333 = vmatprep.subr.bf16.mxu0 %v6826_v0 }
0x2321   :  { %v2577_v54 = vpop.f32.mrb[80].mxu0 }
0x2322   :  { %v2583_v55 = vpack.c.bf16 %v2577_v54, %v2577_v54  ;;  %v6301_v56 = vpop.f32.mrb[81].mxu0 }
0x2323   :  { %v2580_v57 = vpop.f32.mrb[82].mxu0 }
0x2324   :  { %v6302_v58 = vpop.f32.mrb[83].mxu0  ;;  %6306 = vmatmul.mubr.msk.bf16.vlgmr.msra.gmra.mrb[80].mxu1 %vm213_vm4, %v2583_v55 }
0x2325   :  { %6317 = vmatprep.mubr.msk.bf16.mxu1 %vm6827_vm0, %v6826_v0 }
0x2329   :  { %v2676_v59 = vpop.f32.mrb[84].mxu0 }
0x232a   :  { %v2682_v60 = vmul.f32 0.35355338, %v2676_v59  ;;  %v6313_v61 = vpop.f32.mrb[85].mxu0 }
0x232b   :  { %v2679_v62 = vpop.f32.mrb[86].mxu0 }
0x232c   :  { %v6314_v63 = vpop.f32.mrb[87].mxu0  ;;  %v2683_v1 = vsel %vm213_vm4, %v2682_v60, -inf }
0x232d   :  { %2684 = vmax.xlane.f32.xlu1 %v2683_v1 }
0x233e   :  { %2695 = vrot.lane.b32.xlu1 %v7424_v51, %s6833_s16 }
0x2342   :  { %2792 = vrot.lane.b32.xlu1 %v7429_v30, %s6832_s15  ;;  %v5727_v30 = vld [vmem:[%s8150_s4 + $0x170] ss:$0 sm:$0xff] }
0x2343   :  { %v2470_v12 = vadd.f32 %v5727_v30, %v2460_v37  ;;  %v2980_v30 = vld [vmem:[%s8151_s6 + $0x88] sm:$0xff] }
0x23ba   :  { %v2685_v2 = vpop.xlane.xlu1 %2684 }
0x23bb   :  { %v2686_v5 = vsub.f32 %v2682_v60, %v2685_v2 }
0x23bd   :  { %v2687_v6 = vmul.f32 1.442695, %v2686_v5 }
0x23be   :  { %v2696_v7 = vpop.permute.xlu1 %2695 }
0x23bf   :  { %6750 = vpow2.f32 %v2687_v6  ;;  %v2701_v45 = vsel %vm340_vm6, %v2696_v7, 0 }
0x23c0   :  { %6316 = vmatpush3.bf16.msra.mxu1 %v2701_v45  ;;  %v2978_v45 = vld [vmem:[%s8151_s6 + $0x78] sm:$0xff] }
0x23c1   :  { %6327 = vmatprep.subr.bf16.mxu1 %v6826_v0 }
0x23c2   :  { %v2793_v24 = vpop.permute.xlu1 %2792 }
0x23c9   :  { %v6751_v8 = vpop.eup %6750 }
0x23ca   :  { %v2689_v11 = vsel %vm213_vm4, %v6751_v8, 0.0 }
0x23cb   :  { %2690 = vadd.xlane.f32.xlu0 %v2689_v11 }
0x23e1   :  { %2794 = vrot.lane.b32.xlu0 %v7424_v51, %s6832_s15 }
0x23f7   :  { %v2625_v13 = vpop.f32.mrb[80].mxu1 }
0x23f8   :  { %v2631_v14 = vadd.f32 %v2625_v13, %v2470_v12  ;;  %v6307_v15 = vpop.f32.mrb[81].mxu1  ;;  %v2981_v12 = vld [vmem:[%s8151_s6 + $0x90] sm:$0xff] }
0x23f9   :  { %v2628_v16 = vpop.f32.mrb[82].mxu1  ;;  %v2990_v13 = vpack.c.bf16 %v2981_v12, %v2980_v30 }
0x23fa   :  { %v6308_v17 = vpop.f32.mrb[83].mxu1 }
0x2458   :  { %v2691_v20 = vpop.xlane.xlu0 %2690 }
0x2459   :  { %6752 = vrcp.f32 %v2691_v20 }
0x245c   :  { %v2795_v21 = vpop.permute.xlu0 %2794 }
0x245d   :  { %v2800_v23 = vsel %vm213_vm4, %v2795_v21, 0 }
0x2463   :  { %v6753_v18 = vpop.eup %6752 }
0x2464   :  { %v2693_v19 = vmul.f32 %v6753_v18, %v6751_v8  ;;  %v2979_v8 = vld [vmem:[%s8151_s6 + $0x80] sm:$0xff] }
0x2465   :  { %v2989_v11 = vpack.c.bf16 %v2979_v8, %v2978_v45 }
0x2466   :  { %v2694_v22 = vpack.c.bf16 %v2693_v19, %v2693_v19 }
0x2468   :  { %6318 = vmatmul.mubr.msk.bf16.vlgmr.msra.gmra.mrb[84].mxu1 %vm213_vm4, %v2694_v22 }
0x2469   :  { %6328 = vmatpush3.bf16.xpose.msra.mxu1 %v2800_v23  ;;  %6329 = vmatprep.mubr.msk.bf16.mxu1 %vm6827_vm0, %v6826_v0 }
0x246a   :  { %6339 = vmatprep.subr.bf16.mxu1 %v6826_v0 }
0x2470   :  { %6330 = vmatmul.mubr.msk.bf16.vlgmr.msra.gmra.mrb[88].mxu1 %vm213_vm4, %v2793_v24 }
0x2471   :  { %6341 = vmatprep.mubr.msk.bf16.mxu1 %vm6827_vm0, %v6826_v0  ;;  %6340 = vmatpush3.bf16.msra.mxu1 %v2909_v53 }
0x2472   :  { %6353 = vmatprep.subr.bf16.mxu1 %v6826_v0 }
0x253b   :  { %v2737_v31 = vpop.f32.mrb[84].mxu1 }
0x253c   :  { %v2743_v32 = vpack.c.bf16 %v2737_v31, %v2737_v31  ;;  %v6319_v33 = vpop.f32.mrb[85].mxu1 }
0x253d   :  { %v2740_v44 = vpop.f32.mrb[86].mxu1 }
0x253e   :  { %v6320_v9 = vpop.f32.mrb[87].mxu1  ;;  %6324 = vmatmul.mubr.msk.bf16.vlgmr.msra.gmra.mrb[88].mxu0 %vm213_vm4, %v2743_v32 }
0x253f   :  { %6335 = vmatprep.mubr.msk.bf16.mxu0 %vm6827_vm0, %v6826_v0 }
0x2543   :  { %v2836_v36 = vpop.f32.mrb[88].mxu1 }
0x2544   :  { %v2842_v37 = vmul.f32 0.35355338, %v2836_v36  ;;  %v6331_v39 = vpop.f32.mrb[89].mxu1 }
0x2545   :  { %v2839_v41 = vpop.f32.mrb[90].mxu1 }
0x2546   :  { %v6332_v43 = vpop.f32.mrb[91].mxu1  ;;  %v2843_v46 = vsel %vm213_vm4, %v2842_v37, -inf }
0x2547   :  { %2844 = vmax.xlane.f32.xlu1 %v2843_v46 }
0x254b   :  { %2101 = vadd.xlane.f32.xlu1 %v2100_v48 }
0x254f   :  { %2104 = vadd.xlane.f32.xlu1 %v2103_v28 }
0x25d4   :  { %v2845_v38 = vpop.xlane.xlu1 %2844 }
0x25d5   :  { %v2846_v29 = vsub.f32 %v2842_v37, %v2845_v38  ;;  %v5717_v38 = vld [vmem:[%s8150_s4 + $0x140] ss:$0 sm:$0xff] }
0x25d7   :  { %v2847_v50 = vmul.f32 1.442695, %v2846_v29 }
0x25d9   :  { %6754 = vpow2.f32 %v2847_v50 }
0x25e3   :  { %v6755_v52 = vpop.eup %6754 }
0x25e4   :  { %v2849_v40 = vsel %vm213_vm4, %v6755_v52, 0.0 }
0x25e5   :  { %2850 = vadd.xlane.f32.xlu0 %v2849_v40  ;;  %v5718_v40 = vld [vmem:[%s8150_s4 + $0x148] ss:$0 sm:$0xff] }
0x25fb   :  { %2855 = vrot.lane.b32.xlu0 %v7424_v51, %s6834_s21 }
0x2611   :  { %v2785_v54 = vpop.f32.mrb[88].mxu0 }
0x2612   :  { %v2791_v55 = vadd.f32 %v2785_v54, %v2631_v14  ;;  %v6325_v56 = vpop.f32.mrb[89].mxu0  ;;  %v2102_v14 = vpop.xlane.xlu1 %2101 }
0x2613   :  { %v2788_v57 = vpop.f32.mrb[90].mxu0  ;;  %v2106_v15 = vmul.f32 0.03125, %v2102_v14 }
0x2614   :  { %v6326_v58 = vpop.f32.mrb[91].mxu0 }
0x2615   :  { %v2108_v20 = vsub.f32 %v2096_v47, %v2106_v15 }
0x2616   :  { %v2105_v16 = vpop.xlane.xlu1 %2104 }
0x2617   :  { %v2107_v18 = vmul.f32 0.03125, %v2105_v16  ;;  %v2110_v27 = vmul.f32 %v2108_v20, %v2108_v20 }
0x2619   :  { %v2109_v25 = vsub.f32 %v2097_v49, %v2107_v18  ;;  %v2112_v31 = vsel %vm113_vm3, %v2110_v27, 0.0 }
0x261b   :  { %v2111_v32 = vmul.f32 %v2109_v25, %v2109_v25 }
0x261d   :  { %v2115_v33 = vsel %vm113_vm3, %v2111_v32, 0.0 }
0x2672   :  { %v2851_v59 = vpop.xlane.xlu0 %2850 }
0x2673   :  { %6756 = vrcp.f32 %v2851_v59  ;;  %v5737_v59 = vld [vmem:[%s8150_s4 + $0x178] ss:$0 sm:$0xff] }
0x2676   :  { %v2856_v60 = vpop.permute.xlu0 %2855 }
0x2677   :  { %v2861_v51 = vsel %vm340_vm6, %v2856_v60, 0 }
0x2678   :  { %6334 = vmatpush3.bf16.msra.mxu0 %v2861_v51  ;;  %v5738_v51 = vld [vmem:[%s8150_s4 + $0x180] ss:$0 sm:$0xff] }
0x2679   :  { %6345 = vmatprep.subr.bf16.mxu0 %v6826_v0 }
0x267d   :  { %v6757_v61 = vpop.eup %6756 }
0x267e   :  { %v2853_v62 = vmul.f32 %v6757_v61, %v6755_v52 }
0x2680   :  { %v2854_v63 = vpack.c.bf16 %v2853_v62, %v2853_v62 }
0x2682   :  { %6336 = vmatmul.mubr.msk.bf16.vlgmr.msra.gmra.mrb[92].mxu0 %vm213_vm4, %v2854_v63 }
0x2683   :  { %6349 = vmatprep.mubr.msk.bf16.mxu0 %vm6827_vm0, %v6826_v0  ;;  %6346 = vmatpush3.bf16.msra.mxu0 %v2989_v11 }
0x2684   :  { %6347 = vmatprep.subr.bf16.mxu0 %v6826_v0 }
0x2687   :  { %6348 = vmatpush3.bf16.msra.mxu0 %v2990_v13 }
0x2688   :  { %6361 = vmatprep.subr.bf16.mxu0 %v6826_v0 }
0x2755   :  { %v2897_v1 = vpop.f32.mrb[92].mxu0 }
0x2756   :  { %v2903_v2 = vpack.c.bf16 %v2897_v1, %v2897_v1  ;;  %v6337_v5 = vpop.f32.mrb[93].mxu0 }
0x2757   :  { %v2900_v6 = vpop.f32.mrb[94].mxu0 }
0x2758   :  { %v6338_v7 = vpop.f32.mrb[95].mxu0  ;;  %6342 = vmatmul.mubr.msk.bf16.vlgmr.msra.gmra.mrb[92].mxu1 %vm213_vm4, %v2903_v2 }
0x2759   :  { %6357 = vmatprep.mubr.msk.bf16.mxu1 %vm6827_vm0, %v6826_v0 }
0x282b   :  { %v2945_v17 = vpop.f32.mrb[92].mxu1 }
0x282c   :  { %v2951_v19 = vadd.f32 %v2945_v17, %v2791_v55  ;;  %v6343_v21 = vpop.f32.mrb[93].mxu1 }
0x282d   :  { %v2948_v22 = vpop.f32.mrb[94].mxu1 }
0x282e   :  { %v6344_v23 = vpop.f32.mrb[95].mxu1  ;;  %v2952_v24 = vadd.f32 %v2951_v19, %v7408_v34  ;;  %v7565_v34 = vld [vmem:[%s8151_s6 + $0x98] ss:$0 sm:$0xff] }
0x2830   :  { %v2955_v26 = vsel %vm113_vm3, %v2952_v24, 0.0 }
0x2831   :  { %2956 = vadd.xlane.f32.xlu1 %v2955_v26 }
0x2835   :  { %2113 = vadd.xlane.f32.xlu1 %v2112_v31 }
0x2839   :  { %2116 = vadd.xlane.f32.xlu1 %v2115_v33 }
0x284a   :  { %3041 = vrot.lane.b32.xlu1 %v2989_v11, %s6828_s23 }
0x284e   :  { %3043 = vrot.lane.b32.xlu1 %v2990_v13, %s6828_s23 }
0x2852   :  { %3048 = vrot.lane.b32.xlu1 %v7565_v34, %s6828_s23 }
0x28be   :  { %v2957_v44 = vpop.xlane.xlu1 %2956 }
0x28bf   :  { %v2958_v9 = vmul.f32 0.03125, %v2957_v44 }
0x28c1   :  { %v2959_v10 = vsub.f32 %v2952_v24, %v2958_v9 }
0x28c2   :  { %v2114_v35 = vpop.xlane.xlu1 %2113 }
0x28c3   :  { %v2118_v36 = vmul.f32 0.03125, %v2114_v35  ;;  %v2960_v37 = vmul.f32 %v2959_v10, %v2959_v10 }
0x28c5   :  { %v2120_v39 = vadd.f32 1e-05, %v2118_v36  ;;  %v2961_v41 = vsel %vm113_vm3, %v2960_v37, 0.0  ;;  %v2983_v37 = vld [vmem:[%s8150_s4 + $0x188] sm:$0xff] }
0x28c6   :  { %2962 = vadd.xlane.f32.xlu0 %v2961_v41  ;;  %v2117_v42 = vpop.xlane.xlu1 %2116 }
0x28c7   :  { %6758 = vrsqrt.f32 %v2120_v39  ;;  %v2119_v43 = vmul.f32 0.03125, %v2117_v42  ;;  %v3204_v39 = vpack.c.bf16 %v2983_v37, %v2983_v37 }
0x28c9   :  { %v2121_v46 = vadd.f32 1e-05, %v2119_v43  ;;  %v3209_v41 = vsel %vm340_vm6, %v3204_v39, 0 }
0x28ca   :  { %v3042_v47 = vpop.permute.xlu1 %3041 }
0x28cb   :  { %6760 = vrsqrt.f32 %v2121_v46  ;;  %6354 = vmatpush3.bf16.msra.mxu1 %v3042_v47 }
0x28cc   :  { %6355 = vmatprep.subr.bf16.mxu1 %v6826_v0 }
0x28ce   :  { %v3044_v48 = vpop.permute.xlu1 %3043 }
0x28cf   :  { %6356 = vmatpush3.bf16.msra.mxu1 %v3044_v48 }
0x28d0   :  { %6367 = vmatprep.subr.bf16.mxu1 %v6826_v0 }
0x28d1   :  { %v6759_v49 = vpop.eup %6758 }
0x28d2   :  { %v2124_v28 = vmul.f32 %v6759_v49, %v2108_v20  ;;  %v3049_v1 = vpop.permute.xlu1 %3048 }
0x28d4   :  { %v2130_v50 = vmul.f32 %v5717_v38, %v2124_v28 }
0x28d5   :  { %v6761_v29 = vpop.eup %6760 }
0x28d6   :  { %v2125_v52 = vmul.f32 %v6761_v29, %v2109_v25  ;;  %v2136_v4 = vadd.f32 %v5718_v40, %v2130_v50 }
0x28d8   :  { %v2131_v3 = vmul.f32 %v5717_v38, %v2125_v52 }
0x28da   :  { %v2137_v53 = vadd.f32 %v5718_v40, %v2131_v3 }
0x28dc   :  { %v7578_v54 = vpack.c.bf16 %v2137_v53, %v2136_v4 }
0x28de   :  { %6358 = vmatmul.mubr.msk.bf16.vlgmr.msra.gmra.mrb[96].mxu1 %vm113_vm3, %v7578_v54 }
0x28df   :  { %6369 = vmatprep.mubr.msk.bf16.mxu1 %vm6827_vm0, %v6826_v0 }
0x2953   :  { %v2963_v55 = vpop.xlane.xlu0 %2962 }
0x2954   :  { %v2964_v56 = vmul.f32 0.03125, %v2963_v55 }
0x2956   :  { %v2965_v57 = vadd.f32 1e-05, %v2964_v56 }
0x2958   :  { %6762 = vrsqrt.f32 %v2965_v57  ;;  %v2984_v57 = vld [vmem:[%s8150_s4 + $0x190] sm:$0xff] }
0x2962   :  { %v6763_v58 = vpop.eup %6762 }
0x2963   :  { %v2967_v60 = vmul.f32 %v6763_v58, %v2959_v10  ;;  %v3367_v58 = vpack.c.bf16 %v2984_v57, %v2984_v57 }
0x2965   :  { %v2972_v61 = vmul.f32 %v5737_v59, %v2967_v60  ;;  %v3372_v59 = vsel %vm340_vm6, %v3367_v58, 0 }
0x2967   :  { %v7590_v62 = vadd.f32 %v5738_v51, %v2972_v61 }
0x2969   :  { %v2988_v63 = vpack.c.bf16 %v7590_v62, %v7590_v62 }
0x296b   :  { %6350 = vmatmul.mubr.msk.bf16.vlgmr.msra.gmra.mrb[96].mxu0 %vm113_vm3, %v2988_v63 }
0x296c   :  { %6363 = vmatprep.mubr.msk.bf16.mxu0 %vm6827_vm0, %v6826_v0 }
0x29b1   :  { %v3088_v2 = vpop.f32.mrb[96].mxu1 }
0x29b2   :  { %v6359_v5 = vpop.f32.mrb[97].mxu1  ;;  %v3089_v7 = vadd.f32 %v3088_v2, %v3049_v1 }
0x29b3   :  { %v3091_v6 = vpop.f32.mrb[98].mxu1 }
0x29b4   :  { %v3092_v45 = vadd.f32 %v3091_v6, %v3049_v1  ;;  %v6360_v8 = vpop.f32.mrb[99].mxu1 }
0x29b6   :  { %v7597_v11 = vpack.c.bf16 %v3092_v45, %v3089_v7 }
0x29b8   :  { %3157 = vrot.lane.b32.xlu0 %v7597_v11, %s6828_s23  ;;  %v3101_v30 = vsel %vm213_vm4, %v7597_v11, 0 }
0x29b9   :  { %6362 = vmatpush3.bf16.xpose.msra.mxu0 %v3101_v30 }
0x29ba   :  { %6373 = vmatprep.subr.bf16.mxu0 %v6826_v0 }
0x2a2a   :  { %v3158_v12 = vpop.permute.xlu0 %3157 }
0x2a2b   :  { %6368 = vmatpush3.bf16.msra.mxu1 %v3158_v12 }
0x2a2c   :  { %6379 = vmatprep.subr.bf16.mxu1 %v6826_v0 }
0x2a3e   :  { %v3032_v13 = vpop.f32.mrb[96].mxu0 }
0x2a3f   :  { %v3033_v14 = vadd.f32 %v7565_v34, %v3032_v13  ;;  %v6351_v15 = vpop.f32.mrb[97].mxu0 }
0x2a40   :  { %v3035_v16 = vpop.f32.mrb[98].mxu0 }
0x2a41   :  { %v7606_v17 = vpack.c.bf16 %v3033_v14, %v3033_v14  ;;  %v6352_v20 = vpop.f32.mrb[99].mxu0 }
0x2a43   :  { %6364 = vmatmul.mubr.msk.bf16.vlgmr.msra.gmra.mrb[100].mxu0 %vm213_vm4, %v7606_v17 }
0x2a44   :  { %6375 = vmatprep.mubr.msk.bf16.mxu0 %vm6827_vm0, %v6826_v0  ;;  %6374 = vmatpush3.bf16.msra.mxu0 %v3209_v41 }
0x2a45   :  { %6385 = vmatprep.subr.bf16.mxu0 %v6826_v0 }
0x2b16   :  { %v3137_v18 = vpop.f32.mrb[100].mxu0 }
0x2b17   :  { %v3143_v19 = vmul.f32 0.35355338, %v3137_v18  ;;  %v6365_v21 = vpop.f32.mrb[101].mxu0 }
0x2b18   :  { %v3140_v22 = vpop.f32.mrb[102].mxu0 }
0x2b19   :  { %v6366_v23 = vpop.f32.mrb[103].mxu0  ;;  %v3144_v24 = vsel %vm263_vm5, %v3143_v19, -inf }
0x2b1a   :  { %3145 = vmax.xlane.f32.xlu1 %v3144_v24 }
0x2ba7   :  { %v3146_v25 = vpop.xlane.xlu1 %3145 }
0x2ba8   :  { %v3147_v26 = vsub.f32 %v3143_v19, %v3146_v25 }
0x2baa   :  { %v3148_v27 = vmul.f32 1.442695, %v3147_v26 }
0x2bac   :  { %6764 = vpow2.f32 %v3148_v27 }
0x2bb6   :  { %v6765_v31 = vpop.eup %6764 }
0x2bb7   :  { %v3150_v32 = vsel %vm263_vm5, %v6765_v31, 0.0 }
0x2bb8   :  { %3151 = vadd.xlane.f32.xlu0 %v3150_v32  ;;  %v5745_v32 = vld [vmem:[%s8150_s4 + $0x1a8] ss:$0 sm:$0xff] }
0x2bce   :  { %3259 = vrot.lane.b32.xlu0 %v7597_v11, %s6829_s2 }
0x2bd2   :  { %3257 = vrot.lane.b32.xlu0 %v7606_v17, %s6829_s2 }
0x2c45   :  { %v3152_v33 = vpop.xlane.xlu0 %3151 }
0x2c46   :  { %6766 = vrcp.f32 %v3152_v33 }
0x2c49   :  { %v3260_v9 = vpop.permute.xlu0 %3259 }
0x2c4a   :  { %v3265_v35 = vsel %vm213_vm4, %v3260_v9, 0 }
0x2c4d   :  { %v3258_v36 = vpop.permute.xlu0 %3257 }
0x2c50   :  { %v6767_v34 = vpop.eup %6766 }
0x2c51   :  { %v3154_v44 = vmul.f32 %v6767_v34, %v6765_v31 }
0x2c53   :  { %v3155_v10 = vpack.c.bf16 %v3154_v44, %v3154_v44 }
0x2c55   :  { %6370 = vmatmul.mubr.msk.bf16.vlgmr.msra.gmra.mrb[100].mxu1 %vm263_vm5, %v3155_v10 }
0x2c56   :  { %6380 = vmatpush3.bf16.xpose.msra.mxu1 %v3265_v35  ;;  %6381 = vmatprep.mubr.msk.bf16.mxu1 %vm6827_vm0, %v6826_v0 }
0x2c57   :  { %6391 = vmatprep.subr.bf16.mxu1 %v6826_v0 }
0x2c5d   :  { %6382 = vmatmul.mubr.msk.bf16.vlgmr.msra.gmra.mrb[104].mxu1 %vm213_vm4, %v3258_v36 }
0x2c5e   :  { %6393 = vmatprep.mubr.msk.bf16.mxu1 %vm6827_vm0, %v6826_v0  ;;  %6392 = vmatpush3.bf16.msra.mxu1 %v3372_v59 }
0x2c5f   :  { %6403 = vmatprep.subr.bf16.mxu1 %v6826_v0 }
0x2d28   :  { %v3197_v42 = vpop.f32.mrb[100].mxu1 }
0x2d29   :  { %v3203_v43 = vpack.c.bf16 %v3197_v42, %v3197_v42  ;;  %v6371_v46 = vpop.f32.mrb[101].mxu1 }
0x2d2a   :  { %v3200_v47 = vpop.f32.mrb[102].mxu1  ;;  %v2985_v46 = vld [vmem:[%s8150_s4 + $0x198] sm:$0xff] }
0x2d2b   :  { %v6372_v48 = vpop.f32.mrb[103].mxu1  ;;  %6376 = vmatmul.mubr.msk.bf16.vlgmr.msra.gmra.mrb[104].mxu0 %vm213_vm4, %v3203_v43  ;;  %v3525_v47 = vpack.c.bf16 %v2985_v46, %v2985_v46 }
0x2d2c   :  { %6387 = vmatprep.mubr.msk.bf16.mxu0 %vm6827_vm0, %v6826_v0 }
0x2d2d   :  { %v3530_v48 = vsel %vm340_vm6, %v3525_v47, 0 }
0x2d30   :  { %v3301_v49 = vpop.f32.mrb[104].mxu1 }
0x2d31   :  { %v3307_v28 = vmul.f32 0.35355338, %v3301_v49  ;;  %v6383_v38 = vpop.f32.mrb[105].mxu1 }
0x2d32   :  { %v3304_v29 = vpop.f32.mrb[106].mxu1 }
0x2d33   :  { %v6384_v50 = vpop.f32.mrb[107].mxu1  ;;  %v3308_v52 = vsel %vm263_vm5, %v3307_v28, -inf }
0x2d34   :  { %3309 = vmax.xlane.f32.xlu1 %v3308_v52 }
0x2d45   :  { %3320 = vrot.lane.b32.xlu1 %v7597_v11, %s6830_s11 }
0x2d49   :  { %3417 = vrot.lane.b32.xlu1 %v7597_v11, %s6831_s12 }
0x2d4d   :  { %3415 = vrot.lane.b32.xlu1 %v7606_v17, %s6831_s12 }
0x2dc1   :  { %v3310_v40 = vpop.xlane.xlu1 %3309 }
0x2dc2   :  { %v3311_v3 = vsub.f32 %v3307_v28, %v3310_v40 }
0x2dc4   :  { %v3312_v4 = vmul.f32 1.442695, %v3311_v3 }
0x2dc5   :  { %v3321_v53 = vpop.permute.xlu1 %3320 }
0x2dc6   :  { %6768 = vpow2.f32 %v3312_v4  ;;  %6386 = vmatpush3.bf16.msra.mxu0 %v3321_v53 }
0x2dc7   :  { %6397 = vmatprep.subr.bf16.mxu0 %v6826_v0 }
0x2dc9   :  { %v3418_v6 = vpop.permute.xlu1 %3417 }
0x2dca   :  { %v3423_v45 = vsel %vm213_vm4, %v3418_v6, 0 }
0x2dcd   :  { %v3416_v8 = vpop.permute.xlu1 %3415 }
0x2dd0   :  { %v6769_v55 = vpop.eup %6768 }
0x2dd1   :  { %v3314_v56 = vsel %vm263_vm5, %v6769_v55, 0.0 }
0x2dd2   :  { %3315 = vadd.xlane.f32.xlu0 %v3314_v56 }
0x2de8   :  { %3478 = vrot.lane.b32.xlu0 %v7597_v11, %s6833_s16 }
0x2dfe   :  { %v3245_v60 = vpop.f32.mrb[104].mxu0 }
0x2dff   :  { %v6377_v51 = vpop.f32.mrb[105].mxu0  ;;  %v3255_v33 = vadd.f32 %v5745_v32, %v3245_v60 }
0x2e00   :  { %v3248_v61 = vpop.f32.mrb[106].mxu0 }
0x2e01   :  { %v6378_v63 = vpop.f32.mrb[107].mxu0  ;;  %v2986_v61 = vld [vmem:[%s8150_s4 + $0x1a0] sm:$0xff] }
0x2e02   :  { %v3683_v63 = vpack.c.bf16 %v2986_v61, %v2986_v61 }
0x2e5f   :  { %v3316_v1 = vpop.xlane.xlu0 %3315 }
0x2e60   :  { %6770 = vrcp.f32 %v3316_v1  ;;  %v3688_v1 = vsel %vm340_vm6, %v3683_v63, 0 }
0x2e63   :  { %v3479_v15 = vpop.permute.xlu0 %3478 }
0x2e6a   :  { %v6771_v2 = vpop.eup %6770 }
0x2e6b   :  { %v3318_v5 = vmul.f32 %v6771_v2, %v6769_v55 }
0x2e6d   :  { %v3319_v7 = vpack.c.bf16 %v3318_v5, %v3318_v5 }
0x2e6f   :  { %6388 = vmatmul.mubr.msk.bf16.vlgmr.msra.gmra.mrb[108].mxu0 %vm263_vm5, %v3319_v7 }
0x2e70   :  { %6398 = vmatpush3.bf16.xpose.msra.mxu0 %v3423_v45  ;;  %6399 = vmatprep.mubr.msk.bf16.mxu0 %vm6827_vm0, %v6826_v0 }
0x2e71   :  { %6409 = vmatprep.subr.bf16.mxu0 %v6826_v0 }
0x2e77   :  { %6400 = vmatmul.mubr.msk.bf16.vlgmr.msra.gmra.mrb[112].mxu0 %vm213_vm4, %v3416_v8 }
0x2e78   :  { %6411 = vmatprep.mubr.msk.bf16.mxu0 %vm6827_vm0, %v6826_v0  ;;  %6410 = vmatpush3.bf16.msra.mxu0 %v3530_v48 }
0x2e79   :  { %6421 = vmatprep.subr.bf16.mxu0 %v6826_v0 }
0x2f42   :  { %v3360_v30 = vpop.f32.mrb[108].mxu0 }
0x2f43   :  { %v3366_v12 = vpack.c.bf16 %v3360_v30, %v3360_v30  ;;  %v6389_v13 = vpop.f32.mrb[109].mxu0 }
0x2f44   :  { %v3363_v14 = vpop.f32.mrb[110].mxu0 }
0x2f45   :  { %v6390_v16 = vpop.f32.mrb[111].mxu0  ;;  %6394 = vmatmul.mubr.msk.bf16.vlgmr.msra.gmra.mrb[108].mxu1 %vm213_vm4, %v3366_v12 }
0x2f46   :  { %6404 = vmatpush3.bf16.msra.mxu1 %v3479_v15  ;;  %6405 = vmatprep.mubr.msk.bf16.mxu1 %vm6827_vm0, %v6826_v0 }
0x2f47   :  { %6415 = vmatprep.subr.bf16.mxu1 %v6826_v0 }
0x2f4a   :  { %v3459_v20 = vpop.f32.mrb[112].mxu0 }
0x2f4b   :  { %v3465_v18 = vmul.f32 0.35355338, %v3459_v20  ;;  %v6401_v19 = vpop.f32.mrb[113].mxu0 }
0x2f4c   :  { %v3462_v21 = vpop.f32.mrb[114].mxu0 }
0x2f4d   :  { %v6402_v22 = vpop.f32.mrb[115].mxu0  ;;  %v3466_v23 = vsel %vm263_vm5, %v3465_v18, -inf }
0x2f4e   :  { %3467 = vmax.xlane.f32.xlu1 %v3466_v23 }
0x2fdb   :  { %v3468_v24 = vpop.xlane.xlu1 %3467 }
0x2fdc   :  { %v3469_v25 = vsub.f32 %v3465_v18, %v3468_v24 }
0x2fde   :  { %v3470_v26 = vmul.f32 1.442695, %v3469_v25 }
0x2fe0   :  { %6772 = vpow2.f32 %v3470_v26 }
0x2fea   :  { %v6773_v27 = vpop.eup %6772 }
0x2feb   :  { %v3472_v31 = vsel %vm263_vm5, %v6773_v27, 0.0 }
0x2fec   :  { %3473 = vadd.xlane.f32.xlu0 %v3472_v31 }
0x3002   :  { %3575 = vrot.lane.b32.xlu0 %v7597_v11, %s6832_s15 }
0x3006   :  { %3573 = vrot.lane.b32.xlu0 %v7606_v17, %s6832_s15 }
0x3018   :  { %v3408_v34 = vpop.f32.mrb[108].mxu1 }
0x3019   :  { %v3414_v44 = vadd.f32 %v3408_v34, %v3255_v33  ;;  %v6395_v9 = vpop.f32.mrb[109].mxu1  ;;  %v3757_v34 = vld [vmem:[%s8154_s5 + $0x50] sm:$0xff] }
0x301a   :  { %v3411_v10 = vpop.f32.mrb[110].mxu1  ;;  %v3759_v9 = vld [vmem:[%s8154_s5 + $0x60] sm:$0xff] }
0x301b   :  { %v6396_v35 = vpop.f32.mrb[111].mxu1  ;;  %v3760_v10 = vld [vmem:[%s8154_s5 + $0x68] sm:$0xff] }
0x301c   :  { %v3763_v35 = vpack.c.bf16 %v3760_v10, %v3759_v9 }
0x3079   :  { %v3474_v36 = vpop.xlane.xlu0 %3473 }
0x307a   :  { %6774 = vrcp.f32 %v3474_v36  ;;  %v3813_v36 = vld [vmem:[%s8150_s4 + $0x1c0] sm:$0xff] }
0x307d   :  { %v3576_v41 = vpop.permute.xlu0 %3575 }
0x307e   :  { %v3581_v43 = vsel %vm213_vm4, %v3576_v41, 0 }
0x3081   :  { %v3574_v17 = vpop.permute.xlu0 %3573 }
0x3084   :  { %v6775_v37 = vpop.eup %6774 }
0x3085   :  { %v3476_v39 = vmul.f32 %v6775_v37, %v6773_v27  ;;  %v3814_v37 = vld [vmem:[%s8150_s4 + $0x1c8] sm:$0xff] }
0x3086   :  { %v3822_v41 = vpack.c.bf16 %v3814_v37, %v3813_v36 }
0x3087   :  { %v3477_v42 = vpack.c.bf16 %v3476_v39, %v3476_v39  ;;  %v3815_v39 = vld [vmem:[%s8150_s4 + $0x1d0] sm:$0xff] }
0x3089   :  { %6406 = vmatmul.mubr.msk.bf16.vlgmr.msra.gmra.mrb[112].mxu1 %vm263_vm5, %v3477_v42  ;;  %v3816_v42 = vld [vmem:[%s8150_s4 + $0x1d8] sm:$0xff] }
0x308a   :  { %6416 = vmatpush3.bf16.xpose.msra.mxu1 %v3581_v43  ;;  %6417 = vmatprep.mubr.msk.bf16.mxu1 %vm6827_vm0, %v6826_v0  ;;  %v3823_v43 = vpack.c.bf16 %v3816_v42, %v3815_v39 }
0x308b   :  { %6427 = vmatprep.subr.bf16.mxu1 %v6826_v0 }
0x3091   :  { %6418 = vmatmul.mubr.msk.bf16.vlgmr.msra.gmra.mrb[116].mxu1 %vm213_vm4, %v3574_v17 }
0x3092   :  { %6429 = vmatprep.mubr.msk.bf16.mxu1 %vm6827_vm0, %v6826_v0  ;;  %6428 = vmatpush3.bf16.msra.mxu1 %v3688_v1 }
0x3093   :  { %6441 = vmatprep.subr.bf16.mxu1 %v6826_v0 }
0x315c   :  { %v3518_v49 = vpop.f32.mrb[112].mxu1 }
0x315d   :  { %v3524_v28 = vpack.c.bf16 %v3518_v49, %v3518_v49  ;;  %v6407_v38 = vpop.f32.mrb[113].mxu1  ;;  %v5755_v49 = vld [vmem:[%s8150_s4 + $0x1b0] ss:$0 sm:$0xff] }
0x315e   :  { %v3521_v29 = vpop.f32.mrb[114].mxu1  ;;  %v5756_v38 = vld [vmem:[%s8150_s4 + $0x1b8] ss:$0 sm:$0xff] }
0x315f   :  { %v6408_v50 = vpop.f32.mrb[115].mxu1  ;;  %6412 = vmatmul.mubr.msk.bf16.vlgmr.msra.gmra.mrb[116].mxu0 %vm213_vm4, %v3524_v28 }
0x3160   :  { %6423 = vmatprep.mubr.msk.bf16.mxu0 %vm6827_vm0, %v6826_v0 }
0x3164   :  { %v3617_v52 = vpop.f32.mrb[116].mxu1 }
0x3165   :  { %v3623_v40 = vmul.f32 0.35355338, %v3617_v52  ;;  %v6419_v3 = vpop.f32.mrb[117].mxu1 }
0x3166   :  { %v3620_v4 = vpop.f32.mrb[118].mxu1  ;;  %v3818_v3 = vld [vmem:[%s8150_s4 + $0x1e8] sm:$0xff] }
0x3167   :  { %v6420_v53 = vpop.f32.mrb[119].mxu1  ;;  %v3624_v55 = vsel %vm263_vm5, %v3623_v40, -inf }
0x3168   :  { %3625 = vmax.xlane.f32.xlu1 %v3624_v55  ;;  %v3819_v53 = vld [vmem:[%s8150_s4 + $0x1f0] sm:$0xff]  ;;  %v3820_v55 = vld [vmem:[%s8150_s4 + $0x1f8] sm:$0xff] }
0x3179   :  { %3636 = vrot.lane.b32.xlu1 %v7597_v11, %s6834_s21 }
0x31f5   :  { %v3626_v56 = vpop.xlane.xlu1 %3625 }
0x31f6   :  { %v3627_v57 = vsub.f32 %v3623_v40, %v3626_v56  ;;  %v3817_v40 = vld [vmem:[%s8150_s4 + $0x1e0] sm:$0xff]  ;;  %v3825_v56 = vpack.c.bf16 %v3820_v55, %v3819_v53 }
0x31f7   :  { %v3824_v4 = vpack.c.bf16 %v3818_v3, %v3817_v40 }
0x31f8   :  { %v3628_v58 = vmul.f32 1.442695, %v3627_v57  ;;  %v5757_v57 = vld [vmem:[%s8154_s5 + $0x70] ss:$0 sm:$0xff] }
0x31f9   :  { %v3637_v59 = vpop.permute.xlu1 %3636 }
0x31fa   :  { %6776 = vpow2.f32 %v3628_v58  ;;  %6422 = vmatpush3.bf16.msra.mxu0 %v3637_v59 }
0x31fb   :  { %6433 = vmatprep.subr.bf16.mxu0 %v6826_v0 }
0x3204   :  { %v6777_v60 = vpop.eup %6776 }
0x3205   :  { %v3630_v51 = vsel %vm263_vm5, %v6777_v60, 0.0 }
0x3206   :  { %3631 = vadd.xlane.f32.xlu0 %v3630_v51 }
0x3232   :  { %v3566_v11 = vpop.f32.mrb[116].mxu0 }
0x3233   :  { %v3572_v2 = vadd.f32 %v3566_v11, %v3414_v44  ;;  %v6413_v5 = vpop.f32.mrb[117].mxu0  ;;  %v3758_v44 = vld [vmem:[%s8154_s5 + $0x58] sm:$0xff]  ;;  %v5759_v11 = vld [vmem:[%s8150_s4 + $0x200] ss:$0 sm:$0xff] }
0x3234   :  { %v3569_v6 = vpop.f32.mrb[118].mxu0 }
0x3235   :  { %v6414_v7 = vpop.f32.mrb[119].mxu0 }
0x3293   :  { %v3632_v45 = vpop.xlane.xlu0 %3631 }
0x3294   :  { %6778 = vrcp.f32 %v3632_v45 }
0x329e   :  { %v6779_v8 = vpop.eup %6778 }
0x329f   :  { %v3634_v30 = vmul.f32 %v6779_v8, %v6777_v60 }
0x32a1   :  { %v3635_v12 = vpack.c.bf16 %v3634_v30, %v3634_v30 }
0x32a3   :  { %6424 = vmatmul.mubr.msk.bf16.vlgmr.msra.gmra.mrb[120].mxu0 %vm263_vm5, %v3635_v12  ;;  %v3900_v12 = vld [vmem:[%s8151_s6 + $0xa0] sm:$0xff] }
0x32a4   :  { %6437 = vmatprep.mubr.msk.bf16.mxu0 %vm6827_vm0, %v6826_v0 }
0x3376   :  { %v3676_v13 = vpop.f32.mrb[120].mxu0 }
0x3377   :  { %v3682_v14 = vpack.c.bf16 %v3676_v13, %v3676_v13  ;;  %v6425_v15 = vpop.f32.mrb[121].mxu0  ;;  %v3901_v13 = vld [vmem:[%s8151_s6 + $0xa8] sm:$0xff] }
0x3378   :  { %v3679_v16 = vpop.f32.mrb[122].mxu0  ;;  %v3902_v15 = vld [vmem:[%s8151_s6 + $0xb0] sm:$0xff] }
0x3379   :  { %v6426_v20 = vpop.f32.mrb[123].mxu0  ;;  %6430 = vmatmul.mubr.msk.bf16.vlgmr.msra.gmra.mrb[120].mxu1 %vm213_vm4, %v3682_v14  ;;  %v3911_v14 = vpack.c.bf16 %v3901_v13, %v3900_v12  ;;  %v3903_v16 = vld [vmem:[%s8151_s6 + $0xb8] sm:$0xff] }
0x337a   :  { %6449 = vmatprep.mubr.msk.bf16.mxu1 %vm6827_vm0, %v6826_v0  ;;  %6442 = vmatpush3.bf16.msra.mxu1 %v3822_v41  ;;  %v3912_v20 = vpack.c.bf16 %v3903_v16, %v3902_v15 }
0x337b   :  { %6443 = vmatprep.subr.bf16.mxu1 %v6826_v0 }
0x337e   :  { %6444 = vmatpush3.bf16.msra.mxu1 %v3823_v43 }
0x337f   :  { %6445 = vmatprep.subr.bf16.mxu1 %v6826_v0 }
0x3382   :  { %6446 = vmatpush3.bf16.msra.mxu1 %v3824_v4 }
0x3383   :  { %6447 = vmatprep.subr.bf16.mxu1 %v6826_v0 }
0x3386   :  { %6448 = vmatpush3.bf16.msra.mxu1 %v3825_v56 }
0x3387   :  { %6469 = vmatprep.subr.bf16.mxu1 %v6826_v0 }
0x344c   :  { %v3724_v18 = vpop.f32.mrb[120].mxu1 }
0x344d   :  { %v3730_v19 = vadd.f32 %v3724_v18, %v3572_v2  ;;  %v6431_v21 = vpop.f32.mrb[121].mxu1 }
0x344e   :  { %v3727_v22 = vpop.f32.mrb[122].mxu1 }
0x344f   :  { %v3731_v23 = vadd.f32 %v3730_v19, %v7590_v62  ;;  %v6432_v24 = vpop.f32.mrb[123].mxu1  ;;  %v3762_v62 = vpack.c.bf16 %v3758_v44, %v3757_v34  ;;  %v5762_v34 = vld [vmem:[%s8150_s4 + $0x210] ss:$0 sm:$0xff] }
0x3450   :  { %v5763_v24 = vld [vmem:[%s8151_s6 + $0xc0] ss:$0 sm:$0xff] }
0x3451   :  { %v3734_v25 = vsel %vm113_vm3, %v3731_v23, 0.0  ;;  %6434 = vmatpush3.bf16.msra.mxu0 %v3762_v62 }
0x3452   :  { %3735 = vadd.xlane.f32.xlu1 %v3734_v25  ;;  %6435 = vmatprep.subr.bf16.mxu0 %v6826_v0 }
0x3455   :  { %6436 = vmatpush3.bf16.msra.mxu0 %v3763_v35 }
0x3456   :  { %6453 = vmatprep.subr.bf16.mxu0 %v6826_v0 }
0x3463   :  { %3964 = vrot.lane.b32.xlu1 %v3912_v20, %s6828_s23 }
0x34df   :  { %v3736_v26 = vpop.xlane.xlu1 %3735 }
0x34e0   :  { %v3737_v27 = vmul.f32 0.03125, %v3736_v26 }
0x34e2   :  { %v3738_v31 = vsub.f32 %v3731_v23, %v3737_v27 }
0x34e3   :  { %v3965_v35 = vpop.permute.xlu1 %3964 }
0x34e4   :  { %v3739_v32 = vmul.f32 %v3738_v31, %v3738_v31 }
0x34e6   :  { %v3740_v33 = vsel %vm113_vm3, %v3739_v32, 0.0  ;;  %v5761_v32 = vld [vmem:[%s8150_s4 + $0x208] ss:$0 sm:$0xff] }
0x34e7   :  { %3741 = vadd.xlane.f32.xlu0 %v3740_v33 }
0x3574   :  { %v3742_v17 = vpop.xlane.xlu0 %3741 }
0x3575   :  { %v3743_v46 = vmul.f32 0.03125, %v3742_v17 }
0x3577   :  { %v3744_v47 = vadd.f32 1e-05, %v3743_v46 }
0x3579   :  { %6780 = vrsqrt.f32 %v3744_v47 }
0x3583   :  { %v6781_v48 = vpop.eup %6780 }
0x3584   :  { %v3746_v28 = vmul.f32 %v6781_v48, %v3738_v31 }
0x3586   :  { %v3751_v29 = vmul.f32 %v5755_v49, %v3746_v28 }
0x3588   :  { %v3756_v50 = vadd.f32 %v5756_v38, %v3751_v29 }
0x358a   :  { %v3761_v52 = vpack.c.bf16 %v3756_v50, %v3756_v50 }
0x358c   :  { %6438 = vmatmul.mubr.msk.bf16.vlgmr.msra.gmra.mrb[124].mxu0 %vm113_vm3, %v3761_v52 }
0x358d   :  { %6457 = vmatprep.mubr.msk.bf16.mxu0 %vm6827_vm0, %v6826_v0  ;;  %6454 = vmatpush3.bf16.msra.mxu0 %v3911_v14 }
0x358e   :  { %6455 = vmatprep.subr.bf16.mxu0 %v6826_v0 }
0x3591   :  { %6456 = vmatpush3.bf16.msra.mxu0 %v3912_v20 }
0x3592   :  { %6461 = vmatprep.subr.bf16.mxu0 %v6826_v0 }
0x365f   :  { %v3806_v58 = vpop.f32.mrb[124].mxu0 }
0x3660   :  { %v3807_v59 = vadd.f32 %v5757_v57, %v3806_v58  ;;  %v6439_v60 = vpop.f32.mrb[125].mxu0 }
0x3661   :  { %v3809_v51 = vpop.f32.mrb[126].mxu0 }
0x3662   :  { %v3812_v61 = vmax.f32 %v3807_v59, 0.0  ;;  %v6440_v63 = vpop.f32.mrb[127].mxu0 }
0x3664   :  { %v3821_v1 = vpack.c.bf16 %v3812_v61, %v3812_v61 }
0x3666   :  { %6450 = vmatmul.mubr.msk.bf16.vlgmr.msra.gmra.mrb[124].mxu1 %vm1033_vm7, %v3821_v1 }
0x3667   :  { %6471 = vmatprep.mubr.msk.bf16.mxu1 %vm6827_vm0, %v6826_v0 }
0x3739   :  { %v3868_v2 = vpop.f32.mrb[124].mxu1 }
0x373a   :  { %v3869_v5 = vadd.f32 %v5759_v11, %v3868_v2  ;;  %v6451_v6 = vpop.f32.mrb[125].mxu1 }
0x373b   :  { %v3871_v7 = vpop.f32.mrb[126].mxu1 }
0x373c   :  { %v3874_v45 = vadd.f32 %v3869_v5, %v3756_v50  ;;  %v6452_v8 = vpop.f32.mrb[127].mxu1  ;;  %v3905_v7 = vld [vmem:[%s8150_s4 + $0x218] sm:$0xff] }
0x373e   :  { %v3877_v30 = vsel %vm113_vm3, %v3874_v45, 0.0 }
0x373f   :  { %3878 = vadd.xlane.f32.xlu0 %v3877_v30 }
0x37cc   :  { %v3879_v18 = vpop.xlane.xlu0 %3878 }
0x37cd   :  { %v3880_v19 = vmul.f32 0.03125, %v3879_v18 }
0x37cf   :  { %v3881_v21 = vsub.f32 %v3874_v45, %v3880_v19  ;;  %v4123_v45 = vpack.c.bf16 %v3905_v7, %v3905_v7 }
0x37d1   :  { %v3882_v22 = vmul.f32 %v3881_v21, %v3881_v21  ;;  %v4128_v8 = vsel %vm340_vm6, %v4123_v45, 0 }
0x37d3   :  { %v3883_v23 = vsel %vm113_vm3, %v3882_v22, 0.0 }
0x37d4   :  { %3884 = vadd.xlane.f32.xlu0 %v3883_v23 }
0x37ea   :  { %3962 = vrot.lane.b32.xlu0 %v3911_v14, %s6828_s23 }
0x37ee   :  { %3969 = vrot.lane.b32.xlu0 %v5763_v24, %s6828_s23 }
0x3861   :  { %v3885_v25 = vpop.xlane.xlu0 %3884 }
0x3862   :  { %v3886_v26 = vmul.f32 0.03125, %v3885_v25 }
0x3864   :  { %v3887_v27 = vadd.f32 1e-05, %v3886_v26 }
0x3865   :  { %v3963_v10 = vpop.permute.xlu0 %3962 }
0x3866   :  { %6782 = vrsqrt.f32 %v3887_v27 }
0x3869   :  { %v3970_v42 = vpop.permute.xlu0 %3969 }
0x3870   :  { %v6783_v31 = vpop.eup %6782 }
0x3871   :  { %v3889_v33 = vmul.f32 %v6783_v31, %v3881_v21 }
0x3873   :  { %v3894_v44 = vmul.f32 %v5761_v32, %v3889_v33 }
0x3875   :  { %v7794_v62 = vadd.f32 %v5762_v34, %v3894_v44 }
0x3877   :  { %v3910_v9 = vpack.c.bf16 %v7794_v62, %v7794_v62 }
0x3879   :  { %6458 = vmatmul.mubr.msk.bf16.vlgmr.msra.gmra.mrb[128].mxu0 %vm113_vm3, %v3910_v9 }
0x387a   :  { %6462 = vmatpush3.bf16.msra.mxu0 %v3963_v10  ;;  %6465 = vmatprep.mubr.msk.bf16.mxu0 %vm6827_vm0, %v6826_v0 }
0x387b   :  { %6463 = vmatprep.subr.bf16.mxu0 %v6826_v0 }
0x387e   :  { %6464 = vmatpush3.bf16.msra.mxu0 %v3965_v35 }
0x387f   :  { %6475 = vmatprep.subr.bf16.mxu0 %v6826_v0 }
0x3881   :  { %6466 = vmatmul.mubr.msk.bf16.vlgmr.msra.gmra.mrb[132].mxu0 %vm113_vm3, %v3910_v9 }
0x3882   :  { %6477 = vmatprep.mubr.msk.bf16.mxu0 %vm6827_vm0, %v6826_v0 }
0x394c   :  { %v3954_v36 = vpop.f32.mrb[128].mxu0 }
0x394d   :  { %v6459_v37 = vpop.f32.mrb[129].mxu0  ;;  %v3955_v38 = vadd.f32 %v5763_v24, %v3954_v36 }
0x394e   :  { %v3957_v39 = vpop.f32.mrb[130].mxu0 }
0x394f   :  { %v6460_v41 = vpop.f32.mrb[131].mxu0  ;;  %v7811_v29 = vpack.c.bf16 %v3955_v38, %v3955_v38 }
0x3954   :  { %v4006_v43 = vpop.f32.mrb[132].mxu0 }
0x3955   :  { %v4007_v17 = vadd.f32 %v4006_v43, %v3970_v42  ;;  %v6467_v46 = vpop.f32.mrb[133].mxu0  ;;  %v3906_v43 = vld [vmem:[%s8150_s4 + $0x220] sm:$0xff] }
0x3956   :  { %v4009_v47 = vpop.f32.mrb[134].mxu0 }
0x3957   :  { %v7806_v48 = vpack.c.bf16 %v4007_v17, %v4007_v17  ;;  %v6468_v49 = vpop.f32.mrb[135].mxu0  ;;  %v4288_v17 = vpack.c.bf16 %v3906_v43, %v3906_v43 }
0x3959   :  { %v4018_v28 = vsel %vm213_vm4, %v7806_v48, 0  ;;  %v4293_v46 = vsel %vm340_vm6, %v4288_v17, 0 }
0x395a   :  { %6470 = vmatpush3.bf16.xpose.msra.mxu1 %v4018_v28 }
0x395b   :  { %6481 = vmatprep.subr.bf16.mxu1 %v6826_v0 }
0x3961   :  { %6472 = vmatmul.mubr.msk.bf16.vlgmr.msra.gmra.mrb[128].mxu1 %vm213_vm4, %v7811_v29 }
0x3962   :  { %6483 = vmatprep.mubr.msk.bf16.mxu1 %vm6827_vm0, %v6826_v0  ;;  %6482 = vmatpush3.bf16.msra.mxu1 %v4128_v8 }
0x3963   :  { %6493 = vmatprep.subr.bf16.mxu1 %v6826_v0 }
0x3a34   :  { %v4054_v50 = vpop.f32.mrb[128].mxu1 }
0x3a35   :  { %v4060_v52 = vmul.f32 0.35355338, %v4054_v50  ;;  %v6473_v40 = vpop.f32.mrb[129].mxu1 }
0x3a36   :  { %v4057_v3 = vpop.f32.mrb[130].mxu1 }
0x3a37   :  { %v6474_v4 = vpop.f32.mrb[131].mxu1  ;;  %v4061_v53 = vsel %vm213_vm4, %v4060_v52, -inf }
0x3a38   :  { %4062 = vmax.xlane.f32.xlu0 %v4061_v53 }
0x3a4e   :  { %4074 = vrot.lane.b32.xlu0 %v7806_v48, %s6828_s23 }
0x3a52   :  { %4176 = vrot.lane.b32.xlu0 %v7811_v29, %s6829_s2 }
0x3ac5   :  { %v4063_v55 = vpop.xlane.xlu0 %4062 }
0x3ac6   :  { %v4064_v56 = vsub.f32 %v4060_v52, %v4063_v55 }
0x3ac8   :  { %v4065_v57 = vmul.f32 1.442695, %v4064_v56 }
0x3ac9   :  { %v4075_v58 = vpop.permute.xlu0 %4074 }
0x3aca   :  { %6784 = vpow2.f32 %v4065_v57  ;;  %v4080_v59 = vsel %vm340_vm6, %v4075_v58, 0 }
0x3acb   :  { %6476 = vmatpush3.bf16.msra.mxu0 %v4080_v59 }
0x3acc   :  { %6487 = vmatprep.subr.bf16.mxu0 %v6826_v0 }
0x3acd   :  { %v4177_v6 = vpop.permute.xlu0 %4176 }
0x3ad4   :  { %v6785_v60 = vpop.eup %6784 }
0x3ad5   :  { %v4067_v51 = vsel %vm213_vm4, %v6785_v60, 0.0 }
0x3ad6   :  { %4068 = vadd.xlane.f32.xlu1 %v4067_v51 }
0x3ae7   :  { %4178 = vrot.lane.b32.xlu1 %v7806_v48, %s6829_s2 }
0x3b63   :  { %v4069_v61 = vpop.xlane.xlu1 %4068 }
0x3b64   :  { %6786 = vrcp.f32 %v4069_v61 }
0x3b67   :  { %v4179_v11 = vpop.permute.xlu1 %4178 }
0x3b68   :  { %v4184_v5 = vsel %vm213_vm4, %v4179_v11, 0 }
0x3b6e   :  { %v6787_v63 = vpop.eup %6786 }
0x3b6f   :  { %v4071_v1 = vmul.f32 %v6787_v63, %v6785_v60 }
0x3b71   :  { %v4072_v2 = vpack.c.bf16 %v4071_v1, %v4071_v1 }
0x3b73   :  { %6478 = vmatmul.mubr.msk.bf16.vlgmr.msra.gmra.mrb[136].mxu0 %vm213_vm4, %v4072_v2 }
0x3b74   :  { %6488 = vmatpush3.bf16.xpose.msra.mxu0 %v4184_v5  ;;  %6489 = vmatprep.mubr.msk.bf16.mxu0 %vm6827_vm0, %v6826_v0 }
0x3b75   :  { %6499 = vmatprep.subr.bf16.mxu0 %v6826_v0 }
0x3b7b   :  { %6490 = vmatmul.mubr.msk.bf16.vlgmr.msra.gmra.mrb[140].mxu0 %vm213_vm4, %v4177_v6 }
0x3b7c   :  { %6501 = vmatprep.mubr.msk.bf16.mxu0 %vm6827_vm0, %v6826_v0  ;;  %6500 = vmatpush3.bf16.msra.mxu0 %v4293_v46 }
0x3b7d   :  { %6511 = vmatprep.subr.bf16.mxu0 %v6826_v0 }
0x3c46   :  { %v4116_v30 = vpop.f32.mrb[136].mxu0 }
0x3c47   :  { %v4122_v12 = vpack.c.bf16 %v4116_v30, %v4116_v30  ;;  %v6479_v13 = vpop.f32.mrb[137].mxu0 }
0x3c48   :  { %v4119_v14 = vpop.f32.mrb[138].mxu0 }
0x3c49   :  { %v6480_v15 = vpop.f32.mrb[139].mxu0  ;;  %6484 = vmatmul.mubr.msk.bf16.vlgmr.msra.gmra.mrb[132].mxu1 %vm213_vm4, %v4122_v12 }
0x3c4a   :  { %6495 = vmatprep.mubr.msk.bf16.mxu1 %vm6827_vm0, %v6826_v0  ;;  %v3907_v15 = vld [vmem:[%s8150_s4 + $0x228] sm:$0xff] }
0x3c4e   :  { %v4220_v16 = vpop.f32.mrb[140].mxu0 }
0x3c4f   :  { %v4226_v20 = vmul.f32 0.35355338, %v4220_v16  ;;  %v6491_v18 = vpop.f32.mrb[141].mxu0  ;;  %v4448_v16 = vpack.c.bf16 %v3907_v15, %v3907_v15 }
0x3c50   :  { %v4223_v19 = vpop.f32.mrb[142].mxu0 }
0x3c51   :  { %v6492_v21 = vpop.f32.mrb[143].mxu0  ;;  %v4227_v22 = vsel %vm213_vm4, %v4226_v20, -inf }
0x3c52   :  { %4228 = vmax.xlane.f32.xlu1 %v4227_v22 }
0x3c63   :  { %4338 = vrot.lane.b32.xlu1 %v7806_v48, %s6831_s12 }
0x3c67   :  { %4336 = vrot.lane.b32.xlu1 %v7811_v29, %s6831_s12 }
0x3cdf   :  { %v4229_v23 = vpop.xlane.xlu1 %4228 }
0x3ce0   :  { %v4230_v24 = vsub.f32 %v4226_v20, %v4229_v23  ;;  %v4453_v20 = vsel %vm340_vm6, %v4448_v16, 0  ;;  %v5779_v16 = vld [vmem:[%s8150_s4 + $0x240] ss:$0 sm:$0xff] }
0x3ce2   :  { %v4231_v25 = vmul.f32 1.442695, %v4230_v24 }
0x3ce3   :  { %v4339_v37 = vpop.permute.xlu1 %4338 }
0x3ce4   :  { %6788 = vpow2.f32 %v4231_v25  ;;  %v4344_v41 = vsel %vm213_vm4, %v4339_v37, 0 }
0x3ce7   :  { %v4337_v42 = vpop.permute.xlu1 %4336 }
0x3cee   :  { %v6789_v26 = vpop.eup %6788 }
0x3cef   :  { %v4233_v27 = vsel %vm213_vm4, %v6789_v26, 0.0 }
0x3cf0   :  { %4234 = vadd.xlane.f32.xlu0 %v4233_v27 }
0x3d06   :  { %4239 = vrot.lane.b32.xlu0 %v7806_v48, %s6830_s11 }
0x3d1c   :  { %v4164_v31 = vpop.f32.mrb[132].mxu1 }
0x3d1d   :  { %v6485_v32 = vpop.f32.mrb[133].mxu1 }
0x3d1e   :  { %v4167_v33 = vpop.f32.mrb[134].mxu1 }
0x3d1f   :  { %v6486_v34 = vpop.f32.mrb[135].mxu1 }
0x3d7d   :  { %v4235_v44 = vpop.xlane.xlu0 %4234 }
0x3d7e   :  { %6790 = vrcp.f32 %v4235_v44 }
0x3d81   :  { %v4240_v9 = vpop.permute.xlu0 %4239 }
0x3d82   :  { %v4245_v10 = vsel %vm340_vm6, %v4240_v9, 0 }
0x3d83   :  { %6494 = vmatpush3.bf16.msra.mxu1 %v4245_v10 }
0x3d84   :  { %6505 = vmatprep.subr.bf16.mxu1 %v6826_v0 }
0x3d88   :  { %v6791_v35 = vpop.eup %6790 }
0x3d89   :  { %v4237_v36 = vmul.f32 %v6791_v35, %v6789_v26  ;;  %v3908_v35 = vld [vmem:[%s8150_s4 + $0x230] sm:$0xff] }
0x3d8b   :  { %v4238_v39 = vpack.c.bf16 %v4237_v36, %v4237_v36  ;;  %v4608_v36 = vpack.c.bf16 %v3908_v35, %v3908_v35 }
0x3d8d   :  { %6496 = vmatmul.mubr.msk.bf16.vlgmr.msra.gmra.mrb[136].mxu1 %vm213_vm4, %v4238_v39  ;;  %v4613_v37 = vsel %vm340_vm6, %v4608_v36, 0 }
0x3d8e   :  { %6506 = vmatpush3.bf16.xpose.msra.mxu1 %v4344_v41  ;;  %6507 = vmatprep.mubr.msk.bf16.mxu1 %vm6827_vm0, %v6826_v0 }
0x3d8f   :  { %6517 = vmatprep.subr.bf16.mxu1 %v6826_v0 }
0x3d95   :  { %6508 = vmatmul.mubr.msk.bf16.vlgmr.msra.gmra.mrb[140].mxu1 %vm213_vm4, %v4337_v42 }
0x3d96   :  { %6519 = vmatprep.mubr.msk.bf16.mxu1 %vm6827_vm0, %v6826_v0  ;;  %6518 = vmatpush3.bf16.msra.mxu1 %v4453_v20 }
0x3d97   :  { %6529 = vmatprep.subr.bf16.mxu1 %v6826_v0 }
0x3e60   :  { %v4281_v47 = vpop.f32.mrb[136].mxu1 }
0x3e61   :  { %v4287_v49 = vpack.c.bf16 %v4281_v47, %v4281_v47  ;;  %v6497_v28 = vpop.f32.mrb[137].mxu1 }
0x3e62   :  { %v4284_v38 = vpop.f32.mrb[138].mxu1 }
0x3e63   :  { %v6498_v50 = vpop.f32.mrb[139].mxu1  ;;  %6502 = vmatmul.mubr.msk.bf16.vlgmr.msra.gmra.mrb[144].mxu0 %vm213_vm4, %v4287_v49 }
0x3e64   :  { %6513 = vmatprep.mubr.msk.bf16.mxu0 %vm6827_vm0, %v6826_v0 }
0x3e68   :  { %v4380_v52 = vpop.f32.mrb[140].mxu1 }
0x3e69   :  { %v4386_v40 = vmul.f32 0.35355338, %v4380_v52  ;;  %v6509_v3 = vpop.f32.mrb[141].mxu1 }
0x3e6a   :  { %v4383_v4 = vpop.f32.mrb[142].mxu1 }
0x3e6b   :  { %v6510_v53 = vpop.f32.mrb[143].mxu1  ;;  %v4387_v55 = vsel %vm213_vm4, %v4386_v40, -inf }
0x3e6c   :  { %4388 = vmax.xlane.f32.xlu0 %v4387_v55 }
0x3e82   :  { %4399 = vrot.lane.b32.xlu0 %v7806_v48, %s6833_s16 }
0x3e86   :  { %4496 = vrot.lane.b32.xlu0 %v7811_v29, %s6832_s15  ;;  %v5769_v29 = vld [vmem:[%s8150_s4 + $0x238] ss:$0 sm:$0xff] }
0x3e87   :  { %v4174_v63 = vadd.f32 %v5769_v29, %v4164_v31 }
0x3ef9   :  { %v4389_v56 = vpop.xlane.xlu0 %4388 }
0x3efa   :  { %v4390_v57 = vsub.f32 %v4386_v40, %v4389_v56 }
0x3efc   :  { %v4391_v58 = vmul.f32 1.442695, %v4390_v57 }
0x3efd   :  { %v4400_v59 = vpop.permute.xlu0 %4399 }
0x3efe   :  { %6792 = vpow2.f32 %v4391_v58  ;;  %v4405_v60 = vsel %vm340_vm6, %v4400_v59, 0 }
0x3eff   :  { %6512 = vmatpush3.bf16.msra.mxu0 %v4405_v60 }
0x3f00   :  { %6523 = vmatprep.subr.bf16.mxu0 %v6826_v0 }
0x3f01   :  { %v4497_v14 = vpop.permute.xlu0 %4496 }
0x3f08   :  { %v6793_v51 = vpop.eup %6792 }
0x3f09   :  { %v4393_v61 = vsel %vm213_vm4, %v6793_v51, 0.0 }
0x3f0a   :  { %4394 = vadd.xlane.f32.xlu1 %v4393_v61  ;;  %v4683_v61 = vld [vmem:[%s8151_s6 + $0xd0] sm:$0xff] }
0x3f1b   :  { %4498 = vrot.lane.b32.xlu1 %v7806_v48, %s6832_s15 }
0x3f36   :  { %v4329_v1 = vpop.f32.mrb[144].mxu0 }
0x3f37   :  { %v4335_v11 = vadd.f32 %v4329_v1, %v4174_v63  ;;  %v6503_v2 = vpop.f32.mrb[145].mxu0  ;;  %v4685_v63 = vld [vmem:[%s8151_s6 + $0xe0] sm:$0xff] }
0x3f38   :  { %v4332_v5 = vpop.f32.mrb[146].mxu0 }
0x3f39   :  { %v6504_v6 = vpop.f32.mrb[147].mxu0 }
0x3f97   :  { %v4395_v7 = vpop.xlane.xlu1 %4394 }
0x3f98   :  { %6794 = vrcp.f32 %v4395_v7 }
0x3f9b   :  { %v4499_v30 = vpop.permute.xlu1 %4498 }
0x3f9c   :  { %v4504_v13 = vsel %vm213_vm4, %v4499_v30, 0 }
0x3fa2   :  { %v6795_v45 = vpop.eup %6794 }
0x3fa3   :  { %v4397_v8 = vmul.f32 %v6795_v45, %v6793_v51  ;;  %v4682_v51 = vld [vmem:[%s8151_s6 + $0xc8] sm:$0xff] }
0x3fa4   :  { %v4693_v29 = vpack.c.bf16 %v4683_v61, %v4682_v51  ;;  %v5781_v45 = vld [vmem:[%s8151_s6 + $0xe8] ss:$0 sm:$0xff] }
0x3fa5   :  { %v4398_v12 = vpack.c.bf16 %v4397_v8, %v4397_v8 }
0x3fa7   :  { %6514 = vmatmul.mubr.msk.bf16.vlgmr.msra.gmra.mrb[148].mxu0 %vm213_vm4, %v4398_v12 }
0x3fa8   :  { %6524 = vmatpush3.bf16.xpose.msra.mxu0 %v4504_v13  ;;  %6525 = vmatprep.mubr.msk.bf16.mxu0 %vm6827_vm0, %v6826_v0 }
0x3fa9   :  { %6535 = vmatprep.subr.bf16.mxu0 %v6826_v0 }
0x3faf   :  { %6526 = vmatmul.mubr.msk.bf16.vlgmr.msra.gmra.mrb[152].mxu0 %vm213_vm4, %v4497_v14 }
0x3fb0   :  { %6537 = vmatprep.mubr.msk.bf16.mxu0 %vm6827_vm0, %v6826_v0  ;;  %6536 = vmatpush3.bf16.msra.mxu0 %v4613_v37 }
0x3fb1   :  { %6549 = vmatprep.subr.bf16.mxu0 %v6826_v0 }
0x407a   :  { %v4441_v18 = vpop.f32.mrb[148].mxu0 }
0x407b   :  { %v4447_v19 = vpack.c.bf16 %v4441_v18, %v4441_v18  ;;  %v6515_v21 = vpop.f32.mrb[149].mxu0  ;;  %v5780_v18 = vld [vmem:[%s8150_s4 + $0x248] ss:$0 sm:$0xff] }
0x407c   :  { %v4444_v22 = vpop.f32.mrb[150].mxu0 }
0x407d   :  { %v6516_v23 = vpop.f32.mrb[151].mxu0  ;;  %6520 = vmatmul.mubr.msk.bf16.vlgmr.msra.gmra.mrb[144].mxu1 %vm213_vm4, %v4447_v19 }
0x407e   :  { %6531 = vmatprep.mubr.msk.bf16.mxu1 %vm6827_vm0, %v6826_v0 }
0x4082   :  { %v4540_v24 = vpop.f32.mrb[152].mxu0 }
0x4083   :  { %v4546_v25 = vmul.f32 0.35355338, %v4540_v24  ;;  %v6527_v26 = vpop.f32.mrb[153].mxu0 }
0x4084   :  { %v4543_v27 = vpop.f32.mrb[154].mxu0 }
0x4085   :  { %v6528_v31 = vpop.f32.mrb[155].mxu0  ;;  %v4547_v32 = vsel %vm213_vm4, %v4546_v25, -inf }
0x4086   :  { %4548 = vmax.xlane.f32.xlu1 %v4547_v32 }
0x4113   :  { %v4549_v33 = vpop.xlane.xlu1 %4548 }
0x4114   :  { %v4550_v34 = vsub.f32 %v4546_v25, %v4549_v33 }
0x4116   :  { %v4551_v44 = vmul.f32 1.442695, %v4550_v34 }
0x4118   :  { %6796 = vpow2.f32 %v4551_v44 }
0x4122   :  { %v6797_v9 = vpop.eup %6796 }
0x4123   :  { %v4553_v10 = vsel %vm213_vm4, %v6797_v9, 0.0 }
0x4124   :  { %4554 = vadd.xlane.f32.xlu0 %v4553_v10 }
0x413a   :  { %4559 = vrot.lane.b32.xlu0 %v7806_v48, %s6834_s21 }
0x4150   :  { %v4489_v39 = vpop.f32.mrb[144].mxu1 }
0x4151   :  { %v4495_v41 = vadd.f32 %v4489_v39, %v4335_v11  ;;  %v6521_v42 = vpop.f32.mrb[145].mxu1 }
0x4152   :  { %v4492_v43 = vpop.f32.mrb[146].mxu1 }
0x4153   :  { %v6522_v17 = vpop.f32.mrb[147].mxu1 }
0x41b1   :  { %v4555_v46 = vpop.xlane.xlu0 %4554 }
0x41b2   :  { %6798 = vrcp.f32 %v4555_v46 }
0x41b5   :  { %v4560_v47 = vpop.permute.xlu0 %4559 }
0x41b6   :  { %v4565_v48 = vsel %vm340_vm6, %v4560_v47, 0 }
0x41b7   :  { %6530 = vmatpush3.bf16.msra.mxu1 %v4565_v48 }
0x41b8   :  { %6541 = vmatprep.subr.bf16.mxu1 %v6826_v0 }
0x41bc   :  { %v6799_v49 = vpop.eup %6798 }
0x41bd   :  { %v4557_v28 = vmul.f32 %v6799_v49, %v6797_v9 }
0x41bf   :  { %v4558_v38 = vpack.c.bf16 %v4557_v28, %v4557_v28 }
0x41c1   :  { %6532 = vmatmul.mubr.msk.bf16.vlgmr.msra.gmra.mrb[148].mxu1 %vm213_vm4, %v4558_v38 }
0x41c2   :  { %6545 = vmatprep.mubr.msk.bf16.mxu1 %vm6827_vm0, %v6826_v0  ;;  %6542 = vmatpush3.bf16.msra.mxu1 %v4693_v29 }
0x41c3   :  { %6543 = vmatprep.subr.bf16.mxu1 %v6826_v0 }
0x4294   :  { %v4601_v50 = vpop.f32.mrb[148].mxu1 }
0x4295   :  { %v4607_v52 = vpack.c.bf16 %v4601_v50, %v4601_v50  ;;  %v6533_v40 = vpop.f32.mrb[149].mxu1 }
0x4296   :  { %v4604_v3 = vpop.f32.mrb[150].mxu1 }
0x4297   :  { %v6534_v4 = vpop.f32.mrb[151].mxu1  ;;  %6538 = vmatmul.mubr.msk.bf16.vlgmr.msra.gmra.mrb[156].mxu0 %vm213_vm4, %v4607_v52 }
0x4298   :  { %6553 = vmatprep.mubr.msk.bf16.mxu0 %vm6827_vm0, %v6826_v0 }
0x436a   :  { %v4649_v53 = vpop.f32.mrb[156].mxu0 }
0x436b   :  { %v4655_v55 = vadd.f32 %v4649_v53, %v4495_v41  ;;  %v6539_v56 = vpop.f32.mrb[157].mxu0 }
0x436c   :  { %v4652_v57 = vpop.f32.mrb[158].mxu0  ;;  %v4687_v56 = vld [vmem:[%s8150_s4 + $0x250] sm:$0xff] }
0x436d   :  { %v4656_v58 = vadd.f32 %v4655_v55, %v7794_v62  ;;  %v6540_v59 = vpop.f32.mrb[159].mxu0  ;;  %v4684_v62 = vld [vmem:[%s8151_s6 + $0xd8] sm:$0xff]  ;;  %v4904_v57 = vpack.c.bf16 %v4687_v56, %v4687_v56 }
0x436e   :  { %v4694_v1 = vpack.c.bf16 %v4685_v63, %v4684_v62 }
0x436f   :  { %v4659_v60 = vsel %vm113_vm3, %v4656_v58, 0.0 }
0x4370   :  { %4660 = vadd.xlane.f32.xlu1 %v4659_v60  ;;  %4746 = vrot.lane.b32.xlu0 %v4694_v1, %s6828_s23 }
0x4371   :  { %6544 = vmatpush3.bf16.msra.mxu1 %v4694_v1 }
0x4372   :  { %6557 = vmatprep.subr.bf16.mxu1 %v6826_v0 }
0x4374   :  { %4751 = vrot.lane.b32.xlu0 %v5781_v45, %s6828_s23 }
0x43e2   :  { %v4747_v14 = vpop.permute.xlu0 %4746 }
0x43fd   :  { %v4661_v11 = vpop.xlane.xlu1 %4660 }
0x43fe   :  { %v4662_v2 = vmul.f32 0.03125, %v4661_v11 }
0x4400   :  { %v4663_v5 = vsub.f32 %v4656_v58, %v4662_v2  ;;  %v4909_v58 = vsel %vm340_vm6, %v4904_v57, 0 }
0x4402   :  { %v4664_v6 = vmul.f32 %v4663_v5, %v4663_v5 }
0x4404   :  { %v4665_v7 = vsel %vm113_vm3, %v4664_v6, 0.0 }
0x4405   :  { %4666 = vadd.xlane.f32.xlu1 %v4665_v7 }
0x4416   :  { %4744 = vrot.lane.b32.xlu1 %v4693_v29, %s6828_s23 }
0x4492   :  { %v4667_v8 = vpop.xlane.xlu1 %4666 }
0x4493   :  { %v4668_v30 = vmul.f32 0.03125, %v4667_v8 }
0x4495   :  { %v4669_v12 = vadd.f32 1e-05, %v4668_v30 }
0x4496   :  { %v4745_v13 = vpop.permute.xlu1 %4744 }
0x4497   :  { %6800 = vrsqrt.f32 %v4669_v12  ;;  %6550 = vmatpush3.bf16.msra.mxu0 %v4745_v13 }
0x4498   :  { %6551 = vmatprep.subr.bf16.mxu0 %v6826_v0 }
0x449b   :  { %6552 = vmatpush3.bf16.msra.mxu0 %v4747_v14 }
0x449c   :  { %6563 = vmatprep.subr.bf16.mxu0 %v6826_v0 }
0x449e   :  { %6554 = vmatmul.mubr.msk.bf16.vlgmr.msra.gmra.mrb[160].mxu0 %vm113_vm3, %v7578_v54  ;;  %v4752_v54 = vpop.permute.xlu0 %4751 }
0x449f   :  { %6565 = vmatprep.mubr.msk.bf16.mxu0 %vm6827_vm0, %v6826_v0 }
0x44a1   :  { %v6801_v15 = vpop.eup %6800 }
0x44a2   :  { %v4671_v20 = vmul.f32 %v6801_v15, %v4663_v5 }
0x44a4   :  { %v4676_v19 = vmul.f32 %v5779_v16, %v4671_v20 }
0x44a6   :  { %v7950_v21 = vadd.f32 %v5780_v18, %v4676_v19 }
0x44a8   :  { %v4692_v22 = vpack.c.bf16 %v7950_v21, %v7950_v21 }
0x44aa   :  { %6546 = vmatmul.mubr.msk.bf16.vlgmr.msra.gmra.mrb[152].mxu1 %vm113_vm3, %v4692_v22 }
0x44ab   :  { %6559 = vmatprep.mubr.msk.bf16.mxu1 %vm6827_vm0, %v6826_v0 }
0x4571   :  { %v4788_v23 = vpop.f32.mrb[160].mxu0 }
0x4572   :  { %v6555_v24 = vpop.f32.mrb[161].mxu0  ;;  %v4789_v26 = vadd.f32 %v4788_v23, %v4752_v54 }
0x4573   :  { %v4791_v25 = vpop.f32.mrb[162].mxu0 }
0x4574   :  { %v4792_v27 = vadd.f32 %v4791_v25, %v4752_v54  ;;  %v6556_v31 = vpop.f32.mrb[163].mxu0  ;;  %v4688_v25 = vld [vmem:[%s8150_s4 + $0x258] sm:$0xff] }
0x4576   :  { %v7957_v32 = vpack.c.bf16 %v4792_v27, %v4789_v26  ;;  %v5067_v26 = vpack.c.bf16 %v4688_v25, %v4688_v25 }
0x4578   :  { %v4801_v33 = vsel %vm213_vm4, %v7957_v32, 0  ;;  %v5072_v27 = vsel %vm340_vm6, %v5067_v26, 0 }
0x4579   :  { %6558 = vmatpush3.bf16.xpose.msra.mxu1 %v4801_v33 }
0x457a   :  { %6569 = vmatprep.subr.bf16.mxu1 %v6826_v0 }
0x457d   :  { %v4736_v34 = vpop.f32.mrb[152].mxu1 }
0x457e   :  { %v4737_v44 = vadd.f32 %v5781_v45, %v4736_v34  ;;  %v6547_v9 = vpop.f32.mrb[153].mxu1 }
0x457f   :  { %v4739_v10 = vpop.f32.mrb[154].mxu1 }
0x4580   :  { %v7962_v35 = vpack.c.bf16 %v4737_v44, %v4737_v44  ;;  %v6548_v36 = vpop.f32.mrb[155].mxu1 }
0x4582   :  { %6560 = vmatmul.mubr.msk.bf16.vlgmr.msra.gmra.mrb[156].mxu1 %vm213_vm4, %v7962_v35 }
0x4583   :  { %6571 = vmatprep.mubr.msk.bf16.mxu1 %vm6827_vm0, %v6826_v0  ;;  %6570 = vmatpush3.bf16.msra.mxu1 %v4909_v58 }
0x4584   :  { %6581 = vmatprep.subr.bf16.mxu1 %v6826_v0 }
0x4655   :  { %v4837_v37 = vpop.f32.mrb[156].mxu1 }
0x4656   :  { %v4843_v39 = vmul.f32 0.35355338, %v4837_v37  ;;  %v6561_v41 = vpop.f32.mrb[157].mxu1 }
0x4657   :  { %v4840_v42 = vpop.f32.mrb[158].mxu1 }
0x4658   :  { %v6562_v43 = vpop.f32.mrb[159].mxu1  ;;  %v4844_v17 = vsel %vm263_vm5, %v4843_v39, -inf }
0x4659   :  { %4845 = vmax.xlane.f32.xlu1 %v4844_v17 }
0x466a   :  { %4959 = vrot.lane.b32.xlu1 %v7957_v32, %s6829_s2 }
0x466e   :  { %4957 = vrot.lane.b32.xlu1 %v7962_v35, %s6829_s2 }
0x46e6   :  { %v4846_v46 = vpop.xlane.xlu1 %4845 }
0x46e7   :  { %v4847_v47 = vsub.f32 %v4843_v39, %v4846_v46 }
0x46e9   :  { %v4848_v48 = vmul.f32 1.442695, %v4847_v47 }
0x46ea   :  { %v4960_v3 = vpop.permute.xlu1 %4959 }
0x46eb   :  { %6802 = vpow2.f32 %v4848_v48  ;;  %v4965_v53 = vsel %vm213_vm4, %v4960_v3, 0 }
0x46ee   :  { %v4958_v55 = vpop.permute.xlu1 %4957 }
0x46f5   :  { %v6803_v49 = vpop.eup %6802 }
0x46f6   :  { %v4850_v28 = vsel %vm263_vm5, %v6803_v49, 0.0 }
0x46f7   :  { %4851 = vadd.xlane.f32.xlu0 %v4850_v28 }
0x470d   :  { %4857 = vrot.lane.b32.xlu0 %v7957_v32, %s6828_s23 }
0x4784   :  { %v4852_v38 = vpop.xlane.xlu0 %4851 }
0x4785   :  { %6804 = vrcp.f32 %v4852_v38 }
0x4788   :  { %v4858_v50 = vpop.permute.xlu0 %4857 }
0x4789   :  { %6564 = vmatpush3.bf16.msra.mxu0 %v4858_v50 }
0x478a   :  { %6575 = vmatprep.subr.bf16.mxu0 %v6826_v0 }
0x478f   :  { %v6805_v52 = vpop.eup %6804 }
0x4790   :  { %v4854_v40 = vmul.f32 %v6805_v52, %v6803_v49  ;;  %v5787_v49 = vld [vmem:[%s8150_s4 + $0x270] ss:$0 sm:$0xff] }
0x4792   :  { %v4855_v4 = vpack.c.bf16 %v4854_v40, %v4854_v40 }
0x4794   :  { %6566 = vmatmul.mubr.msk.bf16.vlgmr.msra.gmra.mrb[164].mxu0 %vm263_vm5, %v4855_v4 }
0x4795   :  { %6576 = vmatpush3.bf16.xpose.msra.mxu0 %v4965_v53  ;;  %6577 = vmatprep.mubr.msk.bf16.mxu0 %vm6827_vm0, %v6826_v0 }
0x4796   :  { %6587 = vmatprep.subr.bf16.mxu0 %v6826_v0 }
0x479c   :  { %6578 = vmatmul.mubr.msk.bf16.vlgmr.msra.gmra.mrb[168].mxu0 %vm213_vm4, %v4958_v55 }
0x479d   :  { %6589 = vmatprep.mubr.msk.bf16.mxu0 %vm6827_vm0, %v6826_v0  ;;  %6588 = vmatpush3.bf16.msra.mxu0 %v5072_v27 }
0x479e   :  { %6599 = vmatprep.subr.bf16.mxu0 %v6826_v0 }
0x4867   :  { %v4897_v59 = vpop.f32.mrb[164].mxu0 }
0x4868   :  { %v4903_v60 = vpack.c.bf16 %v4897_v59, %v4897_v59  ;;  %v6567_v51 = vpop.f32.mrb[165].mxu0 }
0x4869   :  { %v4900_v61 = vpop.f32.mrb[166].mxu0 }
0x486a   :  { %v6568_v29 = vpop.f32.mrb[167].mxu0  ;;  %6572 = vmatmul.mubr.msk.bf16.vlgmr.msra.gmra.mrb[160].mxu1 %vm213_vm4, %v4903_v60  ;;  %v4689_v60 = vld [vmem:[%s8150_s4 + $0x260] sm:$0xff] }
0x486b   :  { %6583 = vmatprep.mubr.msk.bf16.mxu1 %vm6827_vm0, %v6826_v0  ;;  %v5225_v51 = vpack.c.bf16 %v4689_v60, %v4689_v60 }
0x486d   :  { %v5230_v61 = vsel %vm340_vm6, %v5225_v51, 0 }
0x486f   :  { %v5001_v62 = vpop.f32.mrb[168].mxu0 }
0x4870   :  { %v5007_v63 = vmul.f32 0.35355338, %v5001_v62  ;;  %v6579_v1 = vpop.f32.mrb[169].mxu0 }
0x4871   :  { %v5004_v11 = vpop.f32.mrb[170].mxu0 }
0x4872   :  { %v6580_v2 = vpop.f32.mrb[171].mxu0  ;;  %v5008_v5 = vsel %vm263_vm5, %v5007_v63, -inf }
0x4873   :  { %5009 = vmax.xlane.f32.xlu0 %v5008_v5 }
0x4889   :  { %5020 = vrot.lane.b32.xlu0 %v7957_v32, %s6830_s11 }
0x488d   :  { %5115 = vrot.lane.b32.xlu0 %v7962_v35, %s6831_s12 }
0x4900   :  { %v5010_v6 = vpop.xlane.xlu0 %5009 }
0x4901   :  { %v5011_v7 = vsub.f32 %v5007_v63, %v5010_v6 }
0x4903   :  { %v5012_v45 = vmul.f32 1.442695, %v5011_v7 }
0x4904   :  { %v5021_v8 = vpop.permute.xlu0 %5020 }
0x4905   :  { %6806 = vpow2.f32 %v5012_v45  ;;  %6582 = vmatpush3.bf16.msra.mxu1 %v5021_v8 }
0x4906   :  { %6593 = vmatprep.subr.bf16.mxu1 %v6826_v0 }
0x4908   :  { %v5116_v24 = vpop.permute.xlu0 %5115 }
0x490f   :  { %v6807_v30 = vpop.eup %6806 }
0x4910   :  { %v5014_v12 = vsel %vm263_vm5, %v6807_v30, 0.0 }
0x4911   :  { %5015 = vadd.xlane.f32.xlu1 %v5014_v12 }
0x4922   :  { %5117 = vrot.lane.b32.xlu1 %v7957_v32, %s6831_s12 }
0x493d   :  { %v4945_v13 = vpop.f32.mrb[160].mxu1 }
0x493e   :  { %v6573_v14 = vpop.f32.mrb[161].mxu1  ;;  %v4955_v28 = vadd.f32 %v5787_v49, %v4945_v13 }
0x493f   :  { %v4948_v15 = vpop.f32.mrb[162].mxu1 }
0x4940   :  { %v6574_v16 = vpop.f32.mrb[163].mxu1 }
0x499e   :  { %v5016_v20 = vpop.xlane.xlu1 %5015 }
0x499f   :  { %6808 = vrcp.f32 %v5016_v20  ;;  %v4690_v20 = vld [vmem:[%s8150_s4 + $0x268] sm:$0xff] }
0x49a2   :  { %v5118_v22 = vpop.permute.xlu1 %5117 }
0x49a3   :  { %v5123_v23 = vsel %vm213_vm4, %v5118_v22, 0 }
0x49a9   :  { %v6809_v18 = vpop.eup %6808 }
0x49aa   :  { %v5018_v19 = vmul.f32 %v6809_v18, %v6807_v30  ;;  %v5383_v18 = vpack.c.bf16 %v4690_v20, %v4690_v20 }
0x49ac   :  { %v5019_v54 = vpack.c.bf16 %v5018_v19, %v5018_v19  ;;  %v5388_v19 = vsel %vm340_vm6, %v5383_v18, 0 }
0x49ae   :  { %6584 = vmatmul.mubr.msk.bf16.vlgmr.msra.gmra.mrb[164].mxu1 %vm263_vm5, %v5019_v54 }
0x49af   :  { %6594 = vmatpush3.bf16.xpose.msra.mxu1 %v5123_v23  ;;  %6595 = vmatprep.mubr.msk.bf16.mxu1 %vm6827_vm0, %v6826_v0 }
0x49b0   :  { %6605 = vmatprep.subr.bf16.mxu1 %v6826_v0 }
0x49b6   :  { %6596 = vmatmul.mubr.msk.bf16.vlgmr.msra.gmra.mrb[168].mxu1 %vm213_vm4, %v5116_v24 }
0x49b7   :  { %6607 = vmatprep.mubr.msk.bf16.mxu1 %vm6827_vm0, %v6826_v0  ;;  %6606 = vmatpush3.bf16.msra.mxu1 %v5230_v61  ;;  %v5797_v61 = vld [vmem:[%s8150_s4 + $0x278] ss:$0 sm:$0xff] }
0x49b8   :  { %6617 = vmatprep.subr.bf16.mxu1 %v6826_v0 }
0x4a81   :  { %v5060_v31 = vpop.f32.mrb[164].mxu1 }
0x4a82   :  { %v5066_v33 = vpack.c.bf16 %v5060_v31, %v5060_v31  ;;  %v6585_v34 = vpop.f32.mrb[165].mxu1 }
0x4a83   :  { %v5063_v44 = vpop.f32.mrb[166].mxu1 }
0x4a84   :  { %v6586_v9 = vpop.f32.mrb[167].mxu1  ;;  %6590 = vmatmul.mubr.msk.bf16.vlgmr.msra.gmra.mrb[172].mxu0 %vm213_vm4, %v5066_v33 }
0x4a85   :  { %6601 = vmatprep.mubr.msk.bf16.mxu0 %vm6827_vm0, %v6826_v0 }
0x4a89   :  { %v5159_v10 = vpop.f32.mrb[168].mxu1 }
0x4a8a   :  { %v5165_v36 = vmul.f32 0.35355338, %v5159_v10  ;;  %v6597_v37 = vpop.f32.mrb[169].mxu1 }
0x4a8b   :  { %v5162_v39 = vpop.f32.mrb[170].mxu1 }
0x4a8c   :  { %v6598_v41 = vpop.f32.mrb[171].mxu1  ;;  %v5166_v42 = vsel %vm263_vm5, %v5165_v36, -inf }
0x4a8d   :  { %5167 = vmax.xlane.f32.xlu1 %v5166_v42 }
0x4a9e   :  { %5275 = vrot.lane.b32.xlu1 %v7957_v32, %s6832_s15 }
0x4aa2   :  { %5273 = vrot.lane.b32.xlu1 %v7962_v35, %s6832_s15 }
0x4b1a   :  { %v5168_v43 = vpop.xlane.xlu1 %5167 }
0x4b1b   :  { %v5169_v17 = vsub.f32 %v5165_v36, %v5168_v43 }
0x4b1d   :  { %v5170_v46 = vmul.f32 1.442695, %v5169_v17 }
0x4b1e   :  { %v5276_v56 = vpop.permute.xlu1 %5275 }
0x4b1f   :  { %6810 = vpow2.f32 %v5170_v46  ;;  %v5281_v58 = vsel %vm213_vm4, %v5276_v56, 0  ;;  %v5516_v56 = vld [vmem:[%s8150_s4 + $0x2a0] sm:$0xff] }
0x4b22   :  { %v5274_v59 = vpop.permute.xlu1 %5273 }
0x4b29   :  { %v6811_v47 = vpop.eup %6810 }
0x4b2a   :  { %v5172_v48 = vsel %vm263_vm5, %v6811_v47, 0.0 }
0x4b2b   :  { %5173 = vadd.xlane.f32.xlu0 %v5172_v48 }
0x4b41   :  { %5178 = vrot.lane.b32.xlu0 %v7957_v32, %s6833_s16 }
0x4b57   :  { %v5108_v38 = vpop.f32.mrb[172].mxu0 }
0x4b58   :  { %v5114_v50 = vadd.f32 %v5108_v38, %v4955_v28  ;;  %v6591_v52 = vpop.f32.mrb[173].mxu0  ;;  %v5457_v38 = vld [vmem:[%s8154_s5 + $0x78] sm:$0xff] }
0x4b59   :  { %v5111_v35 = vpop.f32.mrb[174].mxu0  ;;  %v5459_v52 = vld [vmem:[%s8154_s5 + $0x88] sm:$0xff] }
0x4b5a   :  { %v6592_v40 = vpop.f32.mrb[175].mxu0  ;;  %v5460_v35 = vld [vmem:[%s8154_s5 + $0x90] sm:$0xff] }
0x4b5b   :  { %v5463_v40 = vpack.c.bf16 %v5460_v35, %v5459_v52 }
0x4bb8   :  { %v5174_v3 = vpop.xlane.xlu0 %5173 }
0x4bb9   :  { %6812 = vrcp.f32 %v5174_v3  ;;  %v5513_v3 = vld [vmem:[%s8150_s4 + $0x288] sm:$0xff] }
0x4bbc   :  { %v5179_v4 = vpop.permute.xlu0 %5178 }
0x4bbd   :  { %6600 = vmatpush3.bf16.msra.mxu0 %v5179_v4  ;;  %v5514_v4 = vld [vmem:[%s8150_s4 + $0x290] sm:$0xff] }
0x4bbe   :  { %6611 = vmatprep.subr.bf16.mxu0 %v6826_v0 }
0x4bc3   :  { %v6813_v53 = vpop.eup %6812 }
0x4bc4   :  { %v5176_v55 = vmul.f32 %v6813_v53, %v6811_v47  ;;  %v5515_v53 = vld [vmem:[%s8150_s4 + $0x298] sm:$0xff] }
0x4bc6   :  { %v5177_v57 = vpack.c.bf16 %v5176_v55, %v5176_v55  ;;  %v5522_v55 = vpack.c.bf16 %v5514_v4, %v5513_v3 }
0x4bc8   :  { %6602 = vmatmul.mubr.msk.bf16.vlgmr.msra.gmra.mrb[176].mxu0 %vm263_vm5, %v5177_v57  ;;  %v5523_v57 = vpack.c.bf16 %v5516_v56, %v5515_v53 }
0x4bc9   :  { %6612 = vmatpush3.bf16.xpose.msra.mxu0 %v5281_v58  ;;  %6613 = vmatprep.mubr.msk.bf16.mxu0 %vm6827_vm0, %v6826_v0 }
0x4bca   :  { %6623 = vmatprep.subr.bf16.mxu0 %v6826_v0 }
0x4bd0   :  { %6614 = vmatmul.mubr.msk.bf16.vlgmr.msra.gmra.mrb[180].mxu0 %vm213_vm4, %v5274_v59 }
0x4bd1   :  { %6625 = vmatprep.mubr.msk.bf16.mxu0 %vm6827_vm0, %v6826_v0  ;;  %6624 = vmatpush3.bf16.msra.mxu0 %v5388_v19  ;;  %v5801_v19 = vld [vmem:[%s8150_s4 + $0x2c8] ss:$0 sm:$0xff] }
0x4bd2   :  { %6637 = vmatprep.subr.bf16.mxu0 %v6826_v0 }
0x4c9b   :  { %v5218_v29 = vpop.f32.mrb[176].mxu0 }
0x4c9c   :  { %v5224_v62 = vpack.c.bf16 %v5218_v29, %v5218_v29  ;;  %v6603_v63 = vpop.f32.mrb[177].mxu0 }
0x4c9d   :  { %v5221_v1 = vpop.f32.mrb[178].mxu0 }
0x4c9e   :  { %v6604_v11 = vpop.f32.mrb[179].mxu0  ;;  %6608 = vmatmul.mubr.msk.bf16.vlgmr.msra.gmra.mrb[172].mxu1 %vm213_vm4, %v5224_v62  ;;  %v5798_v62 = vld [vmem:[%s8150_s4 + $0x280] ss:$0 sm:$0xff] }
0x4c9f   :  { %6619 = vmatprep.mubr.msk.bf16.mxu1 %vm6827_vm0, %v6826_v0 }
0x4ca3   :  { %v5317_v2 = vpop.f32.mrb[180].mxu0 }
0x4ca4   :  { %v5323_v5 = vmul.f32 0.35355338, %v5317_v2  ;;  %v6615_v6 = vpop.f32.mrb[181].mxu0  ;;  %v5517_v2 = vld [vmem:[%s8150_s4 + $0x2a8] sm:$0xff] }
0x4ca5   :  { %v5320_v7 = vpop.f32.mrb[182].mxu0 }
0x4ca6   :  { %v6616_v45 = vpop.f32.mrb[183].mxu0  ;;  %v5324_v8 = vsel %vm263_vm5, %v5323_v5, -inf  ;;  %v5519_v7 = vld [vmem:[%s8150_s4 + $0x2b8] sm:$0xff] }
0x4ca7   :  { %5325 = vmax.xlane.f32.xlu0 %v5324_v8  ;;  %v5520_v45 = vld [vmem:[%s8150_s4 + $0x2c0] sm:$0xff] }
0x4ca8   :  { %v5525_v8 = vpack.c.bf16 %v5520_v45, %v5519_v7 }
0x4cbd   :  { %5336 = vrot.lane.b32.xlu0 %v7957_v32, %s6834_s21 }
0x4d34   :  { %v5326_v30 = vpop.xlane.xlu0 %5325 }
0x4d35   :  { %v5327_v12 = vsub.f32 %v5323_v5, %v5326_v30  ;;  %v5518_v5 = vld [vmem:[%s8150_s4 + $0x2b0] sm:$0xff]  ;;  %v5799_v30 = vld [vmem:[%s8154_s5 + $0x98] ss:$0 sm:$0xff] }
0x4d36   :  { %v5524_v6 = vpack.c.bf16 %v5518_v5, %v5517_v2 }
0x4d37   :  { %v5328_v13 = vmul.f32 1.442695, %v5327_v12 }
0x4d38   :  { %v5337_v14 = vpop.permute.xlu0 %5336 }
0x4d39   :  { %6814 = vpow2.f32 %v5328_v13  ;;  %6618 = vmatpush3.bf16.msra.mxu1 %v5337_v14 }
0x4d3a   :  { %6629 = vmatprep.subr.bf16.mxu1 %v6826_v0 }
0x4d43   :  { %v6815_v15 = vpop.eup %6814 }
0x4d44   :  { %v5330_v16 = vsel %vm263_vm5, %v6815_v15, 0.0 }
0x4d45   :  { %5331 = vadd.xlane.f32.xlu1 %v5330_v16 }
0x4d71   :  { %v5266_v32 = vpop.f32.mrb[172].mxu1 }
0x4d72   :  { %v5272_v22 = vadd.f32 %v5266_v32, %v5114_v50  ;;  %v6609_v54 = vpop.f32.mrb[173].mxu1  ;;  %v5458_v50 = vld [vmem:[%s8154_s5 + $0x80] sm:$0xff] }
0x4d73   :  { %v5269_v23 = vpop.f32.mrb[174].mxu1 }
0x4d74   :  { %v6610_v24 = vpop.f32.mrb[175].mxu1 }
0x4dd2   :  { %v5332_v25 = vpop.xlane.xlu1 %5331 }
0x4dd3   :  { %6816 = vrcp.f32 %v5332_v25 }
0x4ddd   :  { %v6817_v26 = vpop.eup %6816 }
0x4dde   :  { %v5334_v27 = vmul.f32 %v6817_v26, %v6815_v15 }
0x4de0   :  { %v5335_v31 = vpack.c.bf16 %v5334_v27, %v5334_v27 }
0x4de2   :  { %6620 = vmatmul.mubr.msk.bf16.vlgmr.msra.gmra.mrb[176].mxu1 %vm263_vm5, %v5335_v31 }
0x4de3   :  { %6633 = vmatprep.mubr.msk.bf16.mxu1 %vm6827_vm0, %v6826_v0 }
0x4eb5   :  { %v5376_v33 = vpop.f32.mrb[176].mxu1 }
0x4eb6   :  { %v5382_v34 = vpack.c.bf16 %v5376_v33, %v5376_v33  ;;  %v6621_v44 = vpop.f32.mrb[177].mxu1 }
0x4eb7   :  { %v5379_v9 = vpop.f32.mrb[178].mxu1 }
0x4eb8   :  { %v6622_v10 = vpop.f32.mrb[179].mxu1  ;;  %6626 = vmatmul.mubr.msk.bf16.vlgmr.msra.gmra.mrb[184].mxu0 %vm213_vm4, %v5382_v34  ;;  %v5600_v9 = vld [vmem:[%s8157_s7] sm:$0xff] }
0x4eb9   :  { %6645 = vmatprep.mubr.msk.bf16.mxu0 %vm6827_vm0, %v6826_v0  ;;  %6638 = vmatpush3.bf16.msra.mxu0 %v5522_v55  ;;  %v5601_v10 = vld [vmem:[%s8157_s7 + $0x8] sm:$0xff] }
0x4eba   :  { %6639 = vmatprep.subr.bf16.mxu0 %v6826_v0 }
0x4ebd   :  { %6640 = vmatpush3.bf16.msra.mxu0 %v5523_v57 }
0x4ebe   :  { %6641 = vmatprep.subr.bf16.mxu0 %v6826_v0 }
0x4ec1   :  { %6642 = vmatpush3.bf16.msra.mxu0 %v5524_v6 }
0x4ec2   :  { %6643 = vmatprep.subr.bf16.mxu0 %v6826_v0 }
0x4ec5   :  { %6644 = vmatpush3.bf16.msra.mxu0 %v5525_v8 }
0x4f8b   :  { %v5424_v36 = vpop.f32.mrb[184].mxu0 }
0x4f8c   :  { %v5430_v37 = vadd.f32 %v5424_v36, %v5272_v22  ;;  %v6627_v39 = vpop.f32.mrb[185].mxu0  ;;  %v5605_v36 = vpack.c.bf16 %v5601_v10, %v5600_v9 }
0x4f8d   :  { %v5427_v41 = vpop.f32.mrb[186].mxu0  ;;  %v5603_v39 = vld [vmem:[%s8157_s7 + $0x18] sm:$0xff] }
0x4f8e   :  { %v5431_v42 = vadd.f32 %v5430_v37, %v7950_v21  ;;  %v6628_v43 = vpop.f32.mrb[187].mxu0  ;;  %v5462_v21 = vpack.c.bf16 %v5458_v50, %v5457_v38  ;;  %v5602_v37 = vld [vmem:[%s8157_s7 + $0x10] sm:$0xff] }
0x4f8f   :  { %v5606_v41 = vpack.c.bf16 %v5603_v39, %v5602_v37 }
0x4f90   :  { %v5434_v17 = vsel %vm113_vm3, %v5431_v42, 0.0  ;;  %6630 = vmatpush3.bf16.msra.mxu1 %v5462_v21 }
0x4f91   :  { %5435 = vadd.xlane.f32.xlu1 %v5434_v17  ;;  %6631 = vmatprep.subr.bf16.mxu1 %v6826_v0 }
0x4f94   :  { %6632 = vmatpush3.bf16.msra.mxu1 %v5463_v40 }
0x4f95   :  { %6649 = vmatprep.subr.bf16.mxu1 %v6826_v0 }
0x501e   :  { %v5436_v46 = vpop.xlane.xlu1 %5435 }
0x501f   :  { %v5437_v47 = vmul.f32 0.03125, %v5436_v46 }
0x5021   :  { %v5438_v48 = vsub.f32 %v5431_v42, %v5437_v47  ;;  %v5803_v47 = vld [vmem:[%s8150_s4 + $0x2d0] ss:$0 sm:$0xff] }
0x5023   :  { %v5439_v49 = vmul.f32 %v5438_v48, %v5438_v48 }
0x5025   :  { %v5440_v28 = vsel %vm113_vm3, %v5439_v49, 0.0  ;;  %v5804_v49 = vld [vmem:[%s8150_s4 + $0x2d8] ss:$0 sm:$0xff] }
0x5026   :  { %5441 = vadd.xlane.f32.xlu1 %v5440_v28 }
0x50b3   :  { %v5442_v58 = vpop.xlane.xlu1 %5441 }
0x50b4   :  { %v5443_v59 = vmul.f32 0.03125, %v5442_v58 }
0x50b6   :  { %v5444_v60 = vadd.f32 1e-05, %v5443_v59 }
0x50b8   :  { %6818 = vrsqrt.f32 %v5444_v60 }
0x50c2   :  { %v6819_v51 = vpop.eup %6818 }
0x50c3   :  { %v5446_v29 = vmul.f32 %v6819_v51, %v5438_v48 }
0x50c5   :  { %v5451_v63 = vmul.f32 %v5797_v61, %v5446_v29 }
0x50c7   :  { %v5456_v1 = vadd.f32 %v5798_v62, %v5451_v63 }
0x50c9   :  { %v5461_v11 = vpack.c.bf16 %v5456_v1, %v5456_v1 }
0x50cb   :  { %6634 = vmatmul.mubr.msk.bf16.vlgmr.msra.gmra.mrb[180].mxu1 %vm113_vm3, %v5461_v11 }
0x50cc   :  { %6653 = vmatprep.mubr.msk.bf16.mxu1 %vm6827_vm0, %v6826_v0  ;;  %6650 = vmatpush3.bf16.msra.mxu1 %v5605_v36 }
0x50cd   :  { %6651 = vmatprep.subr.bf16.mxu1 %v6826_v0  ;;  %v5805_v0 = vld [vmem:[%s8157_s7 + $0x20] ss:$0 sm:$0xff] }
0x50d0   :  { %6652 = vmatpush3.bf16.msra.mxu1 %v5606_v41 }
0x519e   :  { %v5506_v12 = vpop.f32.mrb[180].mxu1 }
0x519f   :  { %v5507_v13 = vadd.f32 %v5799_v30, %v5506_v12  ;;  %v6635_v14 = vpop.f32.mrb[181].mxu1 }
0x51a0   :  { %v5509_v15 = vpop.f32.mrb[182].mxu1 }
0x51a1   :  { %v5512_v16 = vmax.f32 %v5507_v13, 0.0  ;;  %v6636_v20 = vpop.f32.mrb[183].mxu1 }
0x51a3   :  { %v5521_v18 = vpack.c.bf16 %v5512_v16, %v5512_v16 }
0x51a5   :  { %6646 = vmatmul.mubr.msk.bf16.vlgmr.msra.gmra.mrb[188].mxu0 %vm1033_vm7, %v5521_v18 }
0x5278   :  { %v5568_v32 = vpop.f32.mrb[188].mxu0 }
0x5279   :  { %v5569_v22 = vadd.f32 %v5801_v19, %v5568_v32  ;;  %v6647_v54 = vpop.f32.mrb[189].mxu0 }
0x527a   :  { %v5571_v23 = vpop.f32.mrb[190].mxu0 }
0x527b   :  { %v5574_v24 = vadd.f32 %v5569_v22, %v5456_v1  ;;  %v6648_v25 = vpop.f32.mrb[191].mxu0 }
0x527d   :  { %v5577_v26 = vsel %vm113_vm3, %v5574_v24, 0.0 }
0x527e   :  { %5578 = vadd.xlane.f32.xlu1 %v5577_v26 }
0x530b   :  { %v5579_v27 = vpop.xlane.xlu1 %5578 }
0x530c   :  { %v5580_v31 = vmul.f32 0.03125, %v5579_v27 }
0x530e   :  { %v5581_v33 = vsub.f32 %v5574_v24, %v5580_v31 }
0x5310   :  { %v5582_v34 = vmul.f32 %v5581_v33, %v5581_v33 }
0x5312   :  { %v5583_v44 = vsel %vm113_vm3, %v5582_v34, 0.0 }
0x5313   :  { %5584 = vadd.xlane.f32.xlu1 %v5583_v44 }
0x53a0   :  { %v5585_v42 = vpop.xlane.xlu1 %5584 }
0x53a1   :  { %v5586_v43 = vmul.f32 0.03125, %v5585_v42 }
0x53a3   :  { %v5587_v17 = vadd.f32 1e-05, %v5586_v43 }
0x53a5   :  { %6820 = vrsqrt.f32 %v5587_v17 }
0x53af   :  { %v6821_v46 = vpop.eup %6820 }
0x53b0   :  { %v5589_v48 = vmul.f32 %v6821_v46, %v5581_v33 }
0x53b2   :  { %v5594_v28 = vmul.f32 %v5803_v47, %v5589_v48 }
0x53b4   :  { %v5599_v38 = vadd.f32 %v5804_v49, %v5594_v28 }
0x53b6   :  { %v5604_v50 = vpack.c.bf16 %v5599_v38, %v5599_v38 }
0x53b8   :  { %6654 = vmatmul.mubr.msk.bf16.vlgmr.msra.gmra.mrb[184].mxu1 %vm113_vm3, %v5604_v50 }
0x548b   :  { %v5649_v21 = vpop.f32.mrb[184].mxu1 }
0x548c   :  { %v5650_v52 = vadd.f32 %v5805_v0, %v5649_v21  ;;  %v6655_v35 = vpop.f32.mrb[185].mxu1 }
0x548d   :  { %v5652_v40 = vpop.f32.mrb[186].mxu1 }
0x548e   :  { %5655 = vmax.xlane.f32.xlu0 %v5650_v52  ;;  %v6656_v3 = vpop.f32.mrb[187].mxu1 }
0x551b   :  { %v5656_v4 = vpop.xlane.xlu0 %5655 }
0x551c   :  { %v5657_v53 = vsub.f32 %v5650_v52, %v5656_v4 }
0x551e   :  { %v5658_v55 = vmul.f32 1.442695, %v5657_v53 }
0x5520   :  { %6822 = vpow2.f32 %v5658_v55 }
0x552a   :  { %v6823_v56 = vpop.eup %6822 }
0x552b   :  { %5660 = vadd.xlane.f32.xlu1 %v6823_v56 }
0x55b8   :  { %v5661_v57 = vpop.xlane.xlu1 %5660 }
0x55b9   :  { %6824 = vrcp.f32 %v5661_v57 }
0x55c3   :  { %v6825_v58 = vpop.eup %6824 }
0x55c4   :  { %v5663_v59 = vmul.f32 %v6825_v58, %v6823_v56 }
0x55c6   :  { %5664 = vst [vmem:[%s8158_s8] sm:$0xff] %v5663_v59 }

</bundles_post_ra>
